<compile_context>
chip_gen: v7x
topology: tpu7x:2x2x1
jax: 0.10.0
libtpu: 0.0.40
codegen_flags: <defaults>
</compile_context>

<pallas_src>
import functools

import numpy as np
import jax
import jax.numpy as jnp
from jax.experimental import pallas as pl
from jax.experimental.pallas import tpu as pltpu

INPUT_SIZE = 32                          # self.input_size (== num_filters)
KERNEL_SIZE = 19                         # self.kernel_size
CONV_OUT = INPUT_SIZE - KERNEL_SIZE + 1  # self.conv_out
HIDDEN_SIZE = 128                        # self.hidden_size
NUM_LAYERS = 2                           # self.num_layers
OUTPUT_SIZE = 8                          # self.output_size


def model7_kernel(x_ref, w0_ref, b0_ref,
                  whh0_ref,
                  w1_ref, b1_ref,
                  h00_ref, c00_ref, h01_ref, c01_ref,
                  wcls_ref, bcls_ref,
                  out_ref,
                  seq1_ref,
                  *, Bp, T):
    H = HIDDEN_SIZE

    # ---- fused conv1d + linear_pool + layer-0 input projection: ONE matmul ----
    gx0 = jnp.dot(x_ref[...], w0_ref[...],
                  preferred_element_type=jnp.float32) + b0_ref[...]     # (T*Bp, 4H)

    whh0 = whh0_ref[...]                                                # (H, 4H)
    w1 = w1_ref[...]                                                    # (2H, 4H)
    b1 = b1_ref[...]                                                    # (1, 4H)

    def cell(gates, c):
        # PyTorch gate order: i, f, g, o
        i_g = jax.nn.sigmoid(gates[:, 0 * H:1 * H])
        f_g = jax.nn.sigmoid(gates[:, 1 * H:2 * H])
        g_g = jnp.tanh(gates[:, 2 * H:3 * H])
        o_g = jax.nn.sigmoid(gates[:, 3 * H:4 * H])
        c_new = f_g * c + i_g * g_g
        h_new = o_g * jnp.tanh(c_new)
        return h_new, c_new

    h0 = jnp.broadcast_to(h00_ref[...], (Bp, H))
    c0 = jnp.broadcast_to(c00_ref[...], (Bp, H))
    h1 = jnp.broadcast_to(h01_ref[...], (Bp, H))
    c1 = jnp.broadcast_to(c01_ref[...], (Bp, H))

    # ---- prologue: layer-0 step 0 ----
    g0 = gx0[0:Bp, :] + jnp.dot(h0, whh0, preferred_element_type=jnp.float32)
    h0, c0 = cell(g0, c0)

    # ---- steady state: layer-0 step t interleaved with layer-1 step t-1 ----
    # Both chains only read h0_{t-1} (and h1_{t-2}); they are independent, giving the
    # VLIW scheduler MXU / EUP / VPU overlap across the two layers.
    for t in range(1, T):   # T is static -> unrolled; slices are aligned full tiles
        g0 = gx0[t * Bp:(t + 1) * Bp, :] + jnp.dot(
            h0, whh0, preferred_element_type=jnp.float32)               # (Bp, 4H)
        g1 = jnp.dot(jnp.concatenate([h0, h1], axis=1), w1,
                     preferred_element_type=jnp.float32) + b1           # (Bp, 4H)
        h0, c0 = cell(g0, c0)
        h1, c1 = cell(g1, c1)
        seq1_ref[pl.ds((t - 1) * Bp, Bp), :] = h1   # aligned, unmasked full-tile store

    # ---- epilogue: layer-1 step T-1 ----
    g1 = jnp.dot(jnp.concatenate([h0, h1], axis=1), w1,
                 preferred_element_type=jnp.float32) + b1
    h1, c1 = cell(g1, c1)
    seq1_ref[pl.ds((T - 1) * Bp, Bp), :] = h1

    # ---- hiddenToClass: one fused matmul, lane-dense (128-col) output store ----
    out_ref[...] = jnp.dot(seq1_ref[...], wcls_ref[...],
                           preferred_element_type=jnp.float32) + bcls_ref[...]


def model7_forward(x, p):
    B, T, L = x.shape
    F = p["conv_w"].shape[0]
    H = HIDDEN_SIZE
    C = p["cls_w"].shape[0]
    Bp = ((B + 7) // 8) * 8          # sublane-pad the batch
    Cp = ((C + 127) // 128) * 128    # lane-pad the classifier output

    # Fold conv1d + linear_pool into a single (L, F) linear map (exact composition):
    #   pooled[oc] = sum_j pw[j] * (sum_k cw[oc,k] * x[j+k] + cb[oc]) + pb
    cw = p["conv_w"].reshape(F, KERNEL_SIZE)                            # (F, K)
    pw = p["pool_w"].reshape(-1)                                        # (conv_out,)
    weff = jax.vmap(lambda w: jnp.convolve(pw, w, mode="full"))(cw).T   # (L, F)
    beff = (p["conv_b"] * jnp.sum(pw) + p["pool_b"][0]).reshape(1, F)   # (1, F)

    wih0, whh0 = p["wih0"].T, p["whh0"].T                               # (F,4H), (H,4H)
    wih1, whh1 = p["wih1"].T, p["whh1"].T                               # (H,4H), (H,4H)
    b0 = (p["bih0"] + p["bhh0"]).reshape(1, 4 * H)
    b1 = (p["bih1"] + p["bhh1"]).reshape(1, 4 * H)

    # Fold conv+pool into the layer-0 input projection (still exact, done once):
    w0 = weff @ wih0                                                    # (L, 4H)
    b0e = beff @ wih0 + b0                                              # (1, 4H)

    # Layer-1 concatenated per-step weight [Wih1 ; Whh1]:
    w1 = jnp.concatenate([wih1, whh1], axis=0)                          # (2H, 4H)

    # Classifier, zero-padded to a lane-dense 128-column output:
    wcls = jnp.zeros((H, Cp), jnp.float32).at[:, :C].set(p["cls_w"].T)
    bcls = jnp.zeros((1, Cp), jnp.float32).at[:, :C].set(p["cls_b"])

    h00, c00 = p["h0"][0], p["c0"][0]                                   # (1, H) each
    h01, c01 = p["h0"][1], p["c0"][1]

    # Time-major, sublane-padded slab: step t is the aligned row slice [t*Bp, (t+1)*Bp).
    x_tm = jnp.transpose(x, (1, 0, 2)).astype(jnp.float32)              # (T, B, L)
    x_tm = jnp.pad(x_tm, ((0, 0), (0, Bp - B), (0, 0))).reshape(T * Bp, L)

    args = (x_tm, w0, b0e, whh0, w1, b1, h00, c00, h01, c01, wcls, bcls)

    out_tm = pl.pallas_call(
        functools.partial(model7_kernel, Bp=Bp, T=T),
        out_shape=jax.ShapeDtypeStruct((T * Bp, Cp), jnp.float32),
        in_specs=[pl.BlockSpec(memory_space=pltpu.MemorySpace.VMEM)] * len(args),
        out_specs=pl.BlockSpec(memory_space=pltpu.MemorySpace.VMEM),
        scratch_shapes=[pltpu.VMEM((T * Bp, H), jnp.float32)],
    )(*args)

    out = out_tm.reshape(T, Bp, Cp)[:, :B, :C]
    return jnp.transpose(out, (1, 0, 2))                                # (B, T, C)


def init_params(key):
    F, K, H, C = INPUT_SIZE, KERNEL_SIZE, HIDDEN_SIZE, OUTPUT_SIZE
    ks = jax.random.split(key, 16)

    def u(k, shape, fan_in):
        s = 1.0 / float(np.sqrt(fan_in))
        return jax.random.uniform(k, shape, jnp.float32, -s, s)

    return dict(
        conv_w=u(ks[0], (F, 1, K), K),       conv_b=u(ks[1], (F,), K),
        pool_w=u(ks[2], (1, CONV_OUT), CONV_OUT), pool_b=u(ks[3], (1,), CONV_OUT),
        wih0=u(ks[4], (4 * H, F), H),        whh0=u(ks[5], (4 * H, H), H),
        bih0=u(ks[6], (4 * H,), H),          bhh0=u(ks[7], (4 * H,), H),
        wih1=u(ks[8], (4 * H, H), H),        whh1=u(ks[9], (4 * H, H), H),
        bih1=u(ks[10], (4 * H,), H),         bhh1=u(ks[11], (4 * H,), H),
        cls_w=u(ks[12], (C, H), H),          cls_b=u(ks[13], (C,), H),
        h0=jax.random.uniform(ks[14], (NUM_LAYERS, 1, H), jnp.float32),  # torch.rand
        c0=jax.random.uniform(ks[15], (NUM_LAYERS, 1, H), jnp.float32),
    )


def model7_reference(x, p):
    """Pure-JAX mirror of Model7.forward: explicit conv1d + linear_pool + 2-layer LSTM."""
    B, T, L = x.shape
    F = p["conv_w"].shape[0]
    K = p["conv_w"].shape[2]
    H = HIDDEN_SIZE
    conv_out = L - K + 1

    xf = x.reshape(B * T, L)
    cw = p["conv_w"].reshape(F, K)
    windows = jnp.stack([xf[:, j:j + K] for j in range(conv_out)], axis=1)   # (N, co, K)
    conv = jnp.einsum("njk,fk->nfj", windows, cw) + p["conv_b"][None, :, None]
    pooled = conv @ p["pool_w"].reshape(-1) + p["pool_b"][0]                 # (N, F)
    pooled = pooled.reshape(B, T, F)

    def lstm_layer(inp, wih, whh, bih, bhh, h0, c0):
        h = jnp.broadcast_to(h0, (B, H))
        c = jnp.broadcast_to(c0, (B, H))
        outs = []
        for t in range(inp.shape[1]):
            gates = inp[:, t, :] @ wih.T + bih + h @ whh.T + bhh
            i = jax.nn.sigmoid(gates[:, :H])
            f = jax.nn.sigmoid(gates[:, H:2 * H])
            g = jnp.tanh(gates[:, 2 * H:3 * H])
            o = jax.nn.sigmoid(gates[:, 3 * H:])
            c = f * c + i * g
            h = o * jnp.tanh(c)
            outs.append(h)
        return jnp.stack(outs, axis=1)                                       # (B, T, H)

    l0 = lstm_layer(pooled, p["wih0"], p["whh0"], p["bih0"], p["bhh0"],
                    p["h0"][0], p["c0"][0])
    l1 = lstm_layer(l0, p["wih1"], p["whh1"], p["bih1"], p["bhh1"],
                    p["h0"][1], p["c0"][1])
    return l1 @ p["cls_w"].T + p["cls_b"]


if __name__ == "__main__":
    key = jax.random.PRNGKey(0)
    pkey, xkey = jax.random.split(key)
    params = init_params(pkey)

    B, T = 2, 8
    x = jax.random.normal(xkey, (B, T, INPUT_SIZE), jnp.float32)

    out = model7_forward(x, params)
    out = jax.block_until_ready(out)

    ref = model7_reference(x, params)
    assert out.shape == (B, T, OUTPUT_SIZE), out.shape
    np.testing.assert_allclose(np.asarray(out), np.asarray(ref), rtol=1e-4, atol=1e-4)

    print("KERNEL_OK")
</pallas_src>

<mosaic_0001>
module attributes {stable_mosaic.version = 11 : i64} {
  func.func @model7_kernel(%arg0: memref<64x32xf32, #tpu.memory_space<vmem>>, %arg1: memref<32x512xf32, #tpu.memory_space<vmem>>, %arg2: memref<1x512xf32, #tpu.memory_space<vmem>>, %arg3: memref<128x512xf32, #tpu.memory_space<vmem>>, %arg4: memref<256x512xf32, #tpu.memory_space<vmem>>, %arg5: memref<1x512xf32, #tpu.memory_space<vmem>>, %arg6: memref<1x128xf32, #tpu.memory_space<vmem>>, %arg7: memref<1x128xf32, #tpu.memory_space<vmem>>, %arg8: memref<1x128xf32, #tpu.memory_space<vmem>>, %arg9: memref<1x128xf32, #tpu.memory_space<vmem>>, %arg10: memref<128x128xf32, #tpu.memory_space<vmem>>, %arg11: memref<1x128xf32, #tpu.memory_space<vmem>>, %arg12: memref<64x128xf32, #tpu.memory_space<vmem>>, %arg13: memref<64x128xf32, #tpu.memory_space<vmem>>) attributes {dimension_semantics = [], scalar_prefetch = 0 : i64, scratch_operands = 1 : i64, tpu.core_type = #tpu.core_type<tc>} {
    %c0 = arith.constant 0 : index
    %c0_0 = arith.constant 0 : index
    %0 = vector.load %arg0[%c0, %c0_0] : memref<64x32xf32, #tpu.memory_space<vmem>>, vector<64x32xf32>
    %c0_1 = arith.constant 0 : index
    %c0_2 = arith.constant 0 : index
    %1 = vector.load %arg1[%c0_1, %c0_2] : memref<32x512xf32, #tpu.memory_space<vmem>>, vector<32x512xf32>
    %cst = arith.constant dense<0.000000e+00> : vector<64x512xf32>
    %2 = tpu.matmul %0, %1, %cst {dimension_numbers = #tpu.dot_dimension_numbers<[1], [0], [0], [1], [0, 0, 1, 1], [], []>} : vector<64x32xf32>, vector<32x512xf32>, vector<64x512xf32> -> vector<64x512xf32>
    %c0_3 = arith.constant 0 : index
    %c0_4 = arith.constant 0 : index
    %3 = vector.load %arg2[%c0_3, %c0_4] : memref<1x512xf32, #tpu.memory_space<vmem>>, vector<1x512xf32>
    %4 = vector.broadcast %3 : vector<1x512xf32> to vector<64x512xf32>
    %5 = arith.addf %2, %4 : vector<64x512xf32>
    %c0_5 = arith.constant 0 : index
    %c0_6 = arith.constant 0 : index
    %6 = vector.load %arg3[%c0_5, %c0_6] : memref<128x512xf32, #tpu.memory_space<vmem>>, vector<128x512xf32>
    %c0_7 = arith.constant 0 : index
    %c0_8 = arith.constant 0 : index
    %7 = vector.load %arg4[%c0_7, %c0_8] : memref<256x512xf32, #tpu.memory_space<vmem>>, vector<256x512xf32>
    %c0_9 = arith.constant 0 : index
    %c0_10 = arith.constant 0 : index
    %8 = vector.load %arg5[%c0_9, %c0_10] : memref<1x512xf32, #tpu.memory_space<vmem>>, vector<1x512xf32>
    %c0_11 = arith.constant 0 : index
    %c0_12 = arith.constant 0 : index
    %9 = vector.load %arg6[%c0_11, %c0_12] : memref<1x128xf32, #tpu.memory_space<vmem>>, vector<1x128xf32>
    %10 = vector.shape_cast %9 : vector<1x128xf32> to vector<1x128xf32>
    %11 = vector.broadcast %10 : vector<1x128xf32> to vector<8x128xf32>
    %c0_13 = arith.constant 0 : index
    %c0_14 = arith.constant 0 : index
    %12 = vector.load %arg7[%c0_13, %c0_14] : memref<1x128xf32, #tpu.memory_space<vmem>>, vector<1x128xf32>
    %13 = vector.shape_cast %12 : vector<1x128xf32> to vector<1x128xf32>
    %14 = vector.broadcast %13 : vector<1x128xf32> to vector<8x128xf32>
    %c0_15 = arith.constant 0 : index
    %c0_16 = arith.constant 0 : index
    %15 = vector.load %arg8[%c0_15, %c0_16] : memref<1x128xf32, #tpu.memory_space<vmem>>, vector<1x128xf32>
    %16 = vector.shape_cast %15 : vector<1x128xf32> to vector<1x128xf32>
    %17 = vector.broadcast %16 : vector<1x128xf32> to vector<8x128xf32>
    %c0_17 = arith.constant 0 : index
    %c0_18 = arith.constant 0 : index
    %18 = vector.load %arg9[%c0_17, %c0_18] : memref<1x128xf32, #tpu.memory_space<vmem>>, vector<1x128xf32>
    %19 = vector.shape_cast %18 : vector<1x128xf32> to vector<1x128xf32>
    %20 = vector.broadcast %19 : vector<1x128xf32> to vector<8x128xf32>
    %21 = vector.extract_strided_slice %5 {offsets = [0, 0], sizes = [8, 512], strides = [1, 1]} : vector<64x512xf32> to vector<8x512xf32>
    %cst_19 = arith.constant dense<0.000000e+00> : vector<8x512xf32>
    %22 = tpu.matmul %11, %6, %cst_19 {dimension_numbers = #tpu.dot_dimension_numbers<[1], [0], [0], [1], [0, 0, 1, 1], [], []>} : vector<8x128xf32>, vector<128x512xf32>, vector<8x512xf32> -> vector<8x512xf32>
    %23 = arith.addf %21, %22 : vector<8x512xf32>
    %24 = vector.extract_strided_slice %23 {offsets = [0, 0], sizes = [8, 128], strides = [1, 1]} : vector<8x512xf32> to vector<8x128xf32>
    %25 = arith.negf %24 : vector<8x128xf32>
    %26 = math.exp %25 : vector<8x128xf32>
    %cst_20 = arith.constant 1.000000e+00 : f32
    %27 = vector.broadcast %cst_20 : f32 to vector<8x128xf32>
    %28 = arith.addf %27, %26 : vector<8x128xf32>
    %29 = arith.divf %27, %28 : vector<8x128xf32>
    %30 = vector.extract_strided_slice %23 {offsets = [0, 128], sizes = [8, 128], strides = [1, 1]} : vector<8x512xf32> to vector<8x128xf32>
    %31 = arith.negf %30 : vector<8x128xf32>
    %32 = math.exp %31 : vector<8x128xf32>
    %cst_21 = arith.constant 1.000000e+00 : f32
    %33 = vector.broadcast %cst_21 : f32 to vector<8x128xf32>
    %34 = arith.addf %33, %32 : vector<8x128xf32>
    %35 = arith.divf %33, %34 : vector<8x128xf32>
    %36 = vector.extract_strided_slice %23 {offsets = [0, 256], sizes = [8, 128], strides = [1, 1]} : vector<8x512xf32> to vector<8x128xf32>
    %37 = math.tanh %36 : vector<8x128xf32>
    %38 = vector.extract_strided_slice %23 {offsets = [0, 384], sizes = [8, 128], strides = [1, 1]} : vector<8x512xf32> to vector<8x128xf32>
    %39 = arith.negf %38 : vector<8x128xf32>
    %40 = math.exp %39 : vector<8x128xf32>
    %cst_22 = arith.constant 1.000000e+00 : f32
    %41 = vector.broadcast %cst_22 : f32 to vector<8x128xf32>
    %42 = arith.addf %41, %40 : vector<8x128xf32>
    %43 = arith.divf %41, %42 : vector<8x128xf32>
    %44 = arith.mulf %35, %14 : vector<8x128xf32>
    %45 = arith.mulf %29, %37 : vector<8x128xf32>
    %46 = arith.addf %44, %45 : vector<8x128xf32>
    %47 = math.tanh %46 : vector<8x128xf32>
    %48 = arith.mulf %43, %47 : vector<8x128xf32>
    %49 = vector.extract_strided_slice %5 {offsets = [8, 0], sizes = [8, 512], strides = [1, 1]} : vector<64x512xf32> to vector<8x512xf32>
    %cst_23 = arith.constant dense<0.000000e+00> : vector<8x512xf32>
    %50 = tpu.matmul %48, %6, %cst_23 {dimension_numbers = #tpu.dot_dimension_numbers<[1], [0], [0], [1], [0, 0, 1, 1], [], []>} : vector<8x128xf32>, vector<128x512xf32>, vector<8x512xf32> -> vector<8x512xf32>
    %51 = arith.addf %49, %50 : vector<8x512xf32>
    %52 = tpu.concatenate %48, %17 in 1 : vector<8x128xf32>, vector<8x128xf32> -> vector<8x256xf32>
    %cst_24 = arith.constant dense<0.000000e+00> : vector<8x512xf32>
    %53 = tpu.matmul %52, %7, %cst_24 {dimension_numbers = #tpu.dot_dimension_numbers<[1], [0], [0], [1], [0, 0, 1, 1], [], []>} : vector<8x256xf32>, vector<256x512xf32>, vector<8x512xf32> -> vector<8x512xf32>
    %54 = vector.broadcast %8 : vector<1x512xf32> to vector<8x512xf32>
    %55 = arith.addf %53, %54 : vector<8x512xf32>
    %56 = vector.extract_strided_slice %51 {offsets = [0, 0], sizes = [8, 128], strides = [1, 1]} : vector<8x512xf32> to vector<8x128xf32>
    %57 = arith.negf %56 : vector<8x128xf32>
    %58 = math.exp %57 : vector<8x128xf32>
    %cst_25 = arith.constant 1.000000e+00 : f32
    %59 = vector.broadcast %cst_25 : f32 to vector<8x128xf32>
    %60 = arith.addf %59, %58 : vector<8x128xf32>
    %61 = arith.divf %59, %60 : vector<8x128xf32>
    %62 = vector.extract_strided_slice %51 {offsets = [0, 128], sizes = [8, 128], strides = [1, 1]} : vector<8x512xf32> to vector<8x128xf32>
    %63 = arith.negf %62 : vector<8x128xf32>
    %64 = math.exp %63 : vector<8x128xf32>
    %cst_26 = arith.constant 1.000000e+00 : f32
    %65 = vector.broadcast %cst_26 : f32 to vector<8x128xf32>
    %66 = arith.addf %65, %64 : vector<8x128xf32>
    %67 = arith.divf %65, %66 : vector<8x128xf32>
    %68 = vector.extract_strided_slice %51 {offsets = [0, 256], sizes = [8, 128], strides = [1, 1]} : vector<8x512xf32> to vector<8x128xf32>
    %69 = math.tanh %68 : vector<8x128xf32>
    %70 = vector.extract_strided_slice %51 {offsets = [0, 384], sizes = [8, 128], strides = [1, 1]} : vector<8x512xf32> to vector<8x128xf32>
    %71 = arith.negf %70 : vector<8x128xf32>
    %72 = math.exp %71 : vector<8x128xf32>
    %cst_27 = arith.constant 1.000000e+00 : f32
    %73 = vector.broadcast %cst_27 : f32 to vector<8x128xf32>
    %74 = arith.addf %73, %72 : vector<8x128xf32>
    %75 = arith.divf %73, %74 : vector<8x128xf32>
    %76 = arith.mulf %67, %46 : vector<8x128xf32>
    %77 = arith.mulf %61, %69 : vector<8x128xf32>
    %78 = arith.addf %76, %77 : vector<8x128xf32>
    %79 = math.tanh %78 : vector<8x128xf32>
    %80 = arith.mulf %75, %79 : vector<8x128xf32>
    %81 = vector.extract_strided_slice %55 {offsets = [0, 0], sizes = [8, 128], strides = [1, 1]} : vector<8x512xf32> to vector<8x128xf32>
    %82 = arith.negf %81 : vector<8x128xf32>
    %83 = math.exp %82 : vector<8x128xf32>
    %cst_28 = arith.constant 1.000000e+00 : f32
    %84 = vector.broadcast %cst_28 : f32 to vector<8x128xf32>
    %85 = arith.addf %84, %83 : vector<8x128xf32>
    %86 = arith.divf %84, %85 : vector<8x128xf32>
    %87 = vector.extract_strided_slice %55 {offsets = [0, 128], sizes = [8, 128], strides = [1, 1]} : vector<8x512xf32> to vector<8x128xf32>
    %88 = arith.negf %87 : vector<8x128xf32>
    %89 = math.exp %88 : vector<8x128xf32>
    %cst_29 = arith.constant 1.000000e+00 : f32
    %90 = vector.broadcast %cst_29 : f32 to vector<8x128xf32>
    %91 = arith.addf %90, %89 : vector<8x128xf32>
    %92 = arith.divf %90, %91 : vector<8x128xf32>
    %93 = vector.extract_strided_slice %55 {offsets = [0, 256], sizes = [8, 128], strides = [1, 1]} : vector<8x512xf32> to vector<8x128xf32>
    %94 = math.tanh %93 : vector<8x128xf32>
    %95 = vector.extract_strided_slice %55 {offsets = [0, 384], sizes = [8, 128], strides = [1, 1]} : vector<8x512xf32> to vector<8x128xf32>
    %96 = arith.negf %95 : vector<8x128xf32>
    %97 = math.exp %96 : vector<8x128xf32>
    %cst_30 = arith.constant 1.000000e+00 : f32
    %98 = vector.broadcast %cst_30 : f32 to vector<8x128xf32>
    %99 = arith.addf %98, %97 : vector<8x128xf32>
    %100 = arith.divf %98, %99 : vector<8x128xf32>
    %101 = arith.mulf %92, %20 : vector<8x128xf32>
    %102 = arith.mulf %86, %94 : vector<8x128xf32>
    %103 = arith.addf %101, %102 : vector<8x128xf32>
    %104 = math.tanh %103 : vector<8x128xf32>
    %105 = arith.mulf %100, %104 : vector<8x128xf32>
    %c0_31 = arith.constant 0 : index
    %c0_32 = arith.constant 0 : index
    %106 = vector.load %arg13[%c0_31, %c0_32] : memref<64x128xf32, #tpu.memory_space<vmem>>, vector<8x128xf32>
    tpu.vector_store %arg13[%c0_31, %c0_32], %105 {strides = array<i32>} : memref<64x128xf32, #tpu.memory_space<vmem>>, vector<8x128xf32>,
    %107 = vector.extract_strided_slice %5 {offsets = [16, 0], sizes = [8, 512], strides = [1, 1]} : vector<64x512xf32> to vector<8x512xf32>
    %cst_33 = arith.constant dense<0.000000e+00> : vector<8x512xf32>
    %108 = tpu.matmul %80, %6, %cst_33 {dimension_numbers = #tpu.dot_dimension_numbers<[1], [0], [0], [1], [0, 0, 1, 1], [], []>} : vector<8x128xf32>, vector<128x512xf32>, vector<8x512xf32> -> vector<8x512xf32>
    %109 = arith.addf %107, %108 : vector<8x512xf32>
    %110 = tpu.concatenate %80, %105 in 1 : vector<8x128xf32>, vector<8x128xf32> -> vector<8x256xf32>
    %cst_34 = arith.constant dense<0.000000e+00> : vector<8x512xf32>
    %111 = tpu.matmul %110, %7, %cst_34 {dimension_numbers = #tpu.dot_dimension_numbers<[1], [0], [0], [1], [0, 0, 1, 1], [], []>} : vector<8x256xf32>, vector<256x512xf32>, vector<8x512xf32> -> vector<8x512xf32>
    %112 = vector.broadcast %8 : vector<1x512xf32> to vector<8x512xf32>
    %113 = arith.addf %111, %112 : vector<8x512xf32>
    %114 = vector.extract_strided_slice %109 {offsets = [0, 0], sizes = [8, 128], strides = [1, 1]} : vector<8x512xf32> to vector<8x128xf32>
    %115 = arith.negf %114 : vector<8x128xf32>
    %116 = math.exp %115 : vector<8x128xf32>
    %cst_35 = arith.constant 1.000000e+00 : f32
    %117 = vector.broadcast %cst_35 : f32 to vector<8x128xf32>
    %118 = arith.addf %117, %116 : vector<8x128xf32>
    %119 = arith.divf %117, %118 : vector<8x128xf32>
    %120 = vector.extract_strided_slice %109 {offsets = [0, 128], sizes = [8, 128], strides = [1, 1]} : vector<8x512xf32> to vector<8x128xf32>
    %121 = arith.negf %120 : vector<8x128xf32>
    %122 = math.exp %121 : vector<8x128xf32>
    %cst_36 = arith.constant 1.000000e+00 : f32
    %123 = vector.broadcast %cst_36 : f32 to vector<8x128xf32>
    %124 = arith.addf %123, %122 : vector<8x128xf32>
    %125 = arith.divf %123, %124 : vector<8x128xf32>
    %126 = vector.extract_strided_slice %109 {offsets = [0, 256], sizes = [8, 128], strides = [1, 1]} : vector<8x512xf32> to vector<8x128xf32>
    %127 = math.tanh %126 : vector<8x128xf32>
    %128 = vector.extract_strided_slice %109 {offsets = [0, 384], sizes = [8, 128], strides = [1, 1]} : vector<8x512xf32> to vector<8x128xf32>
    %129 = arith.negf %128 : vector<8x128xf32>
    %130 = math.exp %129 : vector<8x128xf32>
    %cst_37 = arith.constant 1.000000e+00 : f32
    %131 = vector.broadcast %cst_37 : f32 to vector<8x128xf32>
    %132 = arith.addf %131, %130 : vector<8x128xf32>
    %133 = arith.divf %131, %132 : vector<8x128xf32>
    %134 = arith.mulf %125, %78 : vector<8x128xf32>
    %135 = arith.mulf %119, %127 : vector<8x128xf32>
    %136 = arith.addf %134, %135 : vector<8x128xf32>
    %137 = math.tanh %136 : vector<8x128xf32>
    %138 = arith.mulf %133, %137 : vector<8x128xf32>
    %139 = vector.extract_strided_slice %113 {offsets = [0, 0], sizes = [8, 128], strides = [1, 1]} : vector<8x512xf32> to vector<8x128xf32>
    %140 = arith.negf %139 : vector<8x128xf32>
    %141 = math.exp %140 : vector<8x128xf32>
    %cst_38 = arith.constant 1.000000e+00 : f32
    %142 = vector.broadcast %cst_38 : f32 to vector<8x128xf32>
    %143 = arith.addf %142, %141 : vector<8x128xf32>
    %144 = arith.divf %142, %143 : vector<8x128xf32>
    %145 = vector.extract_strided_slice %113 {offsets = [0, 128], sizes = [8, 128], strides = [1, 1]} : vector<8x512xf32> to vector<8x128xf32>
    %146 = arith.negf %145 : vector<8x128xf32>
    %147 = math.exp %146 : vector<8x128xf32>
    %cst_39 = arith.constant 1.000000e+00 : f32
    %148 = vector.broadcast %cst_39 : f32 to vector<8x128xf32>
    %149 = arith.addf %148, %147 : vector<8x128xf32>
    %150 = arith.divf %148, %149 : vector<8x128xf32>
    %151 = vector.extract_strided_slice %113 {offsets = [0, 256], sizes = [8, 128], strides = [1, 1]} : vector<8x512xf32> to vector<8x128xf32>
    %152 = math.tanh %151 : vector<8x128xf32>
    %153 = vector.extract_strided_slice %113 {offsets = [0, 384], sizes = [8, 128], strides = [1, 1]} : vector<8x512xf32> to vector<8x128xf32>
    %154 = arith.negf %153 : vector<8x128xf32>
    %155 = math.exp %154 : vector<8x128xf32>
    %cst_40 = arith.constant 1.000000e+00 : f32
    %156 = vector.broadcast %cst_40 : f32 to vector<8x128xf32>
    %157 = arith.addf %156, %155 : vector<8x128xf32>
    %158 = arith.divf %156, %157 : vector<8x128xf32>
    %159 = arith.mulf %150, %103 : vector<8x128xf32>
    %160 = arith.mulf %144, %152 : vector<8x128xf32>
    %161 = arith.addf %159, %160 : vector<8x128xf32>
    %162 = math.tanh %161 : vector<8x128xf32>
    %163 = arith.mulf %158, %162 : vector<8x128xf32>
    %c8 = arith.constant 8 : index
    %c0_41 = arith.constant 0 : index
    %164 = vector.load %arg13[%c8, %c0_41] : memref<64x128xf32, #tpu.memory_space<vmem>>, vector<8x128xf32>
    tpu.vector_store %arg13[%c8, %c0_41], %163 {strides = array<i32>} : memref<64x128xf32, #tpu.memory_space<vmem>>, vector<8x128xf32>,
    %165 = vector.extract_strided_slice %5 {offsets = [24, 0], sizes = [8, 512], strides = [1, 1]} : vector<64x512xf32> to vector<8x512xf32>
    %cst_42 = arith.constant dense<0.000000e+00> : vector<8x512xf32>
    %166 = tpu.matmul %138, %6, %cst_42 {dimension_numbers = #tpu.dot_dimension_numbers<[1], [0], [0], [1], [0, 0, 1, 1], [], []>} : vector<8x128xf32>, vector<128x512xf32>, vector<8x512xf32> -> vector<8x512xf32>
    %167 = arith.addf %165, %166 : vector<8x512xf32>
    %168 = tpu.concatenate %138, %163 in 1 : vector<8x128xf32>, vector<8x128xf32> -> vector<8x256xf32>
    %cst_43 = arith.constant dense<0.000000e+00> : vector<8x512xf32>
    %169 = tpu.matmul %168, %7, %cst_43 {dimension_numbers = #tpu.dot_dimension_numbers<[1], [0], [0], [1], [0, 0, 1, 1], [], []>} : vector<8x256xf32>, vector<256x512xf32>, vector<8x512xf32> -> vector<8x512xf32>
    %170 = vector.broadcast %8 : vector<1x512xf32> to vector<8x512xf32>
    %171 = arith.addf %169, %170 : vector<8x512xf32>
    %172 = vector.extract_strided_slice %167 {offsets = [0, 0], sizes = [8, 128], strides = [1, 1]} : vector<8x512xf32> to vector<8x128xf32>
    %173 = arith.negf %172 : vector<8x128xf32>
    %174 = math.exp %173 : vector<8x128xf32>
    %cst_44 = arith.constant 1.000000e+00 : f32
    %175 = vector.broadcast %cst_44 : f32 to vector<8x128xf32>
    %176 = arith.addf %175, %174 : vector<8x128xf32>
    %177 = arith.divf %175, %176 : vector<8x128xf32>
    %178 = vector.extract_strided_slice %167 {offsets = [0, 128], sizes = [8, 128], strides = [1, 1]} : vector<8x512xf32> to vector<8x128xf32>
    %179 = arith.negf %178 : vector<8x128xf32>
    %180 = math.exp %179 : vector<8x128xf32>
    %cst_45 = arith.constant 1.000000e+00 : f32
    %181 = vector.broadcast %cst_45 : f32 to vector<8x128xf32>
    %182 = arith.addf %181, %180 : vector<8x128xf32>
    %183 = arith.divf %181, %182 : vector<8x128xf32>
    %184 = vector.extract_strided_slice %167 {offsets = [0, 256], sizes = [8, 128], strides = [1, 1]} : vector<8x512xf32> to vector<8x128xf32>
    %185 = math.tanh %184 : vector<8x128xf32>
    %186 = vector.extract_strided_slice %167 {offsets = [0, 384], sizes = [8, 128], strides = [1, 1]} : vector<8x512xf32> to vector<8x128xf32>
    %187 = arith.negf %186 : vector<8x128xf32>
    %188 = math.exp %187 : vector<8x128xf32>
    %cst_46 = arith.constant 1.000000e+00 : f32
    %189 = vector.broadcast %cst_46 : f32 to vector<8x128xf32>
    %190 = arith.addf %189, %188 : vector<8x128xf32>
    %191 = arith.divf %189, %190 : vector<8x128xf32>
    %192 = arith.mulf %183, %136 : vector<8x128xf32>
    %193 = arith.mulf %177, %185 : vector<8x128xf32>
    %194 = arith.addf %192, %193 : vector<8x128xf32>
    %195 = math.tanh %194 : vector<8x128xf32>
    %196 = arith.mulf %191, %195 : vector<8x128xf32>
    %197 = vector.extract_strided_slice %171 {offsets = [0, 0], sizes = [8, 128], strides = [1, 1]} : vector<8x512xf32> to vector<8x128xf32>
    %198 = arith.negf %197 : vector<8x128xf32>
    %199 = math.exp %198 : vector<8x128xf32>
    %cst_47 = arith.constant 1.000000e+00 : f32
    %200 = vector.broadcast %cst_47 : f32 to vector<8x128xf32>
    %201 = arith.addf %200, %199 : vector<8x128xf32>
    %202 = arith.divf %200, %201 : vector<8x128xf32>
    %203 = vector.extract_strided_slice %171 {offsets = [0, 128], sizes = [8, 128], strides = [1, 1]} : vector<8x512xf32> to vector<8x128xf32>
    %204 = arith.negf %203 : vector<8x128xf32>
    %205 = math.exp %204 : vector<8x128xf32>
    %cst_48 = arith.constant 1.000000e+00 : f32
    %206 = vector.broadcast %cst_48 : f32 to vector<8x128xf32>
    %207 = arith.addf %206, %205 : vector<8x128xf32>
    %208 = arith.divf %206, %207 : vector<8x128xf32>
    %209 = vector.extract_strided_slice %171 {offsets = [0, 256], sizes = [8, 128], strides = [1, 1]} : vector<8x512xf32> to vector<8x128xf32>
    %210 = math.tanh %209 : vector<8x128xf32>
    %211 = vector.extract_strided_slice %171 {offsets = [0, 384], sizes = [8, 128], strides = [1, 1]} : vector<8x512xf32> to vector<8x128xf32>
    %212 = arith.negf %211 : vector<8x128xf32>
    %213 = math.exp %212 : vector<8x128xf32>
    %cst_49 = arith.constant 1.000000e+00 : f32
    %214 = vector.broadcast %cst_49 : f32 to vector<8x128xf32>
    %215 = arith.addf %214, %213 : vector<8x128xf32>
    %216 = arith.divf %214, %215 : vector<8x128xf32>
    %217 = arith.mulf %208, %161 : vector<8x128xf32>
    %218 = arith.mulf %202, %210 : vector<8x128xf32>
    %219 = arith.addf %217, %218 : vector<8x128xf32>
    %220 = math.tanh %219 : vector<8x128xf32>
    %221 = arith.mulf %216, %220 : vector<8x128xf32>
    %c16 = arith.constant 16 : index
    %c0_50 = arith.constant 0 : index
    %222 = vector.load %arg13[%c16, %c0_50] : memref<64x128xf32, #tpu.memory_space<vmem>>, vector<8x128xf32>
    tpu.vector_store %arg13[%c16, %c0_50], %221 {strides = array<i32>} : memref<64x128xf32, #tpu.memory_space<vmem>>, vector<8x128xf32>,
    %223 = vector.extract_strided_slice %5 {offsets = [32, 0], sizes = [8, 512], strides = [1, 1]} : vector<64x512xf32> to vector<8x512xf32>
    %cst_51 = arith.constant dense<0.000000e+00> : vector<8x512xf32>
    %224 = tpu.matmul %196, %6, %cst_51 {dimension_numbers = #tpu.dot_dimension_numbers<[1], [0], [0], [1], [0, 0, 1, 1], [], []>} : vector<8x128xf32>, vector<128x512xf32>, vector<8x512xf32> -> vector<8x512xf32>
    %225 = arith.addf %223, %224 : vector<8x512xf32>
    %226 = tpu.concatenate %196, %221 in 1 : vector<8x128xf32>, vector<8x128xf32> -> vector<8x256xf32>
    %cst_52 = arith.constant dense<0.000000e+00> : vector<8x512xf32>
    %227 = tpu.matmul %226, %7, %cst_52 {dimension_numbers = #tpu.dot_dimension_numbers<[1], [0], [0], [1], [0, 0, 1, 1], [], []>} : vector<8x256xf32>, vector<256x512xf32>, vector<8x512xf32> -> vector<8x512xf32>
    %228 = vector.broadcast %8 : vector<1x512xf32> to vector<8x512xf32>
    %229 = arith.addf %227, %228 : vector<8x512xf32>
    %230 = vector.extract_strided_slice %225 {offsets = [0, 0], sizes = [8, 128], strides = [1, 1]} : vector<8x512xf32> to vector<8x128xf32>
    %231 = arith.negf %230 : vector<8x128xf32>
    %232 = math.exp %231 : vector<8x128xf32>
    %cst_53 = arith.constant 1.000000e+00 : f32
    %233 = vector.broadcast %cst_53 : f32 to vector<8x128xf32>
    %234 = arith.addf %233, %232 : vector<8x128xf32>
    %235 = arith.divf %233, %234 : vector<8x128xf32>
    %236 = vector.extract_strided_slice %225 {offsets = [0, 128], sizes = [8, 128], strides = [1, 1]} : vector<8x512xf32> to vector<8x128xf32>
    %237 = arith.negf %236 : vector<8x128xf32>
    %238 = math.exp %237 : vector<8x128xf32>
    %cst_54 = arith.constant 1.000000e+00 : f32
    %239 = vector.broadcast %cst_54 : f32 to vector<8x128xf32>
    %240 = arith.addf %239, %238 : vector<8x128xf32>
    %241 = arith.divf %239, %240 : vector<8x128xf32>
    %242 = vector.extract_strided_slice %225 {offsets = [0, 256], sizes = [8, 128], strides = [1, 1]} : vector<8x512xf32> to vector<8x128xf32>
    %243 = math.tanh %242 : vector<8x128xf32>
    %244 = vector.extract_strided_slice %225 {offsets = [0, 384], sizes = [8, 128], strides = [1, 1]} : vector<8x512xf32> to vector<8x128xf32>
    %245 = arith.negf %244 : vector<8x128xf32>
    %246 = math.exp %245 : vector<8x128xf32>
    %cst_55 = arith.constant 1.000000e+00 : f32
    %247 = vector.broadcast %cst_55 : f32 to vector<8x128xf32>
    %248 = arith.addf %247, %246 : vector<8x128xf32>
    %249 = arith.divf %247, %248 : vector<8x128xf32>
    %250 = arith.mulf %241, %194 : vector<8x128xf32>
    %251 = arith.mulf %235, %243 : vector<8x128xf32>
    %252 = arith.addf %250, %251 : vector<8x128xf32>
    %253 = math.tanh %252 : vector<8x128xf32>
    %254 = arith.mulf %249, %253 : vector<8x128xf32>
    %255 = vector.extract_strided_slice %229 {offsets = [0, 0], sizes = [8, 128], strides = [1, 1]} : vector<8x512xf32> to vector<8x128xf32>
    %256 = arith.negf %255 : vector<8x128xf32>
    %257 = math.exp %256 : vector<8x128xf32>
    %cst_56 = arith.constant 1.000000e+00 : f32
    %258 = vector.broadcast %cst_56 : f32 to vector<8x128xf32>
    %259 = arith.addf %258, %257 : vector<8x128xf32>
    %260 = arith.divf %258, %259 : vector<8x128xf32>
    %261 = vector.extract_strided_slice %229 {offsets = [0, 128], sizes = [8, 128], strides = [1, 1]} : vector<8x512xf32> to vector<8x128xf32>
    %262 = arith.negf %261 : vector<8x128xf32>
    %263 = math.exp %262 : vector<8x128xf32>
    %cst_57 = arith.constant 1.000000e+00 : f32
    %264 = vector.broadcast %cst_57 : f32 to vector<8x128xf32>
    %265 = arith.addf %264, %263 : vector<8x128xf32>
    %266 = arith.divf %264, %265 : vector<8x128xf32>
    %267 = vector.extract_strided_slice %229 {offsets = [0, 256], sizes = [8, 128], strides = [1, 1]} : vector<8x512xf32> to vector<8x128xf32>
    %268 = math.tanh %267 : vector<8x128xf32>
    %269 = vector.extract_strided_slice %229 {offsets = [0, 384], sizes = [8, 128], strides = [1, 1]} : vector<8x512xf32> to vector<8x128xf32>
    %270 = arith.negf %269 : vector<8x128xf32>
    %271 = math.exp %270 : vector<8x128xf32>
    %cst_58 = arith.constant 1.000000e+00 : f32
    %272 = vector.broadcast %cst_58 : f32 to vector<8x128xf32>
    %273 = arith.addf %272, %271 : vector<8x128xf32>
    %274 = arith.divf %272, %273 : vector<8x128xf32>
    %275 = arith.mulf %266, %219 : vector<8x128xf32>
    %276 = arith.mulf %260, %268 : vector<8x128xf32>
    %277 = arith.addf %275, %276 : vector<8x128xf32>
    %278 = math.tanh %277 : vector<8x128xf32>
    %279 = arith.mulf %274, %278 : vector<8x128xf32>
    %c24 = arith.constant 24 : index
    %c0_59 = arith.constant 0 : index
    %280 = vector.load %arg13[%c24, %c0_59] : memref<64x128xf32, #tpu.memory_space<vmem>>, vector<8x128xf32>
    tpu.vector_store %arg13[%c24, %c0_59], %279 {strides = array<i32>} : memref<64x128xf32, #tpu.memory_space<vmem>>, vector<8x128xf32>,
    %281 = vector.extract_strided_slice %5 {offsets = [40, 0], sizes = [8, 512], strides = [1, 1]} : vector<64x512xf32> to vector<8x512xf32>
    %cst_60 = arith.constant dense<0.000000e+00> : vector<8x512xf32>
    %282 = tpu.matmul %254, %6, %cst_60 {dimension_numbers = #tpu.dot_dimension_numbers<[1], [0], [0], [1], [0, 0, 1, 1], [], []>} : vector<8x128xf32>, vector<128x512xf32>, vector<8x512xf32> -> vector<8x512xf32>
    %283 = arith.addf %281, %282 : vector<8x512xf32>
    %284 = tpu.concatenate %254, %279 in 1 : vector<8x128xf32>, vector<8x128xf32> -> vector<8x256xf32>
    %cst_61 = arith.constant dense<0.000000e+00> : vector<8x512xf32>
    %285 = tpu.matmul %284, %7, %cst_61 {dimension_numbers = #tpu.dot_dimension_numbers<[1], [0], [0], [1], [0, 0, 1, 1], [], []>} : vector<8x256xf32>, vector<256x512xf32>, vector<8x512xf32> -> vector<8x512xf32>
    %286 = vector.broadcast %8 : vector<1x512xf32> to vector<8x512xf32>
    %287 = arith.addf %285, %286 : vector<8x512xf32>
    %288 = vector.extract_strided_slice %283 {offsets = [0, 0], sizes = [8, 128], strides = [1, 1]} : vector<8x512xf32> to vector<8x128xf32>
    %289 = arith.negf %288 : vector<8x128xf32>
    %290 = math.exp %289 : vector<8x128xf32>
    %cst_62 = arith.constant 1.000000e+00 : f32
    %291 = vector.broadcast %cst_62 : f32 to vector<8x128xf32>
    %292 = arith.addf %291, %290 : vector<8x128xf32>
    %293 = arith.divf %291, %292 : vector<8x128xf32>
    %294 = vector.extract_strided_slice %283 {offsets = [0, 128], sizes = [8, 128], strides = [1, 1]} : vector<8x512xf32> to vector<8x128xf32>
    %295 = arith.negf %294 : vector<8x128xf32>
    %296 = math.exp %295 : vector<8x128xf32>
    %cst_63 = arith.constant 1.000000e+00 : f32
    %297 = vector.broadcast %cst_63 : f32 to vector<8x128xf32>
    %298 = arith.addf %297, %296 : vector<8x128xf32>
    %299 = arith.divf %297, %298 : vector<8x128xf32>
    %300 = vector.extract_strided_slice %283 {offsets = [0, 256], sizes = [8, 128], strides = [1, 1]} : vector<8x512xf32> to vector<8x128xf32>
    %301 = math.tanh %300 : vector<8x128xf32>
    %302 = vector.extract_strided_slice %283 {offsets = [0, 384], sizes = [8, 128], strides = [1, 1]} : vector<8x512xf32> to vector<8x128xf32>
    %303 = arith.negf %302 : vector<8x128xf32>
    %304 = math.exp %303 : vector<8x128xf32>
    %cst_64 = arith.constant 1.000000e+00 : f32
    %305 = vector.broadcast %cst_64 : f32 to vector<8x128xf32>
    %306 = arith.addf %305, %304 : vector<8x128xf32>
    %307 = arith.divf %305, %306 : vector<8x128xf32>
    %308 = arith.mulf %299, %252 : vector<8x128xf32>
    %309 = arith.mulf %293, %301 : vector<8x128xf32>
    %310 = arith.addf %308, %309 : vector<8x128xf32>
    %311 = math.tanh %310 : vector<8x128xf32>
    %312 = arith.mulf %307, %311 : vector<8x128xf32>
    %313 = vector.extract_strided_slice %287 {offsets = [0, 0], sizes = [8, 128], strides = [1, 1]} : vector<8x512xf32> to vector<8x128xf32>
    %314 = arith.negf %313 : vector<8x128xf32>
    %315 = math.exp %314 : vector<8x128xf32>
    %cst_65 = arith.constant 1.000000e+00 : f32
    %316 = vector.broadcast %cst_65 : f32 to vector<8x128xf32>
    %317 = arith.addf %316, %315 : vector<8x128xf32>
    %318 = arith.divf %316, %317 : vector<8x128xf32>
    %319 = vector.extract_strided_slice %287 {offsets = [0, 128], sizes = [8, 128], strides = [1, 1]} : vector<8x512xf32> to vector<8x128xf32>
    %320 = arith.negf %319 : vector<8x128xf32>
    %321 = math.exp %320 : vector<8x128xf32>
    %cst_66 = arith.constant 1.000000e+00 : f32
    %322 = vector.broadcast %cst_66 : f32 to vector<8x128xf32>
    %323 = arith.addf %322, %321 : vector<8x128xf32>
    %324 = arith.divf %322, %323 : vector<8x128xf32>
    %325 = vector.extract_strided_slice %287 {offsets = [0, 256], sizes = [8, 128], strides = [1, 1]} : vector<8x512xf32> to vector<8x128xf32>
    %326 = math.tanh %325 : vector<8x128xf32>
    %327 = vector.extract_strided_slice %287 {offsets = [0, 384], sizes = [8, 128], strides = [1, 1]} : vector<8x512xf32> to vector<8x128xf32>
    %328 = arith.negf %327 : vector<8x128xf32>
    %329 = math.exp %328 : vector<8x128xf32>
    %cst_67 = arith.constant 1.000000e+00 : f32
    %330 = vector.broadcast %cst_67 : f32 to vector<8x128xf32>
    %331 = arith.addf %330, %329 : vector<8x128xf32>
    %332 = arith.divf %330, %331 : vector<8x128xf32>
    %333 = arith.mulf %324, %277 : vector<8x128xf32>
    %334 = arith.mulf %318, %326 : vector<8x128xf32>
    %335 = arith.addf %333, %334 : vector<8x128xf32>
    %336 = math.tanh %335 : vector<8x128xf32>
    %337 = arith.mulf %332, %336 : vector<8x128xf32>
    %c32 = arith.constant 32 : index
    %c0_68 = arith.constant 0 : index
    %338 = vector.load %arg13[%c32, %c0_68] : memref<64x128xf32, #tpu.memory_space<vmem>>, vector<8x128xf32>
    tpu.vector_store %arg13[%c32, %c0_68], %337 {strides = array<i32>} : memref<64x128xf32, #tpu.memory_space<vmem>>, vector<8x128xf32>,
    %339 = vector.extract_strided_slice %5 {offsets = [48, 0], sizes = [8, 512], strides = [1, 1]} : vector<64x512xf32> to vector<8x512xf32>
    %cst_69 = arith.constant dense<0.000000e+00> : vector<8x512xf32>
    %340 = tpu.matmul %312, %6, %cst_69 {dimension_numbers = #tpu.dot_dimension_numbers<[1], [0], [0], [1], [0, 0, 1, 1], [], []>} : vector<8x128xf32>, vector<128x512xf32>, vector<8x512xf32> -> vector<8x512xf32>
    %341 = arith.addf %339, %340 : vector<8x512xf32>
    %342 = tpu.concatenate %312, %337 in 1 : vector<8x128xf32>, vector<8x128xf32> -> vector<8x256xf32>
    %cst_70 = arith.constant dense<0.000000e+00> : vector<8x512xf32>
    %343 = tpu.matmul %342, %7, %cst_70 {dimension_numbers = #tpu.dot_dimension_numbers<[1], [0], [0], [1], [0, 0, 1, 1], [], []>} : vector<8x256xf32>, vector<256x512xf32>, vector<8x512xf32> -> vector<8x512xf32>
    %344 = vector.broadcast %8 : vector<1x512xf32> to vector<8x512xf32>
    %345 = arith.addf %343, %344 : vector<8x512xf32>
    %346 = vector.extract_strided_slice %341 {offsets = [0, 0], sizes = [8, 128], strides = [1, 1]} : vector<8x512xf32> to vector<8x128xf32>
    %347 = arith.negf %346 : vector<8x128xf32>
    %348 = math.exp %347 : vector<8x128xf32>
    %cst_71 = arith.constant 1.000000e+00 : f32
    %349 = vector.broadcast %cst_71 : f32 to vector<8x128xf32>
    %350 = arith.addf %349, %348 : vector<8x128xf32>
    %351 = arith.divf %349, %350 : vector<8x128xf32>
    %352 = vector.extract_strided_slice %341 {offsets = [0, 128], sizes = [8, 128], strides = [1, 1]} : vector<8x512xf32> to vector<8x128xf32>
    %353 = arith.negf %352 : vector<8x128xf32>
    %354 = math.exp %353 : vector<8x128xf32>
    %cst_72 = arith.constant 1.000000e+00 : f32
    %355 = vector.broadcast %cst_72 : f32 to vector<8x128xf32>
    %356 = arith.addf %355, %354 : vector<8x128xf32>
    %357 = arith.divf %355, %356 : vector<8x128xf32>
    %358 = vector.extract_strided_slice %341 {offsets = [0, 256], sizes = [8, 128], strides = [1, 1]} : vector<8x512xf32> to vector<8x128xf32>
    %359 = math.tanh %358 : vector<8x128xf32>
    %360 = vector.extract_strided_slice %341 {offsets = [0, 384], sizes = [8, 128], strides = [1, 1]} : vector<8x512xf32> to vector<8x128xf32>
    %361 = arith.negf %360 : vector<8x128xf32>
    %362 = math.exp %361 : vector<8x128xf32>
    %cst_73 = arith.constant 1.000000e+00 : f32
    %363 = vector.broadcast %cst_73 : f32 to vector<8x128xf32>
    %364 = arith.addf %363, %362 : vector<8x128xf32>
    %365 = arith.divf %363, %364 : vector<8x128xf32>
    %366 = arith.mulf %357, %310 : vector<8x128xf32>
    %367 = arith.mulf %351, %359 : vector<8x128xf32>
    %368 = arith.addf %366, %367 : vector<8x128xf32>
    %369 = math.tanh %368 : vector<8x128xf32>
    %370 = arith.mulf %365, %369 : vector<8x128xf32>
    %371 = vector.extract_strided_slice %345 {offsets = [0, 0], sizes = [8, 128], strides = [1, 1]} : vector<8x512xf32> to vector<8x128xf32>
    %372 = arith.negf %371 : vector<8x128xf32>
    %373 = math.exp %372 : vector<8x128xf32>
    %cst_74 = arith.constant 1.000000e+00 : f32
    %374 = vector.broadcast %cst_74 : f32 to vector<8x128xf32>
    %375 = arith.addf %374, %373 : vector<8x128xf32>
    %376 = arith.divf %374, %375 : vector<8x128xf32>
    %377 = vector.extract_strided_slice %345 {offsets = [0, 128], sizes = [8, 128], strides = [1, 1]} : vector<8x512xf32> to vector<8x128xf32>
    %378 = arith.negf %377 : vector<8x128xf32>
    %379 = math.exp %378 : vector<8x128xf32>
    %cst_75 = arith.constant 1.000000e+00 : f32
    %380 = vector.broadcast %cst_75 : f32 to vector<8x128xf32>
    %381 = arith.addf %380, %379 : vector<8x128xf32>
    %382 = arith.divf %380, %381 : vector<8x128xf32>
    %383 = vector.extract_strided_slice %345 {offsets = [0, 256], sizes = [8, 128], strides = [1, 1]} : vector<8x512xf32> to vector<8x128xf32>
    %384 = math.tanh %383 : vector<8x128xf32>
    %385 = vector.extract_strided_slice %345 {offsets = [0, 384], sizes = [8, 128], strides = [1, 1]} : vector<8x512xf32> to vector<8x128xf32>
    %386 = arith.negf %385 : vector<8x128xf32>
    %387 = math.exp %386 : vector<8x128xf32>
    %cst_76 = arith.constant 1.000000e+00 : f32
    %388 = vector.broadcast %cst_76 : f32 to vector<8x128xf32>
    %389 = arith.addf %388, %387 : vector<8x128xf32>
    %390 = arith.divf %388, %389 : vector<8x128xf32>
    %391 = arith.mulf %382, %335 : vector<8x128xf32>
    %392 = arith.mulf %376, %384 : vector<8x128xf32>
    %393 = arith.addf %391, %392 : vector<8x128xf32>
    %394 = math.tanh %393 : vector<8x128xf32>
    %395 = arith.mulf %390, %394 : vector<8x128xf32>
    %c40 = arith.constant 40 : index
    %c0_77 = arith.constant 0 : index
    %396 = vector.load %arg13[%c40, %c0_77] : memref<64x128xf32, #tpu.memory_space<vmem>>, vector<8x128xf32>
    tpu.vector_store %arg13[%c40, %c0_77], %395 {strides = array<i32>} : memref<64x128xf32, #tpu.memory_space<vmem>>, vector<8x128xf32>,
    %397 = vector.extract_strided_slice %5 {offsets = [56, 0], sizes = [8, 512], strides = [1, 1]} : vector<64x512xf32> to vector<8x512xf32>
    %cst_78 = arith.constant dense<0.000000e+00> : vector<8x512xf32>
    %398 = tpu.matmul %370, %6, %cst_78 {dimension_numbers = #tpu.dot_dimension_numbers<[1], [0], [0], [1], [0, 0, 1, 1], [], []>} : vector<8x128xf32>, vector<128x512xf32>, vector<8x512xf32> -> vector<8x512xf32>
    %399 = arith.addf %397, %398 : vector<8x512xf32>
    %400 = tpu.concatenate %370, %395 in 1 : vector<8x128xf32>, vector<8x128xf32> -> vector<8x256xf32>
    %cst_79 = arith.constant dense<0.000000e+00> : vector<8x512xf32>
    %401 = tpu.matmul %400, %7, %cst_79 {dimension_numbers = #tpu.dot_dimension_numbers<[1], [0], [0], [1], [0, 0, 1, 1], [], []>} : vector<8x256xf32>, vector<256x512xf32>, vector<8x512xf32> -> vector<8x512xf32>
    %402 = vector.broadcast %8 : vector<1x512xf32> to vector<8x512xf32>
    %403 = arith.addf %401, %402 : vector<8x512xf32>
    %404 = vector.extract_strided_slice %399 {offsets = [0, 0], sizes = [8, 128], strides = [1, 1]} : vector<8x512xf32> to vector<8x128xf32>
    %405 = arith.negf %404 : vector<8x128xf32>
    %406 = math.exp %405 : vector<8x128xf32>
    %cst_80 = arith.constant 1.000000e+00 : f32
    %407 = vector.broadcast %cst_80 : f32 to vector<8x128xf32>
    %408 = arith.addf %407, %406 : vector<8x128xf32>
    %409 = arith.divf %407, %408 : vector<8x128xf32>
    %410 = vector.extract_strided_slice %399 {offsets = [0, 128], sizes = [8, 128], strides = [1, 1]} : vector<8x512xf32> to vector<8x128xf32>
    %411 = arith.negf %410 : vector<8x128xf32>
    %412 = math.exp %411 : vector<8x128xf32>
    %cst_81 = arith.constant 1.000000e+00 : f32
    %413 = vector.broadcast %cst_81 : f32 to vector<8x128xf32>
    %414 = arith.addf %413, %412 : vector<8x128xf32>
    %415 = arith.divf %413, %414 : vector<8x128xf32>
    %416 = vector.extract_strided_slice %399 {offsets = [0, 256], sizes = [8, 128], strides = [1, 1]} : vector<8x512xf32> to vector<8x128xf32>
    %417 = math.tanh %416 : vector<8x128xf32>
    %418 = vector.extract_strided_slice %399 {offsets = [0, 384], sizes = [8, 128], strides = [1, 1]} : vector<8x512xf32> to vector<8x128xf32>
    %419 = arith.negf %418 : vector<8x128xf32>
    %420 = math.exp %419 : vector<8x128xf32>
    %cst_82 = arith.constant 1.000000e+00 : f32
    %421 = vector.broadcast %cst_82 : f32 to vector<8x128xf32>
    %422 = arith.addf %421, %420 : vector<8x128xf32>
    %423 = arith.divf %421, %422 : vector<8x128xf32>
    %424 = arith.mulf %415, %368 : vector<8x128xf32>
    %425 = arith.mulf %409, %417 : vector<8x128xf32>
    %426 = arith.addf %424, %425 : vector<8x128xf32>
    %427 = math.tanh %426 : vector<8x128xf32>
    %428 = arith.mulf %423, %427 : vector<8x128xf32>
    %429 = vector.extract_strided_slice %403 {offsets = [0, 0], sizes = [8, 128], strides = [1, 1]} : vector<8x512xf32> to vector<8x128xf32>
    %430 = arith.negf %429 : vector<8x128xf32>
    %431 = math.exp %430 : vector<8x128xf32>
    %cst_83 = arith.constant 1.000000e+00 : f32
    %432 = vector.broadcast %cst_83 : f32 to vector<8x128xf32>
    %433 = arith.addf %432, %431 : vector<8x128xf32>
    %434 = arith.divf %432, %433 : vector<8x128xf32>
    %435 = vector.extract_strided_slice %403 {offsets = [0, 128], sizes = [8, 128], strides = [1, 1]} : vector<8x512xf32> to vector<8x128xf32>
    %436 = arith.negf %435 : vector<8x128xf32>
    %437 = math.exp %436 : vector<8x128xf32>
    %cst_84 = arith.constant 1.000000e+00 : f32
    %438 = vector.broadcast %cst_84 : f32 to vector<8x128xf32>
    %439 = arith.addf %438, %437 : vector<8x128xf32>
    %440 = arith.divf %438, %439 : vector<8x128xf32>
    %441 = vector.extract_strided_slice %403 {offsets = [0, 256], sizes = [8, 128], strides = [1, 1]} : vector<8x512xf32> to vector<8x128xf32>
    %442 = math.tanh %441 : vector<8x128xf32>
    %443 = vector.extract_strided_slice %403 {offsets = [0, 384], sizes = [8, 128], strides = [1, 1]} : vector<8x512xf32> to vector<8x128xf32>
    %444 = arith.negf %443 : vector<8x128xf32>
    %445 = math.exp %444 : vector<8x128xf32>
    %cst_85 = arith.constant 1.000000e+00 : f32
    %446 = vector.broadcast %cst_85 : f32 to vector<8x128xf32>
    %447 = arith.addf %446, %445 : vector<8x128xf32>
    %448 = arith.divf %446, %447 : vector<8x128xf32>
    %449 = arith.mulf %440, %393 : vector<8x128xf32>
    %450 = arith.mulf %434, %442 : vector<8x128xf32>
    %451 = arith.addf %449, %450 : vector<8x128xf32>
    %452 = math.tanh %451 : vector<8x128xf32>
    %453 = arith.mulf %448, %452 : vector<8x128xf32>
    %c48 = arith.constant 48 : index
    %c0_86 = arith.constant 0 : index
    %454 = vector.load %arg13[%c48, %c0_86] : memref<64x128xf32, #tpu.memory_space<vmem>>, vector<8x128xf32>
    tpu.vector_store %arg13[%c48, %c0_86], %453 {strides = array<i32>} : memref<64x128xf32, #tpu.memory_space<vmem>>, vector<8x128xf32>,
    %455 = tpu.concatenate %428, %453 in 1 : vector<8x128xf32>, vector<8x128xf32> -> vector<8x256xf32>
    %cst_87 = arith.constant dense<0.000000e+00> : vector<8x512xf32>
    %456 = tpu.matmul %455, %7, %cst_87 {dimension_numbers = #tpu.dot_dimension_numbers<[1], [0], [0], [1], [0, 0, 1, 1], [], []>} : vector<8x256xf32>, vector<256x512xf32>, vector<8x512xf32> -> vector<8x512xf32>
    %457 = vector.broadcast %8 : vector<1x512xf32> to vector<8x512xf32>
    %458 = arith.addf %456, %457 : vector<8x512xf32>
    %459 = vector.extract_strided_slice %458 {offsets = [0, 0], sizes = [8, 128], strides = [1, 1]} : vector<8x512xf32> to vector<8x128xf32>
    %460 = arith.negf %459 : vector<8x128xf32>
    %461 = math.exp %460 : vector<8x128xf32>
    %cst_88 = arith.constant 1.000000e+00 : f32
    %462 = vector.broadcast %cst_88 : f32 to vector<8x128xf32>
    %463 = arith.addf %462, %461 : vector<8x128xf32>
    %464 = arith.divf %462, %463 : vector<8x128xf32>
    %465 = vector.extract_strided_slice %458 {offsets = [0, 128], sizes = [8, 128], strides = [1, 1]} : vector<8x512xf32> to vector<8x128xf32>
    %466 = arith.negf %465 : vector<8x128xf32>
    %467 = math.exp %466 : vector<8x128xf32>
    %cst_89 = arith.constant 1.000000e+00 : f32
    %468 = vector.broadcast %cst_89 : f32 to vector<8x128xf32>
    %469 = arith.addf %468, %467 : vector<8x128xf32>
    %470 = arith.divf %468, %469 : vector<8x128xf32>
    %471 = vector.extract_strided_slice %458 {offsets = [0, 256], sizes = [8, 128], strides = [1, 1]} : vector<8x512xf32> to vector<8x128xf32>
    %472 = math.tanh %471 : vector<8x128xf32>
    %473 = vector.extract_strided_slice %458 {offsets = [0, 384], sizes = [8, 128], strides = [1, 1]} : vector<8x512xf32> to vector<8x128xf32>
    %474 = arith.negf %473 : vector<8x128xf32>
    %475 = math.exp %474 : vector<8x128xf32>
    %cst_90 = arith.constant 1.000000e+00 : f32
    %476 = vector.broadcast %cst_90 : f32 to vector<8x128xf32>
    %477 = arith.addf %476, %475 : vector<8x128xf32>
    %478 = arith.divf %476, %477 : vector<8x128xf32>
    %479 = arith.mulf %470, %451 : vector<8x128xf32>
    %480 = arith.mulf %464, %472 : vector<8x128xf32>
    %481 = arith.addf %479, %480 : vector<8x128xf32>
    %482 = math.tanh %481 : vector<8x128xf32>
    %483 = arith.mulf %478, %482 : vector<8x128xf32>
    %c56 = arith.constant 56 : index
    %c0_91 = arith.constant 0 : index
    %484 = vector.load %arg13[%c56, %c0_91] : memref<64x128xf32, #tpu.memory_space<vmem>>, vector<8x128xf32>
    tpu.vector_store %arg13[%c56, %c0_91], %483 {strides = array<i32>} : memref<64x128xf32, #tpu.memory_space<vmem>>, vector<8x128xf32>,
    %c0_92 = arith.constant 0 : index
    %c0_93 = arith.constant 0 : index
    %485 = vector.load %arg13[%c0_92, %c0_93] : memref<64x128xf32, #tpu.memory_space<vmem>>, vector<64x128xf32>
    %c0_94 = arith.constant 0 : index
    %c0_95 = arith.constant 0 : index
    %486 = vector.load %arg10[%c0_94, %c0_95] : memref<128x128xf32, #tpu.memory_space<vmem>>, vector<128x128xf32>
    %cst_96 = arith.constant dense<0.000000e+00> : vector<64x128xf32>
    %487 = tpu.matmul %485, %486, %cst_96 {dimension_numbers = #tpu.dot_dimension_numbers<[1], [0], [0], [1], [0, 0, 1, 1], [], []>} : vector<64x128xf32>, vector<128x128xf32>, vector<64x128xf32> -> vector<64x128xf32>
    %c0_97 = arith.constant 0 : index
    %c0_98 = arith.constant 0 : index
    %488 = vector.load %arg11[%c0_97, %c0_98] : memref<1x128xf32, #tpu.memory_space<vmem>>, vector<1x128xf32>
    %489 = vector.broadcast %488 : vector<1x128xf32> to vector<64x128xf32>
    %490 = arith.addf %487, %489 : vector<64x128xf32>
    %c0_99 = arith.constant 0 : index
    %c0_100 = arith.constant 0 : index
    %491 = vector.load %arg12[%c0_99, %c0_100] : memref<64x128xf32, #tpu.memory_space<vmem>>, vector<64x128xf32>
    tpu.vector_store %arg12[%c0_99, %c0_100], %490 {strides = array<i32>} : memref<64x128xf32, #tpu.memory_space<vmem>>, vector<64x128xf32>,
    return
  }
}

</mosaic_0001>

<bundles_post_ra>
// kernel: tpu_custom_call.1
= control target key start
LH: loop header
LB: loop body
LE: loop exit
PB: predicated region body
PF: predicated region fallthrough
CT: control target
= control target key end

     0   :  { %17 = vsyncpa [#allocation4], 0  ;;  %s7309_s0 = inlined_call_operand.vmem [shape: f32[64,32], index: 0, kind: input, shape index: {}]   ;;  %s7310_s1 = inlined_call_operand.hbm [shape: f32[32,512], index: 1, kind: input, shape index: {}]   ;;  %s7311_s2 = inlined_call_operand.vmem [shape: f32[1,512], index: 2, kind: input, shape index: {}]   ;;  %s7312_s3 = inlined_call_operand.hbm [shape: f32[128,512], index: 3, kind: input, shape index: {}]   ;;  %s7313_s4 = inlined_call_operand.hbm [shape: f32[256,512], index: 4, kind: input, shape index: {}]   ;;  %s7314_s5 = inlined_call_operand.hbm [shape: f32[1,512], index: 5, kind: input, shape index: {}]   ;;  %s7315_s6 = inlined_call_operand.vmem [shape: f32[1,128], index: 6, kind: input, shape index: {}]   ;;  %s7316_s7 = inlined_call_operand.hbm [shape: f32[1,128], index: 7, kind: input, shape index: {}]   ;;  %s7317_s8 = inlined_call_operand.hbm [shape: f32[1,128], index: 8, kind: input, shape index: {}]   ;;  %s7318_s9 = inlined_call_operand.hbm [shape: f32[1,128], index: 9, kind: input, shape index: {}]   ;;  %s7319_s10 = inlined_call_operand.vmem [shape: f32[128,128], index: 10, kind: input, shape index: {}]   ;;  %s7320_s11 = inlined_call_operand.vmem [shape: f32[1,128], index: 11, kind: input, shape index: {}]   ;;  %s7321_s12 = inlined_call_operand.hbm [shape: f32[64,128], index: 12, kind: output, shape index: {}]  }
   0x1   :  { %18 = vsyncpa [#allocation7], 0 }
   0x2   :  { %19 = vsyncpa [#allocation10], 0 }
   0x3   :  { %20 = vsyncpa [#allocation13], 0 }
   0x4   :  { %21 = vsyncpa [#allocation5], 0  ;;  %s5768_s21 = smov [#allocation6]   ;;  %s5769_s23 = smov [#allocation9]  }
   0x5   :  { %s43_s22 = sshll.u32 %s5768_s21, 4  ;;  %s68_s24 = sshll.u32 %s5769_s23, 4  ;;  %s44_s22 = int_to_ptr.vmem [resolvable:$true] %s43_s22  ;;  %s69_s24 = int_to_ptr.vmem [resolvable:$true] %s68_s24 }
   0x6   :  { %s5582_s27 = scalar_lea.hbm %s7312_s3, 8192 }
   0x7   :  { %p5583_p0 = scmp.ne.s32.totalorder %s7312_s3, %s5582_s27  ;;  %p5586_p1 = scmp.lt.u32.totalorder %s5582_s27, %s7312_s3 }
   0x9   :  { %p5588_p2 = pnand %p5586_p1, %p5583_p0 }
   0xb   :  { %5591 = shalt.err (!%p5588_p2)
}
   0xc   :  { %s5592_s14 = scalar_lea.vmem %s44_s22, 8192  ;;  %p5597_p4 = scmp.lt.s32.totalorder %s44_s22, %s44_s22 }
   0xd   :  { %p5593_p3 = scmp.ne.s32.totalorder %s44_s22, %s5592_s14  ;;  %p5598_p5 = scmp.lt.s32.totalorder %s5592_s14, %s5592_s14 }
   0xf   :  { %p5599_p6 = por %p5598_p5, %p5597_p4 }
  0x11   :  { %p5600_p7 = pnand %p5599_p6, %p5593_p3 }
  0x13   :  { %5603 = shalt.err (!%p5600_p7)
}
  0x14   :  { %s5770_s15 = smov 512   ;;  %s5771_s16 = smov 32  }
  0x15   :  { %49 = dma.hbm_to_vmem [thread:$0]  %s7312_s3, 8192, %s44_s22, [#allocation7], %s5770_s15, %s5770_s15, %s5771_s16  }
  0x16   :  { %s5604_s21 = scalar_lea.hbm %s7314_s5, 64 }
  0x17   :  { %p5605_p8 = scmp.ne.s32.totalorder %s7314_s5, %s5604_s21  ;;  %p5608_p9 = scmp.lt.u32.totalorder %s5604_s21, %s7314_s5 }
  0x19   :  { %p5610_p10 = pnand %p5608_p9, %p5605_p8 }
  0x1b   :  { %5613 = shalt.err (!%p5610_p10)
}
  0x1c   :  { %s5614_s28 = scalar_lea.vmem %s69_s24, 64  ;;  %p5619_p12 = scmp.lt.s32.totalorder %s69_s24, %s69_s24 }
  0x1d   :  { %p5615_p11 = scmp.ne.s32.totalorder %s69_s24, %s5614_s28  ;;  %p5620_p13 = scmp.lt.s32.totalorder %s5614_s28, %s5614_s28 }
  0x1f   :  { %p5621_p0 = por %p5620_p13, %p5619_p12 }
  0x21   :  { %p5622_p1 = pnand %p5621_p0, %p5615_p11 }
  0x23   :  { %5625 = shalt.err (!%p5622_p1)
}
  0x24   :  { %71 = dma.hbm_to_vmem [thread:$0]  %s7314_s5, 64, %s69_s24, [#allocation10]  }
  0x25   :  { %s5772_s29 = smov [#allocation12]   ;;  %s5773_s13 = smov [#allocation3]  }
  0x26   :  { %s90_s30 = sshll.u32 %s5772_s29, 4  ;;  %s29_s14 = sshll.u32 %s5773_s13, 4  ;;  %s91_s30 = int_to_ptr.vmem [resolvable:$true] %s90_s30  ;;  %s5873_s14 = int_to_ptr.vmem [resolvable:$true] %s29_s14 }
  0x27   :  { %s5626_s19 = scalar_lea.hbm %s7317_s8, 16 }
  0x28   :  { %p5627_p2 = scmp.ne.s32.totalorder %s7317_s8, %s5626_s19  ;;  %p5630_p3 = scmp.lt.u32.totalorder %s5626_s19, %s7317_s8 }
  0x2a   :  { %p5632_p4 = pnand %p5630_p3, %p5627_p2 }
  0x2c   :  { %5635 = shalt.err (!%p5632_p4)
}
  0x2d   :  { %s5636_s5 = scalar_lea.vmem %s91_s30, 16  ;;  %s5640_s24 = scalar_lea.vmem %s91_s30, 32 }
  0x2e   :  { %p5637_p5 = scmp.ne.s32.totalorder %s91_s30, %s5636_s5  ;;  %p5641_p6 = scmp.lt.s32.totalorder %s91_s30, %s91_s30 }
  0x2f   :  { %p5642_p7 = scmp.lt.s32.totalorder %s5640_s24, %s5636_s5 }
  0x31   :  { %p5643_p8 = por %p5642_p7, %p5641_p6 }
  0x33   :  { %p5644_p9 = pnand %p5643_p8, %p5637_p5 }
  0x35   :  { %5647 = shalt.err (!%p5644_p9)
}
  0x36   :  { %93 = dma.hbm_to_vmem [thread:$0]  %s7317_s8, 16, %s91_s30, [#allocation13]  }
  0x37   :  { %s5648_s22 = scalar_lea.hbm %s7310_s1, 2048 }
  0x38   :  { %p5649_p10 = scmp.ne.s32.totalorder %s7310_s1, %s5648_s22  ;;  %p5652_p11 = scmp.lt.u32.totalorder %s5648_s22, %s7310_s1 }
  0x3a   :  { %p5654_p12 = pnand %p5652_p11, %p5649_p10 }
  0x3c   :  { %5657 = shalt.err (!%p5654_p12)
}
  0x3d   :  { %s5658_s19 = scalar_lea.vmem %s5873_s14, 2048  ;;  %p5663_p0 = scmp.lt.s32.totalorder %s5873_s14, %s5873_s14 }
  0x3e   :  { %p5659_p13 = scmp.ne.s32.totalorder %s5873_s14, %s5658_s19  ;;  %p5664_p1 = scmp.lt.s32.totalorder %s5658_s19, %s5658_s19 }
  0x40   :  { %p5665_p2 = por %p5664_p1, %p5663_p0 }
  0x42   :  { %p5666_p3 = pnand %p5665_p2, %p5659_p13 }
  0x44   :  { %5669 = shalt.err (!%p5666_p3)
}
  0x45   :  { %35 = dma.hbm_to_vmem [thread:$0]  %s7310_s1, 2048, %s5873_s14, [#allocation4], %s5770_s15, %s5770_s15, %s5771_s16  }
  0x46   :  { %s5774_s20 = smov [#allocation8]   ;;  %s5775_s23 = smov [#allocation11]  }
  0x47   :  { %s55_s21 = sshll.u32 %s5774_s20, 4  ;;  %s80_s25 = sshll.u32 %s5775_s23, 4  ;;  %s56_s21 = int_to_ptr.vmem [resolvable:$true] %s55_s21  ;;  %s81_s25 = int_to_ptr.vmem [resolvable:$true] %s80_s25 }
  0x48   :  { %s5670_s26 = scalar_lea.hbm %s7313_s4, 16384 }
  0x49   :  { %p5671_p4 = scmp.ne.s32.totalorder %s7313_s4, %s5670_s26  ;;  %p5674_p5 = scmp.lt.u32.totalorder %s5670_s26, %s7313_s4 }
  0x4b   :  { %p5676_p6 = pnand %p5674_p5, %p5671_p4 }
  0x4d   :  { %5679 = shalt.err (!%p5676_p6)
}
  0x4e   :  { %s5680_s1 = scalar_lea.vmem %s56_s21, 16384  ;;  %p5685_p8 = scmp.lt.s32.totalorder %s56_s21, %s56_s21 }
  0x4f   :  { %p5681_p7 = scmp.ne.s32.totalorder %s56_s21, %s5680_s1  ;;  %p5686_p9 = scmp.lt.s32.totalorder %s5680_s1, %s5680_s1 }
  0x51   :  { %p5687_p10 = por %p5686_p9, %p5685_p8 }
  0x53   :  { %p5688_p11 = pnand %p5687_p10, %p5681_p7 }
  0x55   :  { %5691 = shalt.err (!%p5688_p11)
}
  0x56   :  { %61 = dma.hbm_to_vmem [thread:$0]  %s7313_s4, 16384, %s56_s21, [#allocation7], %s5770_s15, %s5770_s15, %s5771_s16  }
  0x57   :  { %s5692_s18 = scalar_lea.hbm %s7316_s7, 16 }
  0x58   :  { %p5693_p12 = scmp.ne.s32.totalorder %s7316_s7, %s5692_s18  ;;  %p5696_p13 = scmp.lt.u32.totalorder %s5692_s18, %s7316_s7 }
  0x5a   :  { %p5698_p0 = pnand %p5696_p13, %p5693_p12 }
  0x5c   :  { %5701 = shalt.err (!%p5698_p0)
}
  0x5d   :  { %s5702_s23 = scalar_lea.vmem %s81_s25, 16  ;;  %s5706_s5 = scalar_lea.vmem %s81_s25, 32 }
  0x5e   :  { %p5703_p1 = scmp.ne.s32.totalorder %s81_s25, %s5702_s23  ;;  %p5707_p2 = scmp.lt.s32.totalorder %s81_s25, %s81_s25 }
  0x5f   :  { %p5708_p3 = scmp.lt.s32.totalorder %s5706_s5, %s5702_s23 }
  0x61   :  { %p5709_p4 = por %p5708_p3, %p5707_p2 }
  0x63   :  { %p5710_p5 = pnand %p5709_p4, %p5703_p1 }
  0x65   :  { %5713 = shalt.err (!%p5710_p5)
}
  0x66   :  { %83 = dma.hbm_to_vmem [thread:$0]  %s7316_s7, 16, %s81_s25, [#allocation10]  }
  0x67   :  { %s5776_s16 = smov [#allocation14]   ;;  %s5714_s27 = scalar_lea.hbm %s7318_s9, 16 }
  0x68   :  { %s100_s21 = sshll.u32 %s5776_s16, 4  ;;  %p5715_p6 = scmp.ne.s32.totalorder %s7318_s9, %s5714_s27  ;;  %s101_s21 = int_to_ptr.vmem [resolvable:$true] %s100_s21 }
  0x69   :  { %p5718_p7 = scmp.lt.u32.totalorder %s5714_s27, %s7318_s9 }
  0x6b   :  { %p5720_p8 = pnand %p5718_p7, %p5715_p6 }
  0x6d   :  { %5723 = shalt.err (!%p5720_p8)
}
  0x6e   :  { %s5724_s14 = scalar_lea.vmem %s101_s21, 16  ;;  %s5728_s7 = scalar_lea.vmem %s101_s21, 32 }
  0x6f   :  { %p5725_p9 = scmp.ne.s32.totalorder %s101_s21, %s5724_s14  ;;  %p5729_p10 = scmp.lt.s32.totalorder %s101_s21, %s101_s21 }
  0x70   :  { %p5730_p11 = scmp.lt.s32.totalorder %s5728_s7, %s5724_s14 }
  0x72   :  { %p5731_p12 = por %p5730_p11, %p5729_p10 }
  0x74   :  { %p5732_p13 = pnand %p5731_p12, %p5725_p9 }
  0x76   :  { %5735 = shalt.err (!%p5732_p13)
}
  0x77   :  { %103 = dma.hbm_to_vmem [thread:$0]  %s7318_s9, 16, %s101_s21, [#allocation13]  }
  0x78   :  { %5758 = dma.done.wait [#allocation4], 2048  }
  0x79   :  { %5759 = vsyncadd [#allocation4], 4294965248 }
  0x7a   :  { %5760 = dma.done.wait [#allocation7], 24576  }
  0x7b   :  { %5761 = vsyncadd [#allocation7], 4294942720 }
  0x7c   :  { %5762 = dma.done.wait [#allocation10], 80  }
  0x7d   :  { %5763 = vsyncadd [#allocation10], 4294967216 }
  0x7e   :  { %5764 = dma.done.wait [#allocation13], 32  }
  0x7f   :  { %5765 = vsyncadd [#allocation13], 4294967264  ;;  %v7326_v0 = vmov 0.0   ;;  %v140_v1 = vld [vmem:[#allocation3 + $0x18] sm:$0xff]  ;;  %v139_v3 = vld [vmem:[#allocation3 + $0x10] sm:$0xff]  ;;  %vm175_vm0 = vcmask 261120  }
  0x80   :  { %377 = vmatprep.mubr.f32.mxu1 %v7326_v0  ;;  %264 = vmatprep.mubr.f32.mxu0 %v7326_v0  ;;  %v144_v2 = vld [vmem:[#allocation3 + $0x38] sm:$0xff]  ;;  %v143_v5 = vld [vmem:[#allocation3 + $0x30] sm:$0xff]  ;;  %v427_v12 = vld [vmem:[#allocation6 + $0x8] sm:$0xff] }
  0x81   :  { %v3673_v4 = vpack.c.bf16 %v144_v2, %v140_v1  ;;  %v148_v6 = vld [vmem:[#allocation3 + $0x58] sm:$0xff]  ;;  %v3675_v8 = vpack.c.bf16 %v143_v5, %v139_v3  ;;  %v147_v10 = vld [vmem:[#allocation3 + $0x50] sm:$0xff]  ;;  %v431_v13 = vld [vmem:[#allocation6 + $0x28] sm:$0xff] }
  0x82   :  { %v152_v7 = vld [vmem:[#allocation3 + $0x78] sm:$0xff]  ;;  %v151_v11 = vld [vmem:[#allocation3 + $0x70] sm:$0xff]  ;;  %v5948_v15 = vpack.c.bf16 %v431_v13, %v427_v12  ;;  %v426_v16 = vld [vmem:[#allocation6] sm:$0xff] }
  0x83   :  { %v3677_v9 = vpack.c.bf16 %v152_v7, %v148_v6  ;;  %3674 = vmatprep.subr.bf16.mxu1 %v3673_v4  ;;  %v3679_v14 = vpack.c.bf16 %v151_v11, %v147_v10  ;;  %v430_v17 = vld [vmem:[#allocation6 + $0x20] sm:$0xff]  ;;  %v435_v18 = vld [vmem:[#allocation6 + $0x48] sm:$0xff]  ;;  %v5979_v40 = vld [vmem:[%s7309_s0 + $0x10] sm:$0xff] }
  0x84   :  { %3676 = vmatpush1.bf16.msra.mxu1 %v3675_v8  ;;  %7549 = vst [vmem:[#allocation21_spill] sm:$0xff] %v5948_v15  ;;  %v439_v19 = vld [vmem:[#allocation6 + $0x68] sm:$0xff]  ;;  %v5953_v20 = vld [vmem:[%s7309_s0] sm:$0xff]  ;;  %v5955_v21 = vpack.c.bf16 %v430_v17, %v426_v16  ;;  %v5995_v53 = vld [vmem:[%s7309_s0 + $0x18] sm:$0xff] }
  0x85   :  { %3678 = vmatprep.subr.bf16.mxu1 %v3677_v9  ;;  %v5958_v22 = vpack.c.bf16 %v439_v19, %v435_v18  ;;  %v434_v23 = vld [vmem:[#allocation6 + $0x40] sm:$0xff]  ;;  %v443_v25 = vld [vmem:[#allocation6 + $0x88] sm:$0xff]  ;;  %v135_v11 = vld [vmem:[%s7309_s0 + $0x30] sm:$0xff] }
  0x86   :  { %7550 = vst [vmem:[#allocation22_spill] sm:$0xff] %v5955_v21  ;;  %v438_v24 = vld [vmem:[#allocation6 + $0x60] sm:$0xff]  ;;  %v447_v26 = vld [vmem:[#allocation6 + $0xa8] sm:$0xff]  ;;  %v429_v17 = vld [vmem:[#allocation6 + $0x18] sm:$0xff] }
  0x87   :  { %7551 = vst [vmem:[#allocation23_spill] sm:$0xff] %v5958_v22  ;;  %v5965_v27 = vld [vmem:[%s7309_s0 + $0x8] sm:$0xff]  ;;  %v5969_v28 = vpack.c.bf16 %v438_v24, %v434_v23  ;;  %v442_v29 = vld [vmem:[#allocation6 + $0x80] sm:$0xff]  ;;  %v5972_v32 = vpack.c.bf16 %v447_v26, %v443_v25  ;;  %v433_v18 = vld [vmem:[#allocation6 + $0x38] sm:$0xff] }
  0x88   :  { %3680 = vmatpush1.bf16.msra.mxu1 %v3679_v14  ;;  %v446_v30 = vld [vmem:[#allocation6 + $0xa0] sm:$0xff]  ;;  %v138_v31 = vld [vmem:[#allocation3 + $0x8] sm:$0xff]  ;;  %v136_v19 = vld [vmem:[%s7309_s0 + $0x38] sm:$0xff]  ;;  %v6067_v23 = vpack.c.bf16 %v433_v18, %v429_v17 }
  0x89   :  { %3682 = vmatprep.subr.bf16.mxu1 %v5948_v15  ;;  %7552 = vst [vmem:[#allocation24_spill] sm:$0xff] %v5969_v28  ;;  %7553 = vst [vmem:[#allocation25_spill] sm:$0xff] %v5972_v32  ;;  %v142_v33 = vld [vmem:[#allocation3 + $0x28] sm:$0xff]  ;;  %v137_v34 = vld [vmem:[#allocation3] sm:$0xff]  ;;  %v5983_v42 = vpack.c.bf16 %v446_v30, %v442_v29 }
  0x8a   :  { %v141_v35 = vld [vmem:[#allocation3 + $0x20] sm:$0xff]  ;;  %v451_v36 = vld [vmem:[#allocation6 + $0xc8] sm:$0xff]  ;;  %v3665_v38 = vpack.c.bf16 %v142_v33, %v138_v31  ;;  %7565 = vst [vmem:[#allocation37_spill] sm:$0xff] %v6067_v23  ;;  %v428_v24 = vld [vmem:[#allocation6 + $0x10] sm:$0xff] }
  0x8b   :  { %3536 = vmatmul.mubr.msk.f32.vlgmr.msra.gmra.mrb[0].mxu1 %vm175_vm0, %v5953_v20  ;;  %v455_v37 = vld [vmem:[#allocation6 + $0xe8] sm:$0xff]  ;;  %v3667_v39 = vpack.c.bf16 %v141_v35, %v137_v34  ;;  %7554 = vst [vmem:[#allocation26_spill] sm:$0xff] %v5983_v42  ;;  %v145_v44 = vld [vmem:[#allocation3 + $0x40] sm:$0xff]  ;;  %v432_v25 = vld [vmem:[#allocation6 + $0x30] sm:$0xff] }
  0x8c   :  { %3684 = vmatpush1.bf16.msra.mxu1 %v5955_v21  ;;  %383 = vmatprep.mubr.f32.mxu1 %v7326_v0  ;;  %v146_v41 = vld [vmem:[#allocation3 + $0x48] sm:$0xff]  ;;  %v149_v45 = vld [vmem:[#allocation3 + $0x60] sm:$0xff]  ;;  %v5986_v46 = vpack.c.bf16 %v455_v37, %v451_v36  ;;  %v437_v26 = vld [vmem:[#allocation6 + $0x58] sm:$0xff]  ;;  %v6082_v30 = vpack.c.bf16 %v432_v25, %v428_v24 }
  0x8d   :  { %3686 = vmatprep.subr.bf16.mxu1 %v5958_v22  ;;  %v150_v43 = vld [vmem:[#allocation3 + $0x68] sm:$0xff]  ;;  %v450_v47 = vld [vmem:[#allocation6 + $0xc0] sm:$0xff]  ;;  %3666 = vmatprep.subr.bf16.mxu0 %v3665_v38  ;;  %v3671_v52 = vpack.c.bf16 %v149_v45, %v145_v44  ;;  %v436_v33 = vld [vmem:[#allocation6 + $0x50] sm:$0xff] }
  0x8e   :  { %7555 = vst [vmem:[#allocation27_spill] sm:$0xff] %v5986_v46  ;;  %v454_v48 = vld [vmem:[#allocation6 + $0xe0] sm:$0xff]  ;;  %v3669_v49 = vpack.c.bf16 %v150_v43, %v146_v41  ;;  %v459_v50 = vld [vmem:[#allocation6 + $0x108] sm:$0xff]  ;;  %3668 = vmatpush1.bf16.msra.mxu0 %v3667_v39  ;;  %7566 = vst [vmem:[#allocation38_spill] sm:$0xff] %v6082_v30 }
  0x8f   :  { %3537 = vmatmul.mubr.msk.f32.gmra.mrb[2].mxu1 %vm175_vm0, %v5965_v27  ;;  %v463_v51 = vld [vmem:[#allocation6 + $0x128] sm:$0xff]  ;;  %v5997_v54 = vpack.c.bf16 %v454_v48, %v450_v47  ;;  %v458_v56 = vld [vmem:[#allocation6 + $0x100] sm:$0xff]  ;;  %v440_v34 = vld [vmem:[#allocation6 + $0x70] sm:$0xff] }
  0x90   :  { %3688 = vmatpush1.bf16.msra.mxu1 %v5969_v28  ;;  %389 = vmatprep.mubr.f32.mxu1 %v7326_v0  ;;  %v6000_v55 = vpack.c.bf16 %v463_v51, %v459_v50  ;;  %v462_v57 = vld [vmem:[#allocation6 + $0x120] sm:$0xff]  ;;  %v467_v58 = vld [vmem:[#allocation6 + $0x148] sm:$0xff]  ;;  %v445_v35 = vld [vmem:[#allocation6 + $0x98] sm:$0xff]  ;;  %v6094_v37 = vpack.c.bf16 %v440_v34, %v436_v33  ;;  %v155_v34 = vlaneseq }
  0x91   :  { %3690 = vmatprep.subr.bf16.mxu1 %v5972_v32  ;;  %3670 = vmatprep.subr.bf16.mxu0 %v3669_v49  ;;  %7556 = vst [vmem:[#allocation28_spill] sm:$0xff] %v5997_v54  ;;  %v471_v59 = vld [vmem:[#allocation6 + $0x168] sm:$0xff]  ;;  %v6010_v60 = vld [vmem:[%s7309_s0 + $0x20] sm:$0xff]  ;;  %v6012_v61 = vpack.c.bf16 %v462_v57, %v458_v56  ;;  %v449_v36 = vld [vmem:[#allocation6 + $0xb8] sm:$0xff] }
  0x92   :  { %7557 = vst [vmem:[#allocation29_spill] sm:$0xff] %v6000_v55  ;;  %3672 = vmatpush1.bf16.msra.mxu0 %v3671_v52  ;;  %v6015_v62 = vpack.c.bf16 %v471_v59, %v467_v58  ;;  %v466_v63 = vld [vmem:[#allocation6 + $0x140] sm:$0xff]  ;;  %v475_v2 = vld [vmem:[#allocation6 + $0x188] sm:$0xff]  ;;  %7568 = vst [vmem:[#allocation40_spill] sm:$0xff] %v6094_v37  ;;  %v6098_v38 = vpack.c.bf16 %v449_v36, %v445_v35 }
  0x93   :  { %3538 = vmatmul.mubr.msk.f32.gmra.mrb[4].mxu1 %vm175_vm0, %v5979_v40  ;;  %3746 = vmatprep.subr.bf16.mxu0 %v5948_v15  ;;  %7558 = vst [vmem:[#allocation30_spill] sm:$0xff] %v6012_v61  ;;  %v470_v1 = vld [vmem:[#allocation6 + $0x160] sm:$0xff]  ;;  %v479_v3 = vld [vmem:[#allocation6 + $0x1a8] sm:$0xff]  ;;  %v444_v39 = vld [vmem:[#allocation6 + $0x90] sm:$0xff] }
  0x94   :  { %3692 = vmatpush1.bf16.msra.mxu1 %v5983_v42  ;;  %395 = vmatprep.mubr.f32.mxu1 %v7326_v0  ;;  %7559 = vst [vmem:[#allocation31_spill] sm:$0xff] %v6015_v62  ;;  %v6029_v4 = vld [vmem:[%s7309_s0 + $0x28] sm:$0xff]  ;;  %v6031_v5 = vpack.c.bf16 %v470_v1, %v466_v63  ;;  %v6034_v6 = vpack.c.bf16 %v479_v3, %v475_v2  ;;  %v474_v7 = vld [vmem:[#allocation6 + $0x180] sm:$0xff]  ;;  %7569 = vst [vmem:[#allocation41_spill] sm:$0xff] %v6098_v38 }
  0x95   :  { %3694 = vmatprep.subr.bf16.mxu1 %v5986_v46  ;;  %3528 = vmatmul.mubr.msk.f32.vlgmr.msra.gmra.mrb[0].mxu0 %vm175_vm0, %v5953_v20  ;;  %v478_v8 = vld [vmem:[#allocation6 + $0x1a0] sm:$0xff]  ;;  %v483_v9 = vld [vmem:[#allocation6 + $0x1c8] sm:$0xff]  ;;  %v453_v41 = vld [vmem:[#allocation6 + $0xd8] sm:$0xff] }
  0x96   :  { %3748 = vmatpush1.bf16.msra.mxu0 %v5955_v21  ;;  %270 = vmatprep.mubr.f32.mxu0 %v7326_v0  ;;  %7560 = vst [vmem:[#allocation32_spill] sm:$0xff] %v6031_v5  ;;  %7561 = vst [vmem:[#allocation33_spill] sm:$0xff] %v6034_v6  ;;  %v487_v10 = vld [vmem:[#allocation6 + $0x1e8] sm:$0xff]  ;;  %v6048_v12 = vpack.c.bf16 %v478_v8, %v474_v7  ;;  %v482_v14 = vld [vmem:[#allocation6 + $0x1c0] sm:$0xff] }
  0x97   :  { %3539 = vmatmul.mubr.msk.f32.gmra.mrb[6].mxu1 %vm175_vm0, %v5995_v53  ;;  %3750 = vmatprep.subr.bf16.mxu0 %v5958_v22  ;;  %v6051_v13 = vpack.c.bf16 %v487_v10, %v483_v9  ;;  %v486_v16 = vld [vmem:[#allocation6 + $0x1e0] sm:$0xff]  ;;  %v457_v43 = vld [vmem:[#allocation6 + $0xf8] sm:$0xff]  ;;  %v452_v47 = vld [vmem:[#allocation6 + $0xd0] sm:$0xff] }
  0x98   :  { %3696 = vmatpush1.bf16.msra.mxu1 %v5997_v54  ;;  %401 = vmatprep.mubr.f32.mxu1 %v7326_v0  ;;  %7562 = vst [vmem:[#allocation34_spill] sm:$0xff] %v6048_v12  ;;  %v6064_v20 = vpack.c.bf16 %v486_v16, %v482_v14  ;;  %v6080_v29 = vld [vmem:[%s7315_s6] ss:$0 sm:$0xff]  ;;  %v6109_v45 = vpack.c.bf16 %v457_v43, %v453_v41  ;;  %v456_v48 = vld [vmem:[#allocation6 + $0xf0] sm:$0xff]  ;;  %v461_v49 = vld [vmem:[#allocation6 + $0x118] sm:$0xff] }
  0x99   :  { %3698 = vmatprep.subr.bf16.mxu1 %v6000_v55  ;;  %3529 = vmatmul.mubr.msk.f32.gmra.mrb[2].mxu0 %vm175_vm0, %v5965_v27  ;;  %7563 = vst [vmem:[#allocation35_spill] sm:$0xff] %v6051_v13  ;;  %v441_v27 = vld [vmem:[#allocation6 + $0x78] sm:$0xff]  ;;  %v6116_v51 = vpack.c.bf16 %v456_v48, %v452_v47  ;;  %v464_v56 = vld [vmem:[#allocation6 + $0x130] sm:$0xff]  ;;  %v491_v24 = vld [vmem:[#allocation8 + $0x8] sm:$0xff] }
  0x9a   :  { %3752 = vmatpush1.bf16.msra.mxu0 %v5969_v28  ;;  %276 = vmatprep.mubr.f32.mxu0 %v7326_v0  ;;  %7564 = vst [vmem:[#allocation36_spill] sm:$0xff] %v6064_v20  ;;  %v6085_v31 = vpack.c.bf16 %v441_v27, %v437_v26  ;;  %7571 = vst [vmem:[#allocation43_spill] sm:$0xff] %v6109_v45  ;;  %v465_v50 = vld [vmem:[#allocation6 + $0x138] sm:$0xff]  ;;  %v468_v63 = vld [vmem:[#allocation6 + $0x150] sm:$0xff] }
  0x9b   :  { %3540 = vmatmul.mubr.msk.f32.gmra.mrb[8].mxu1 %vm175_vm0, %v6010_v60  ;;  %3754 = vmatprep.subr.bf16.mxu0 %v5972_v32  ;;  %7572 = vst [vmem:[#allocation44_spill] sm:$0xff] %v6116_v51  ;;  %v6119_v52 = vpack.c.bf16 %v465_v50, %v461_v49  ;;  %v469_v57 = vld [vmem:[#allocation6 + $0x158] sm:$0xff]  ;;  %v472_v1 = vld [vmem:[#allocation6 + $0x170] sm:$0xff]  ;;  %v495_v25 = vld [vmem:[#allocation8 + $0x28] sm:$0xff] }
  0x9c   :  { %3700 = vmatpush1.bf16.msra.mxu1 %v6012_v61  ;;  %407 = vmatprep.mubr.f32.mxu1 %v7326_v0  ;;  %7567 = vst [vmem:[#allocation39_spill] sm:$0xff] %v6085_v31  ;;  %v473_v58 = vld [vmem:[#allocation6 + $0x178] sm:$0xff]  ;;  %v476_v8 = vld [vmem:[#allocation6 + $0x190] sm:$0xff]  ;;  %v6165_v27 = vpack.c.bf16 %v495_v25, %v491_v24  ;;  %v153_v41 = vld [vmem:[%s7311_s2] sm:$0xf] }
  0x9d   :  { %3702 = vmatprep.subr.bf16.mxu1 %v6015_v62  ;;  %3530 = vmatmul.mubr.msk.f32.gmra.mrb[4].mxu0 %vm175_vm0, %v5979_v40  ;;  %v448_v40 = vld [vmem:[#allocation6 + $0xb0] sm:$0xff]  ;;  %7573 = vst [vmem:[#allocation45_spill] sm:$0xff] %v6119_v52  ;;  %v477_v2 = vld [vmem:[#allocation6 + $0x198] sm:$0xff] }
  0x9e   :  { %3756 = vmatpush1.bf16.msra.mxu0 %v5983_v42  ;;  %282 = vmatprep.mubr.f32.mxu0 %v7326_v0  ;;  %v6106_v44 = vpack.c.bf16 %v448_v40, %v444_v39  ;;  %v481_v3 = vld [vmem:[#allocation6 + $0x1b8] sm:$0xff]  ;;  %v480_v9 = vld [vmem:[#allocation6 + $0x1b0] sm:$0xff]  ;;  %7581 = vst [vmem:[#allocation53_spill] sm:$0xff] %v6165_v27  ;;  %v6171_v39 = vshrl.u32 %v155_v34, 7 }
  0x9f   :  { %3541 = vmatmul.mubr.msk.f32.gmra.mrb[10].mxu1 %vm175_vm0, %v6029_v4  ;;  %3758 = vmatprep.subr.bf16.mxu0 %v5986_v46  ;;  %v6134_v7 = vpack.c.bf16 %v481_v3, %v477_v2  ;;  %v485_v10 = vld [vmem:[#allocation6 + $0x1d8] sm:$0xff]  ;;  %v6137_v14 = vpack.c.bf16 %v480_v9, %v476_v8  ;;  %v484_v17 = vld [vmem:[#allocation6 + $0x1d0] sm:$0xff] }
  0xa0   :  { %3704 = vmatpush1.bf16.msra.mxu1 %v6031_v5  ;;  %413 = vmatprep.mubr.f32.mxu1 %v7326_v0  ;;  %7570 = vst [vmem:[#allocation42_spill] sm:$0xff] %v6106_v44  ;;  %v488_v18 = vld [vmem:[#allocation6 + $0x1f0] sm:$0xff]  ;;  %v493_v26 = vld [vmem:[#allocation8 + $0x18] sm:$0xff]  ;;  %7583 = vst [vmem:[#allocation55_spill] sm:$0xff] %v6171_v39  ;;  %v7325_v40 = vsub.s32 0, %v6171_v39  ;;  %v7324_v43 = vsub.s32 1, %v6171_v39 }
  0xa1   :  { %3706 = vmatprep.subr.bf16.mxu1 %v6034_v6  ;;  %3531 = vmatmul.mubr.msk.f32.gmra.mrb[6].mxu0 %vm175_vm0, %v5995_v53  ;;  %v460_v53 = vld [vmem:[#allocation6 + $0x110] sm:$0xff]  ;;  %7577 = vst [vmem:[#allocation49_spill] sm:$0xff] %v6134_v7  ;;  %7578 = vst [vmem:[#allocation50_spill] sm:$0xff] %v6137_v14  ;;  %v7322_v2 = vsub.s32 2, %v6171_v39  ;;  %v7323_v8 = vsub.s32 3, %v6171_v39  ;;  %v517_v39 = vld [vmem:[#allocation8 + $0xd8] sm:$0xff] }
  0xa2   :  { %3760 = vmatpush1.bf16.msra.mxu0 %v5997_v54  ;;  %288 = vmatprep.mubr.f32.mxu0 %v7326_v0  ;;  %v6125_v59 = vpack.c.bf16 %v464_v56, %v460_v53  ;;  %v6180_v47 = vrot.slane %v153_v41, %v7325_v40  ;;  %v6184_v48 = vrot.slane %v153_v41, %v7324_v43  ;;  %v509_v43 = vld [vmem:[#allocation8 + $0x98] sm:$0xff] }
  0xa3   :  { %3542 = vmatmul.mubr.msk.f32.gmra.mrb[12].mxu1 %vm175_vm0, %v135_v11  ;;  %3762 = vmatprep.subr.bf16.mxu0 %v6000_v55  ;;  %v513_v40 = vld [vmem:[#allocation8 + $0xb8] sm:$0xff] }
  0xa4   :  { %3708 = vmatpush1.bf16.msra.mxu1 %v6048_v12  ;;  %419 = vmatprep.mubr.f32.mxu1 %v7326_v0  ;;  %7574 = vst [vmem:[#allocation46_spill] sm:$0xff] %v6125_v59  ;;  %7584 = vst [vmem:[#allocation56_spill] sm:$0xff] %v6180_v47 }
  0xa5   :  { %3710 = vmatprep.subr.bf16.mxu1 %v6051_v13  ;;  %3532 = vmatmul.mubr.msk.f32.gmra.mrb[8].mxu0 %vm175_vm0, %v6010_v60  ;;  %v6128_v60 = vpack.c.bf16 %v473_v58, %v469_v57  ;;  %7585 = vst [vmem:[#allocation57_spill] sm:$0xff] %v6184_v48 }
  0xa6   :  { %3764 = vmatpush1.bf16.msra.mxu0 %v6012_v61  ;;  %294 = vmatprep.mubr.f32.mxu0 %v7326_v0 }
  0xa7   :  { %3543 = vmatmul.mubr.msk.f32.gmra.mrb[14].mxu1 %vm175_vm0, %v136_v19  ;;  %3766 = vmatprep.subr.bf16.mxu0 %v6015_v62  ;;  %7575 = vst [vmem:[#allocation47_spill] sm:$0xff] %v6128_v60 }
  0xa8   :  { %3712 = vmatpush1.bf16.msra.mxu1 %v6064_v20  ;;  %711 = vmatprep.mubr.f32.mxu1 %v7326_v0 }
  0xa9   :  { %3714 = vmatprep.subr.bf16.mxu1 %v6067_v23  ;;  %3533 = vmatmul.mubr.msk.f32.gmra.mrb[10].mxu0 %vm175_vm0, %v6029_v4  ;;  %v6131_v4 = vpack.c.bf16 %v472_v1, %v468_v63 }
  0xaa   :  { %3768 = vmatpush1.bf16.msra.mxu0 %v6031_v5  ;;  %300 = vmatprep.mubr.f32.mxu0 %v7326_v0 }
  0xab   :  { %712 = vmatmul.mubr.f32.vlgmr.msra.gmra.mrb[16].mxu1 %v6080_v29  ;;  %3770 = vmatprep.subr.bf16.mxu0 %v6034_v6  ;;  %7576 = vst [vmem:[#allocation48_spill] sm:$0xff] %v6131_v4 }
  0xac   :  { %3716 = vmatpush1.bf16.msra.mxu1 %v6082_v30  ;;  %782 = vmatprep.mubr.f32.mxu1 %v7326_v0 }
  0xad   :  { %3718 = vmatprep.subr.bf16.mxu1 %v6085_v31  ;;  %3534 = vmatmul.mubr.msk.f32.gmra.mrb[12].mxu0 %vm175_vm0, %v135_v11  ;;  %v489_v11 = vld [vmem:[#allocation6 + $0x1f8] sm:$0xff] }
  0xae   :  { %3772 = vmatpush1.bf16.msra.mxu0 %v6048_v12  ;;  %306 = vmatprep.mubr.f32.mxu0 %v7326_v0  ;;  %v6140_v16 = vpack.c.bf16 %v489_v11, %v485_v10  ;;  %v6192_v11 = vrot.slane %v153_v41, %v7322_v2  ;;  %v507_v2 = vld [vmem:[#allocation8 + $0x88] sm:$0xff] }
  0xaf   :  { %3774 = vmatprep.subr.bf16.mxu0 %v6051_v13 }
  0xb0   :  { %3720 = vmatpush1.bf16.msra.mxu1 %v6094_v37  ;;  %7579 = vst [vmem:[#allocation51_spill] sm:$0xff] %v6140_v16  ;;  %7586 = vst [vmem:[#allocation58_spill] sm:$0xff] %v6192_v11 }
  0xb1   :  { %3722 = vmatprep.subr.bf16.mxu1 %v6098_v38  ;;  %3535 = vmatmul.mubr.msk.f32.gmra.mrb[14].mxu0 %vm175_vm0, %v136_v19  ;;  %v6143_v19 = vpack.c.bf16 %v488_v18, %v484_v17  ;;  %v6196_v18 = vrot.slane %v153_v41, %v7323_v8  ;;  %v511_v8 = vld [vmem:[#allocation8 + $0xa8] sm:$0xff] }
  0xb2   :  { %3776 = vmatpush1.bf16.msra.mxu0 %v6064_v20  ;;  %881 = vmatprep.mubr.f32.mxu0 %v7326_v0 }
  0xb3   :  { %7580 = vst [vmem:[#allocation52_spill] sm:$0xff] %v6143_v19  ;;  %3810 = vmatprep.subr.bf16.mxu0 %v6165_v27  ;;  %7587 = vst [vmem:[#allocation59_spill] sm:$0xff] %v6196_v18 }
  0xb4   :  { %3724 = vmatpush1.bf16.msra.mxu1 %v6106_v44 }
  0xb5   :  { %3726 = vmatprep.subr.bf16.mxu1 %v6109_v45 }
  0xb8   :  { %3728 = vmatpush1.bf16.msra.mxu1 %v6116_v51 }
  0xb9   :  { %3730 = vmatprep.subr.bf16.mxu1 %v6119_v52 }
  0xbc   :  { %3732 = vmatpush1.bf16.msra.mxu1 %v6125_v59 }
  0xbd   :  { %3734 = vmatprep.subr.bf16.mxu1 %v6128_v60 }
  0xc0   :  { %3736 = vmatpush1.bf16.msra.mxu1 %v6131_v4 }
  0xc1   :  { %3738 = vmatprep.subr.bf16.mxu1 %v6134_v7 }
  0xc4   :  { %3740 = vmatpush1.bf16.msra.mxu1 %v6137_v14 }
  0xc5   :  { %3742 = vmatprep.subr.bf16.mxu1 %v6140_v16 }
  0xc8   :  { %3744 = vmatpush1.bf16.msra.mxu1 %v6143_v19 }
  0xc9   :  { %3778 = vmatprep.subr.bf16.mxu1 %v6067_v23 }
  0xcb   :  { %783 = vmatmul.mubr.f32.vlgmr.msra.gmra.mrb[0].mxu1 %v6080_v29  ;;  %v497_v29 = vld [vmem:[#allocation8 + $0x38] sm:$0xff] }
  0xcc   :  { %3780 = vmatpush1.bf16.msra.mxu1 %v6082_v30  ;;  %952 = vmatprep.mubr.f32.mxu1 %v7326_v0  ;;  %v6167_v33 = vpack.c.bf16 %v497_v29, %v493_v26  ;;  %v519_v0 = vld [vmem:[#allocation8 + $0xe8] sm:$0xff] }
  0xcd   :  { %3782 = vmatprep.subr.bf16.mxu1 %v6085_v31 }
  0xce   :  { %7582 = vst [vmem:[#allocation54_spill] sm:$0xff] %v6167_v33 }
  0xd0   :  { %3784 = vmatpush1.bf16.msra.mxu1 %v6094_v37 }
  0xd1   :  { %3786 = vmatprep.subr.bf16.mxu1 %v6098_v38 }
  0xd4   :  { %3788 = vmatpush1.bf16.msra.mxu1 %v6106_v44 }
  0xd5   :  { %3790 = vmatprep.subr.bf16.mxu1 %v6109_v45 }
  0xd8   :  { %3792 = vmatpush1.bf16.msra.mxu1 %v6116_v51 }
  0xd9   :  { %3794 = vmatprep.subr.bf16.mxu1 %v6119_v52 }
  0xdc   :  { %3796 = vmatpush1.bf16.msra.mxu1 %v6125_v59 }
  0xdd   :  { %3798 = vmatprep.subr.bf16.mxu1 %v6128_v60 }
  0xe0   :  { %3800 = vmatpush1.bf16.msra.mxu1 %v6131_v4 }
  0xe1   :  { %3802 = vmatprep.subr.bf16.mxu1 %v6134_v7 }
  0xe4   :  { %3804 = vmatpush1.bf16.msra.mxu1 %v6137_v14 }
  0xe5   :  { %3806 = vmatprep.subr.bf16.mxu1 %v6140_v16 }
  0xe8   :  { %3808 = vmatpush1.bf16.msra.mxu1 %v6143_v19 }
  0xe9   :  { %3874 = vmatprep.subr.bf16.mxu1 %v6167_v33 }
 0x168   :  { %v266_v35 = vpop.f32.mrb[0].mxu0 }
 0x169   :  { %v268_v36 = vpop.f32.mrb[1].mxu0  ;;  %v267_v49 = vadd.f32 %v266_v35, %v6180_v47 }
 0x16a   :  { %v269_v50 = vadd.f32 %v268_v36, %v6184_v48  ;;  %v3545_v36 = vld [vmem:[#allocation11] ss:$0 sm:$0xff] }
 0x17e   :  { %v713_v53 = vpop.f32.mrb[16].mxu1 }
 0x17f   :  { %v789_v56 = vadd.f32 %v713_v53, %v267_v49  ;;  %v715_v57 = vpop.f32.mrb[17].mxu1 }
 0x180   :  { %v790_v58 = vadd.f32 %v715_v57, %v269_v50 }
 0x181   :  { %v3548_v1 = vmul.f32 -1.442695, %v789_v56 }
 0x182   :  { %v3549_v63 = vmul.f32 -1.442695, %v790_v58 }
 0x184   :  { %5326 = vpow2.f32 %v3549_v63  ;;  %v490_v63 = vld [vmem:[#allocation8] sm:$0xff] }
 0x185   :  { %5328 = vpow2.f32 %v3548_v1  ;;  %v494_v1 = vld [vmem:[#allocation8 + $0x20] sm:$0xff] }
 0x18e   :  { %v5327_v3 = vpop.eup %5326 }
 0x18f   :  { %v5329_v9 = vpop.eup %5328  ;;  %v802_v10 = vadd.f32 1.0, %v5327_v3  ;;  %v492_v3 = vld [vmem:[#allocation8 + $0x10] sm:$0xff] }
 0x190   :  { %v796_v17 = vadd.f32 1.0, %v5329_v9  ;;  %v496_v9 = vld [vmem:[#allocation8 + $0x30] sm:$0xff] }
 0x191   :  { %5330 = vrcp.f32 %v802_v10  ;;  %v499_v10 = vld [vmem:[#allocation8 + $0x48] sm:$0xff] }
 0x192   :  { %5332 = vrcp.f32 %v796_v17  ;;  %v503_v17 = vld [vmem:[#allocation8 + $0x68] sm:$0xff] }
 0x19b   :  { %v5331_v35 = vpop.eup %5330 }
 0x19c   :  { %v5333_v49 = vpop.eup %5332  ;;  %v812_v53 = vmul.f32 %v5331_v35, %v3545_v36  ;;  %v6205_v35 = vpack.c.bf16 %v496_v9, %v492_v3  ;;  %v498_v36 = vld [vmem:[#allocation8 + $0x40] sm:$0xff] }
 0x19d   :  { %v506_v9 = vld [vmem:[#allocation8 + $0x80] sm:$0xff] }
 0x19e   :  { %v784_v24 = vpop.f32.mrb[0].mxu1  ;;  %7589 = vst [vmem:[#allocation61_spill] sm:$0xff] %v6205_v35 }
 0x19f   :  { %v5267_v25 = vadd.f32 %v784_v24, %v6192_v11  ;;  %v786_v26 = vpop.f32.mrb[1].mxu1  ;;  %v501_v24 = vld [vmem:[#allocation8 + $0x58] sm:$0xff] }
 0x1a0   :  { %v5268_v29 = vadd.f32 %v786_v26, %v6196_v18 }
 0x1a1   :  { %5334 = vtanh.f32 %v5267_v25  ;;  %v505_v25 = vld [vmem:[#allocation8 + $0x78] sm:$0xff] }
 0x1a2   :  { %v3550_v34 = vmul.f32 -1.442695, %v5268_v29 }
 0x1a4   :  { %5336 = vpow2.f32 %v3550_v34  ;;  %v6203_v34 = vpack.c.bf16 %v494_v1, %v490_v63  ;;  %v3546_v63 = vld [vmem:[#allocation12] ss:$0 sm:$0xff] }
 0x1a6   :  { %7588 = vst [vmem:[#allocation60_spill] sm:$0xff] %v6203_v34 }
 0x1ab   :  { %v5335_v50 = vpop.eup %5334 }
 0x1ac   :  { %v813_v56 = vmul.f32 %v5335_v50, %v5333_v49  ;;  %v502_v49 = vld [vmem:[#allocation8 + $0x60] sm:$0xff] }
 0x1ad   :  { %v6217_v1 = vpack.c.bf16 %v502_v49, %v498_v36 }
 0x1ae   :  { %v5337_v57 = vpop.eup %5336  ;;  %v6200_v41 = vadd.f32 %v813_v56, %v812_v53  ;;  %v6209_v53 = vpack.c.bf16 %v503_v17, %v499_v10  ;;  %v6211_v56 = vpack.c.bf16 %v505_v25, %v501_v24  ;;  %v510_v10 = vld [vmem:[#allocation8 + $0xa0] sm:$0xff]  ;;  %v6223_v17 = vpack.c.bf16 %v511_v8, %v507_v2  ;;  %v508_v25 = vld [vmem:[#allocation8 + $0x90] sm:$0xff] }
 0x1af   :  { %v809_v58 = vadd.f32 1.0, %v5337_v57  ;;  %v500_v57 = vld [vmem:[#allocation8 + $0x50] sm:$0xff]  ;;  %7592 = vst [vmem:[#allocation64_spill] sm:$0xff] %v6217_v1  ;;  %v6225_v24 = vpack.c.bf16 %v513_v40, %v509_v43  ;;  %v6229_v36 = vpack.c.bf16 %v510_v10, %v506_v9  ;;  %v514_v2 = vld [vmem:[#allocation8 + $0xc0] sm:$0xff] }
 0x1b0   :  { %5338 = vtanh.f32 %v6200_v41  ;;  %7590 = vst [vmem:[#allocation62_spill] sm:$0xff] %v6209_v53  ;;  %7591 = vst [vmem:[#allocation63_spill] sm:$0xff] %v6211_v56  ;;  %v518_v8 = vld [vmem:[#allocation8 + $0xe0] sm:$0xff] }
 0x1b1   :  { %5340 = vrcp.f32 %v809_v58  ;;  %v504_v58 = vld [vmem:[#allocation8 + $0x70] sm:$0xff]  ;;  %7594 = vst [vmem:[#allocation66_spill] sm:$0xff] %v6223_v17  ;;  %7595 = vst [vmem:[#allocation67_spill] sm:$0xff] %v6225_v24  ;;  %v6241_v9 = vpack.c.bf16 %v518_v8, %v514_v2 }
 0x1b2   :  { %v6219_v3 = vpack.c.bf16 %v504_v58, %v500_v57  ;;  %7596 = vst [vmem:[#allocation68_spill] sm:$0xff] %v6229_v36  ;;  %v516_v57 = vld [vmem:[#allocation8 + $0xd0] sm:$0xff] }
 0x1b3   :  { %v520_v58 = vld [vmem:[#allocation8 + $0xf0] sm:$0xff]  ;;  %7600 = vst [vmem:[#allocation72_spill] sm:$0xff] %v6241_v9 }
 0x1b4   :  { %7593 = vst [vmem:[#allocation65_spill] sm:$0xff] %v6219_v3  ;;  %v6243_v10 = vpack.c.bf16 %v520_v58, %v516_v57  ;;  %v530_v57 = vld [vmem:[#allocation8 + $0x140] sm:$0xff] }
 0x1b5   :  { %v534_v58 = vld [vmem:[#allocation8 + $0x160] sm:$0xff] }
 0x1b6   :  { %7601 = vst [vmem:[#allocation73_spill] sm:$0xff] %v6243_v10 }
 0x1ba   :  { %v5339_v26 = vpop.eup %5338 }
 0x1bb   :  { %v5341_v29 = vpop.eup %5340 }
 0x1bc   :  { %v6207_v50 = vmul.f32 %v5341_v29, %v5339_v26  ;;  %v512_v26 = vld [vmem:[#allocation8 + $0xb0] sm:$0xff]  ;;  %v515_v29 = vld [vmem:[#allocation8 + $0xc8] sm:$0xff] }
 0x1bd   :  { %v6231_v49 = vpack.c.bf16 %v512_v26, %v508_v25  ;;  %v6235_v40 = vpack.c.bf16 %v519_v0, %v515_v29  ;;  %v522_v25 = vld [vmem:[#allocation8 + $0x100] sm:$0xff]  ;;  %v528_v29 = vld [vmem:[#allocation8 + $0x130] sm:$0xff] }
 0x1be   :  { %882 = vmatmul.mubr.f32.vlgmr.msra.gmra.mrb[2].mxu0 %v6207_v50  ;;  %953 = vmatmul.mubr.f32.vlgmr.msra.gmra.mrb[2].mxu1 %v6207_v50  ;;  %v526_v26 = vld [vmem:[#allocation8 + $0x120] sm:$0xff] }
 0x1bf   :  { %3812 = vmatpush1.bf16.msra.mxu0 %v6203_v34  ;;  %3876 = vmatpush1.bf16.msra.mxu1 %v6205_v35  ;;  %v521_v35 = vld [vmem:[#allocation8 + $0xf8] sm:$0xff]  ;;  %7597 = vst [vmem:[#allocation69_spill] sm:$0xff] %v6231_v49  ;;  %7598 = vst [vmem:[#allocation70_spill] sm:$0xff] %v6235_v40  ;;  %v6253_v2 = vpack.c.bf16 %v526_v26, %v522_v25  ;;  %v6265_v25 = vpack.c.bf16 %v534_v58, %v530_v57 }
 0x1c0   :  { %3814 = vmatprep.subr.bf16.mxu0 %v6209_v53  ;;  %3878 = vmatprep.subr.bf16.mxu1 %v6211_v56  ;;  %v6237_v43 = vpack.c.bf16 %v521_v35, %v517_v39  ;;  %v525_v56 = vld [vmem:[#allocation8 + $0x118] sm:$0xff]  ;;  %v524_v35 = vld [vmem:[#allocation8 + $0x110] sm:$0xff] }
 0x1c1   :  { %1048 = vmatprep.mubr.f32.mxu0 %v3546_v63  ;;  %1119 = vmatprep.mubr.f32.mxu1 %v3546_v63  ;;  %v523_v63 = vld [vmem:[#allocation8 + $0x108] sm:$0xff]  ;;  %7604 = vst [vmem:[#allocation76_spill] sm:$0xff] %v6253_v2  ;;  %v6255_v8 = vpack.c.bf16 %v528_v29, %v524_v35  ;;  %7608 = vst [vmem:[#allocation80_spill] sm:$0xff] %v6265_v25  ;;  %v538_v35 = vld [vmem:[#allocation8 + $0x180] sm:$0xff] }
 0x1c2   :  { %7599 = vst [vmem:[#allocation71_spill] sm:$0xff] %v6237_v43  ;;  %v542_v29 = vld [vmem:[#allocation8 + $0x1a0] sm:$0xff] }
 0x1c3   :  { %3816 = vmatpush1.bf16.msra.mxu0 %v6217_v1  ;;  %3880 = vmatpush1.bf16.msra.mxu1 %v6219_v3  ;;  %v527_v1 = vld [vmem:[#allocation8 + $0x128] sm:$0xff]  ;;  %v529_v3 = vld [vmem:[#allocation8 + $0x138] sm:$0xff]  ;;  %7605 = vst [vmem:[#allocation77_spill] sm:$0xff] %v6255_v8  ;;  %v6277_v57 = vpack.c.bf16 %v542_v29, %v538_v35 }
 0x1c4   :  { %3818 = vmatprep.subr.bf16.mxu0 %v6223_v17  ;;  %3882 = vmatprep.subr.bf16.mxu1 %v6225_v24  ;;  %v6247_v0 = vpack.c.bf16 %v527_v1, %v523_v63  ;;  %v6249_v39 = vpack.c.bf16 %v529_v3, %v525_v56  ;;  %v531_v24 = vld [vmem:[#allocation8 + $0x148] sm:$0xff]  ;;  %v533_v17 = vld [vmem:[#allocation8 + $0x158] sm:$0xff]  ;;  %v532_v3 = vld [vmem:[#allocation8 + $0x150] sm:$0xff] }
 0x1c5   :  { %v536_v63 = vld [vmem:[#allocation8 + $0x170] sm:$0xff]  ;;  %7612 = vst [vmem:[#allocation84_spill] sm:$0xff] %v6277_v57 }
 0x1c6   :  { %7602 = vst [vmem:[#allocation74_spill] sm:$0xff] %v6247_v0  ;;  %7603 = vst [vmem:[#allocation75_spill] sm:$0xff] %v6249_v39  ;;  %v6267_v26 = vpack.c.bf16 %v536_v63, %v532_v3  ;;  %v546_v3 = vld [vmem:[#allocation8 + $0x1c0] sm:$0xff] }
 0x1c7   :  { %3820 = vmatpush1.bf16.msra.mxu0 %v6229_v36  ;;  %3884 = vmatpush1.bf16.msra.mxu1 %v6231_v49  ;;  %v535_v36 = vld [vmem:[#allocation8 + $0x168] sm:$0xff]  ;;  %v537_v49 = vld [vmem:[#allocation8 + $0x178] sm:$0xff]  ;;  %v550_v63 = vld [vmem:[#allocation8 + $0x1e0] sm:$0xff] }
 0x1c8   :  { %3822 = vmatprep.subr.bf16.mxu0 %v6235_v40  ;;  %3886 = vmatprep.subr.bf16.mxu1 %v6237_v43  ;;  %v6259_v56 = vpack.c.bf16 %v535_v36, %v531_v24  ;;  %v6261_v1 = vpack.c.bf16 %v537_v49, %v533_v17  ;;  %v539_v43 = vld [vmem:[#allocation8 + $0x188] sm:$0xff]  ;;  %v541_v40 = vld [vmem:[#allocation8 + $0x198] sm:$0xff]  ;;  %7609 = vst [vmem:[#allocation81_spill] sm:$0xff] %v6267_v26  ;;  %v540_v36 = vld [vmem:[#allocation8 + $0x190] sm:$0xff] }
 0x1c9   :  { %v544_v49 = vld [vmem:[#allocation8 + $0x1b0] sm:$0xff]  ;;  %v6289_v35 = vpack.c.bf16 %v550_v63, %v546_v3 }
 0x1ca   :  { %7606 = vst [vmem:[#allocation78_spill] sm:$0xff] %v6259_v56  ;;  %7607 = vst [vmem:[#allocation79_spill] sm:$0xff] %v6261_v1  ;;  %v6279_v58 = vpack.c.bf16 %v544_v49, %v540_v36  ;;  %v554_v36 = vld [vmem:[#allocation8 + $0x200] sm:$0xff] }
 0x1cb   :  { %3824 = vmatpush1.bf16.msra.mxu0 %v6241_v9  ;;  %3888 = vmatpush1.bf16.msra.mxu1 %v6243_v10  ;;  %v543_v9 = vld [vmem:[#allocation8 + $0x1a8] sm:$0xff]  ;;  %v545_v10 = vld [vmem:[#allocation8 + $0x1b8] sm:$0xff]  ;;  %7616 = vst [vmem:[#allocation88_spill] sm:$0xff] %v6289_v35  ;;  %v558_v49 = vld [vmem:[#allocation8 + $0x220] sm:$0xff] }
 0x1cc   :  { %3826 = vmatprep.subr.bf16.mxu0 %v6247_v0  ;;  %3890 = vmatprep.subr.bf16.mxu1 %v6249_v39  ;;  %v6271_v17 = vpack.c.bf16 %v543_v9, %v539_v43  ;;  %v6273_v24 = vpack.c.bf16 %v545_v10, %v541_v40  ;;  %v547_v39 = vld [vmem:[#allocation8 + $0x1c8] sm:$0xff]  ;;  %v549_v0 = vld [vmem:[#allocation8 + $0x1d8] sm:$0xff]  ;;  %7613 = vst [vmem:[#allocation85_spill] sm:$0xff] %v6279_v58  ;;  %v548_v9 = vld [vmem:[#allocation8 + $0x1d0] sm:$0xff] }
 0x1cd   :  { %v552_v10 = vld [vmem:[#allocation8 + $0x1f0] sm:$0xff]  ;;  %v6301_v3 = vpack.c.bf16 %v558_v49, %v554_v36 }
 0x1ce   :  { %7610 = vst [vmem:[#allocation82_spill] sm:$0xff] %v6271_v17  ;;  %7611 = vst [vmem:[#allocation83_spill] sm:$0xff] %v6273_v24  ;;  %v6291_v29 = vpack.c.bf16 %v552_v10, %v548_v9  ;;  %v562_v9 = vld [vmem:[#allocation8 + $0x240] sm:$0xff] }
 0x1cf   :  { %3828 = vmatpush1.bf16.msra.mxu0 %v6253_v2  ;;  %3892 = vmatpush1.bf16.msra.mxu1 %v6255_v8  ;;  %v551_v2 = vld [vmem:[#allocation8 + $0x1e8] sm:$0xff]  ;;  %v553_v8 = vld [vmem:[#allocation8 + $0x1f8] sm:$0xff]  ;;  %7620 = vst [vmem:[#allocation92_spill] sm:$0xff] %v6301_v3  ;;  %v566_v10 = vld [vmem:[#allocation8 + $0x260] sm:$0xff] }
 0x1d0   :  { %3830 = vmatprep.subr.bf16.mxu0 %v6259_v56  ;;  %3894 = vmatprep.subr.bf16.mxu1 %v6261_v1  ;;  %v6283_v40 = vpack.c.bf16 %v551_v2, %v547_v39  ;;  %v6285_v43 = vpack.c.bf16 %v553_v8, %v549_v0  ;;  %v555_v1 = vld [vmem:[#allocation8 + $0x208] sm:$0xff]  ;;  %v557_v56 = vld [vmem:[#allocation8 + $0x218] sm:$0xff]  ;;  %7617 = vst [vmem:[#allocation89_spill] sm:$0xff] %v6291_v29  ;;  %v556_v2 = vld [vmem:[#allocation8 + $0x210] sm:$0xff] }
 0x1d1   :  { %v560_v8 = vld [vmem:[#allocation8 + $0x230] sm:$0xff]  ;;  %v6313_v36 = vpack.c.bf16 %v566_v10, %v562_v9 }
 0x1d2   :  { %7614 = vst [vmem:[#allocation86_spill] sm:$0xff] %v6283_v40  ;;  %7615 = vst [vmem:[#allocation87_spill] sm:$0xff] %v6285_v43  ;;  %v6303_v63 = vpack.c.bf16 %v560_v8, %v556_v2  ;;  %v570_v2 = vld [vmem:[#allocation8 + $0x280] sm:$0xff] }
 0x1d3   :  { %3832 = vmatpush1.bf16.msra.mxu0 %v6265_v25  ;;  %3896 = vmatpush1.bf16.msra.mxu1 %v6267_v26  ;;  %v559_v25 = vld [vmem:[#allocation8 + $0x228] sm:$0xff]  ;;  %v561_v26 = vld [vmem:[#allocation8 + $0x238] sm:$0xff]  ;;  %7624 = vst [vmem:[#allocation96_spill] sm:$0xff] %v6313_v36  ;;  %v574_v8 = vld [vmem:[#allocation8 + $0x2a0] sm:$0xff] }
 0x1d4   :  { %3834 = vmatprep.subr.bf16.mxu0 %v6271_v17  ;;  %3898 = vmatprep.subr.bf16.mxu1 %v6273_v24  ;;  %v6295_v0 = vpack.c.bf16 %v559_v25, %v555_v1  ;;  %v6297_v39 = vpack.c.bf16 %v561_v26, %v557_v56  ;;  %v563_v24 = vld [vmem:[#allocation8 + $0x248] sm:$0xff]  ;;  %v565_v17 = vld [vmem:[#allocation8 + $0x258] sm:$0xff]  ;;  %7621 = vst [vmem:[#allocation93_spill] sm:$0xff] %v6303_v63  ;;  %v564_v25 = vld [vmem:[#allocation8 + $0x250] sm:$0xff] }
 0x1d5   :  { %v568_v26 = vld [vmem:[#allocation8 + $0x270] sm:$0xff]  ;;  %v6325_v9 = vpack.c.bf16 %v574_v8, %v570_v2 }
 0x1d6   :  { %7618 = vst [vmem:[#allocation90_spill] sm:$0xff] %v6295_v0  ;;  %7619 = vst [vmem:[#allocation91_spill] sm:$0xff] %v6297_v39  ;;  %v6315_v49 = vpack.c.bf16 %v568_v26, %v564_v25  ;;  %v578_v25 = vld [vmem:[#allocation8 + $0x2c0] sm:$0xff] }
 0x1d7   :  { %3836 = vmatpush1.bf16.msra.mxu0 %v6277_v57  ;;  %3900 = vmatpush1.bf16.msra.mxu1 %v6279_v58  ;;  %v567_v57 = vld [vmem:[#allocation8 + $0x268] sm:$0xff]  ;;  %v569_v58 = vld [vmem:[#allocation8 + $0x278] sm:$0xff]  ;;  %7628 = vst [vmem:[#allocation100_spill] sm:$0xff] %v6325_v9  ;;  %v582_v26 = vld [vmem:[#allocation8 + $0x2e0] sm:$0xff] }
 0x1d8   :  { %3838 = vmatprep.subr.bf16.mxu0 %v6283_v40  ;;  %3902 = vmatprep.subr.bf16.mxu1 %v6285_v43  ;;  %v6307_v56 = vpack.c.bf16 %v567_v57, %v563_v24  ;;  %v6309_v1 = vpack.c.bf16 %v569_v58, %v565_v17  ;;  %v571_v43 = vld [vmem:[#allocation8 + $0x288] sm:$0xff]  ;;  %v573_v40 = vld [vmem:[#allocation8 + $0x298] sm:$0xff]  ;;  %7625 = vst [vmem:[#allocation97_spill] sm:$0xff] %v6315_v49  ;;  %v572_v57 = vld [vmem:[#allocation8 + $0x290] sm:$0xff] }
 0x1d9   :  { %v576_v58 = vld [vmem:[#allocation8 + $0x2b0] sm:$0xff]  ;;  %v6337_v2 = vpack.c.bf16 %v582_v26, %v578_v25 }
 0x1da   :  { %7622 = vst [vmem:[#allocation94_spill] sm:$0xff] %v6307_v56  ;;  %7623 = vst [vmem:[#allocation95_spill] sm:$0xff] %v6309_v1  ;;  %v6327_v10 = vpack.c.bf16 %v576_v58, %v572_v57  ;;  %v586_v57 = vld [vmem:[#allocation8 + $0x300] sm:$0xff] }
 0x1db   :  { %3840 = vmatpush1.bf16.msra.mxu0 %v6289_v35  ;;  %3904 = vmatpush1.bf16.msra.mxu1 %v6291_v29  ;;  %v575_v35 = vld [vmem:[#allocation8 + $0x2a8] sm:$0xff]  ;;  %v577_v29 = vld [vmem:[#allocation8 + $0x2b8] sm:$0xff]  ;;  %7632 = vst [vmem:[#allocation104_spill] sm:$0xff] %v6337_v2  ;;  %v590_v58 = vld [vmem:[#allocation8 + $0x320] sm:$0xff] }
 0x1dc   :  { %3842 = vmatprep.subr.bf16.mxu0 %v6295_v0  ;;  %3906 = vmatprep.subr.bf16.mxu1 %v6297_v39  ;;  %v6319_v17 = vpack.c.bf16 %v575_v35, %v571_v43  ;;  %v6321_v24 = vpack.c.bf16 %v577_v29, %v573_v40  ;;  %v579_v39 = vld [vmem:[#allocation8 + $0x2c8] sm:$0xff]  ;;  %v581_v0 = vld [vmem:[#allocation8 + $0x2d8] sm:$0xff]  ;;  %7629 = vst [vmem:[#allocation101_spill] sm:$0xff] %v6327_v10  ;;  %v580_v35 = vld [vmem:[#allocation8 + $0x2d0] sm:$0xff] }
 0x1dd   :  { %v584_v29 = vld [vmem:[#allocation8 + $0x2f0] sm:$0xff]  ;;  %v6349_v25 = vpack.c.bf16 %v590_v58, %v586_v57 }
 0x1de   :  { %7626 = vst [vmem:[#allocation98_spill] sm:$0xff] %v6319_v17  ;;  %7627 = vst [vmem:[#allocation99_spill] sm:$0xff] %v6321_v24  ;;  %v6339_v8 = vpack.c.bf16 %v584_v29, %v580_v35  ;;  %v594_v35 = vld [vmem:[#allocation8 + $0x340] sm:$0xff] }
 0x1df   :  { %3844 = vmatpush1.bf16.msra.mxu0 %v6301_v3  ;;  %3908 = vmatpush1.bf16.msra.mxu1 %v6303_v63  ;;  %v583_v3 = vld [vmem:[#allocation8 + $0x2e8] sm:$0xff]  ;;  %v585_v63 = vld [vmem:[#allocation8 + $0x2f8] sm:$0xff]  ;;  %7636 = vst [vmem:[#allocation108_spill] sm:$0xff] %v6349_v25  ;;  %v598_v29 = vld [vmem:[#allocation8 + $0x360] sm:$0xff] }
 0x1e0   :  { %3846 = vmatprep.subr.bf16.mxu0 %v6307_v56  ;;  %3910 = vmatprep.subr.bf16.mxu1 %v6309_v1  ;;  %v6331_v40 = vpack.c.bf16 %v583_v3, %v579_v39  ;;  %v6333_v43 = vpack.c.bf16 %v585_v63, %v581_v0  ;;  %v587_v1 = vld [vmem:[#allocation8 + $0x308] sm:$0xff]  ;;  %v589_v56 = vld [vmem:[#allocation8 + $0x318] sm:$0xff]  ;;  %7633 = vst [vmem:[#allocation105_spill] sm:$0xff] %v6339_v8  ;;  %v588_v3 = vld [vmem:[#allocation8 + $0x310] sm:$0xff] }
 0x1e1   :  { %v592_v63 = vld [vmem:[#allocation8 + $0x330] sm:$0xff]  ;;  %v6361_v57 = vpack.c.bf16 %v598_v29, %v594_v35 }
 0x1e2   :  { %7630 = vst [vmem:[#allocation102_spill] sm:$0xff] %v6331_v40  ;;  %7631 = vst [vmem:[#allocation103_spill] sm:$0xff] %v6333_v43  ;;  %v6351_v26 = vpack.c.bf16 %v592_v63, %v588_v3  ;;  %v602_v3 = vld [vmem:[#allocation8 + $0x380] sm:$0xff] }
 0x1e3   :  { %3848 = vmatpush1.bf16.msra.mxu0 %v6313_v36  ;;  %3912 = vmatpush1.bf16.msra.mxu1 %v6315_v49  ;;  %v591_v36 = vld [vmem:[#allocation8 + $0x328] sm:$0xff]  ;;  %v593_v49 = vld [vmem:[#allocation8 + $0x338] sm:$0xff]  ;;  %v606_v63 = vld [vmem:[#allocation8 + $0x3a0] sm:$0xff] }
 0x1e4   :  { %3850 = vmatprep.subr.bf16.mxu0 %v6319_v17  ;;  %3914 = vmatprep.subr.bf16.mxu1 %v6321_v24  ;;  %v6343_v0 = vpack.c.bf16 %v591_v36, %v587_v1  ;;  %v6345_v39 = vpack.c.bf16 %v593_v49, %v589_v56  ;;  %v595_v24 = vld [vmem:[#allocation8 + $0x348] sm:$0xff]  ;;  %v597_v17 = vld [vmem:[#allocation8 + $0x358] sm:$0xff]  ;;  %7637 = vst [vmem:[#allocation109_spill] sm:$0xff] %v6351_v26  ;;  %v596_v36 = vld [vmem:[#allocation8 + $0x350] sm:$0xff] }
 0x1e5   :  { %v600_v49 = vld [vmem:[#allocation8 + $0x370] sm:$0xff]  ;;  %v6373_v35 = vpack.c.bf16 %v606_v63, %v602_v3 }
 0x1e6   :  { %7634 = vst [vmem:[#allocation106_spill] sm:$0xff] %v6343_v0  ;;  %7635 = vst [vmem:[#allocation107_spill] sm:$0xff] %v6345_v39  ;;  %v6363_v58 = vpack.c.bf16 %v600_v49, %v596_v36  ;;  %v610_v36 = vld [vmem:[#allocation8 + $0x3c0] sm:$0xff]  ;;  %v616_v49 = vld [vmem:[#allocation8 + $0x3f0] sm:$0xff] }
 0x1e7   :  { %3852 = vmatpush1.bf16.msra.mxu0 %v6325_v9  ;;  %3916 = vmatpush1.bf16.msra.mxu1 %v6327_v10  ;;  %v599_v9 = vld [vmem:[#allocation8 + $0x368] sm:$0xff]  ;;  %v601_v10 = vld [vmem:[#allocation8 + $0x378] sm:$0xff]  ;;  %7641 = vst [vmem:[#allocation113_spill] sm:$0xff] %v6373_v35 }
 0x1e8   :  { %3854 = vmatprep.subr.bf16.mxu0 %v6331_v40  ;;  %3918 = vmatprep.subr.bf16.mxu1 %v6333_v43  ;;  %v6355_v56 = vpack.c.bf16 %v599_v9, %v595_v24  ;;  %v6357_v1 = vpack.c.bf16 %v601_v10, %v597_v17  ;;  %v603_v43 = vld [vmem:[#allocation8 + $0x388] sm:$0xff]  ;;  %v605_v40 = vld [vmem:[#allocation8 + $0x398] sm:$0xff]  ;;  %v604_v9 = vld [vmem:[#allocation8 + $0x390] sm:$0xff] }
 0x1e9   :  { %v608_v10 = vld [vmem:[#allocation8 + $0x3b0] sm:$0xff] }
 0x1ea   :  { %7638 = vst [vmem:[#allocation110_spill] sm:$0xff] %v6355_v56  ;;  %7639 = vst [vmem:[#allocation111_spill] sm:$0xff] %v6357_v1  ;;  %v6375_v29 = vpack.c.bf16 %v608_v10, %v604_v9 }
 0x1eb   :  { %3856 = vmatpush1.bf16.msra.mxu0 %v6337_v2  ;;  %3920 = vmatpush1.bf16.msra.mxu1 %v6339_v8  ;;  %v607_v2 = vld [vmem:[#allocation8 + $0x3a8] sm:$0xff]  ;;  %v609_v8 = vld [vmem:[#allocation8 + $0x3b8] sm:$0xff] }
 0x1ec   :  { %3858 = vmatprep.subr.bf16.mxu0 %v6343_v0  ;;  %3922 = vmatprep.subr.bf16.mxu1 %v6345_v39  ;;  %v6367_v17 = vpack.c.bf16 %v607_v2, %v603_v43  ;;  %v6369_v24 = vpack.c.bf16 %v609_v8, %v605_v40  ;;  %v611_v39 = vld [vmem:[#allocation8 + $0x3c8] sm:$0xff]  ;;  %v613_v0 = vld [vmem:[#allocation8 + $0x3d8] sm:$0xff]  ;;  %7642 = vst [vmem:[#allocation114_spill] sm:$0xff] %v6375_v29  ;;  %v614_v2 = vld [vmem:[#allocation8 + $0x3e0] sm:$0xff] }
 0x1ed   :  { %v612_v8 = vld [vmem:[#allocation8 + $0x3d0] sm:$0xff]  ;;  %v6385_v3 = vpack.c.bf16 %v614_v2, %v610_v36 }
 0x1ee   :  { %7640 = vst [vmem:[#allocation112_spill] sm:$0xff] %v6369_v24  ;;  %v6387_v63 = vpack.c.bf16 %v616_v49, %v612_v8 }
 0x1ef   :  { %3860 = vmatpush1.bf16.msra.mxu0 %v6349_v25  ;;  %3924 = vmatpush1.bf16.msra.mxu1 %v6351_v26  ;;  %v615_v25 = vld [vmem:[#allocation8 + $0x3e8] sm:$0xff]  ;;  %v617_v26 = vld [vmem:[#allocation8 + $0x3f8] sm:$0xff]  ;;  %7645 = vst [vmem:[#allocation117_spill] sm:$0xff] %v6385_v3 }
 0x1f0   :  { %3862 = vmatprep.subr.bf16.mxu0 %v6355_v56  ;;  %3926 = vmatprep.subr.bf16.mxu1 %v6357_v1  ;;  %v6379_v40 = vpack.c.bf16 %v615_v25, %v611_v39  ;;  %v6381_v43 = vpack.c.bf16 %v617_v26, %v613_v0  ;;  %7646 = vst [vmem:[#allocation118_spill] sm:$0xff] %v6387_v63  ;;  %v7647_v0 = vmov 0.0  }
 0x1f2   :  { %7643 = vst [vmem:[#allocation115_spill] sm:$0xff] %v6379_v40  ;;  %7644 = vst [vmem:[#allocation116_spill] sm:$0xff] %v6381_v43 }
 0x1f3   :  { %3864 = vmatpush1.bf16.msra.mxu0 %v6361_v57  ;;  %3928 = vmatpush1.bf16.msra.mxu1 %v6363_v58 }
 0x1f4   :  { %3866 = vmatprep.subr.bf16.mxu0 %v6367_v17  ;;  %3930 = vmatprep.subr.bf16.mxu1 %v6369_v24 }
 0x1f7   :  { %3868 = vmatpush1.bf16.msra.mxu0 %v6373_v35  ;;  %3932 = vmatpush1.bf16.msra.mxu1 %v6375_v29 }
 0x1f8   :  { %3870 = vmatprep.subr.bf16.mxu0 %v6379_v40  ;;  %3934 = vmatprep.subr.bf16.mxu1 %v6381_v43 }
 0x1fb   :  { %3872 = vmatpush1.bf16.msra.mxu0 %v6385_v3  ;;  %3936 = vmatpush1.bf16.msra.mxu1 %v6387_v63 }
 0x1fc   :  { %3938 = vmatprep.subr.bf16.mxu0 %v5948_v15  ;;  %3970 = vmatprep.subr.bf16.mxu1 %v6067_v23 }
 0x1fe   :  { %1049 = vmatmul.mubr.f32.vlgmr.msra.gmra.mrb[16].mxu0 %v6207_v50  ;;  %1120 = vmatmul.mubr.f32.vlgmr.msra.gmra.mrb[18].mxu1 %v6207_v50 }
 0x1ff   :  { %3940 = vmatpush1.bf16.msra.mxu0 %v5955_v21  ;;  %3972 = vmatpush1.bf16.msra.mxu1 %v6082_v30 }
 0x200   :  { %3942 = vmatprep.subr.bf16.mxu0 %v5958_v22  ;;  %3974 = vmatprep.subr.bf16.mxu1 %v6085_v31 }
 0x201   :  { %1239 = vmatprep.mubr.f32.mxu0 %v7647_v0  ;;  %1310 = vmatprep.mubr.f32.mxu1 %v7647_v0 }
 0x203   :  { %3944 = vmatpush1.bf16.msra.mxu0 %v5969_v28  ;;  %3976 = vmatpush1.bf16.msra.mxu1 %v6094_v37 }
 0x204   :  { %3946 = vmatprep.subr.bf16.mxu0 %v5972_v32  ;;  %3978 = vmatprep.subr.bf16.mxu1 %v6098_v38 }
 0x207   :  { %3948 = vmatpush1.bf16.msra.mxu0 %v5983_v42  ;;  %3980 = vmatpush1.bf16.msra.mxu1 %v6106_v44 }
 0x208   :  { %3950 = vmatprep.subr.bf16.mxu0 %v5986_v46  ;;  %3982 = vmatprep.subr.bf16.mxu1 %v6109_v45 }
 0x20b   :  { %3952 = vmatpush1.bf16.msra.mxu0 %v5997_v54  ;;  %3984 = vmatpush1.bf16.msra.mxu1 %v6116_v51 }
 0x20c   :  { %3954 = vmatprep.subr.bf16.mxu0 %v6000_v55  ;;  %3986 = vmatprep.subr.bf16.mxu1 %v6119_v52 }
 0x20f   :  { %3956 = vmatpush1.bf16.msra.mxu0 %v6012_v61  ;;  %3988 = vmatpush1.bf16.msra.mxu1 %v6125_v59 }
 0x210   :  { %3958 = vmatprep.subr.bf16.mxu0 %v6015_v62  ;;  %3990 = vmatprep.subr.bf16.mxu1 %v6128_v60 }
 0x213   :  { %3960 = vmatpush1.bf16.msra.mxu0 %v6031_v5  ;;  %3992 = vmatpush1.bf16.msra.mxu1 %v6131_v4 }
 0x214   :  { %3962 = vmatprep.subr.bf16.mxu0 %v6034_v6  ;;  %3994 = vmatprep.subr.bf16.mxu1 %v6134_v7 }
 0x217   :  { %3964 = vmatpush1.bf16.msra.mxu0 %v6048_v12  ;;  %3996 = vmatpush1.bf16.msra.mxu1 %v6137_v14 }
 0x218   :  { %3966 = vmatprep.subr.bf16.mxu0 %v6051_v13  ;;  %3998 = vmatprep.subr.bf16.mxu1 %v6140_v16 }
 0x21b   :  { %3968 = vmatpush1.bf16.msra.mxu0 %v6064_v20  ;;  %4000 = vmatpush1.bf16.msra.mxu1 %v6143_v19 }
 0x21c   :  { %4002 = vmatprep.subr.bf16.mxu0 %v6165_v27  ;;  %4066 = vmatprep.subr.bf16.mxu1 %v6167_v33 }
 0x291   :  { %v883_v50 = vpop.f32.mrb[2].mxu0  ;;  %v954_v39 = vpop.f32.mrb[2].mxu1 }
 0x292   :  { %v5253_v25 = vadd.f32 %v883_v50, %v6180_v47  ;;  %v885_v26 = vpop.f32.mrb[3].mxu0  ;;  %v956_v9 = vpop.f32.mrb[3].mxu1  ;;  %v5269_v19 = vadd.f32 %v954_v39, %v6192_v11  ;;  %v7674_v11 = vld [vmem:[#allocation80_spill] sm:$0xff] }
 0x293   :  { %v5254_v10 = vadd.f32 %v885_v26, %v6184_v48  ;;  %v5270_v8 = vadd.f32 %v956_v9, %v6196_v18 }
 0x294   :  { %v3551_v36 = vmul.f32 -1.442695, %v5253_v25 }
 0x295   :  { %v3552_v2 = vmul.f32 -1.442695, %v5254_v10  ;;  %v3553_v49 = vmul.f32 -1.442695, %v5270_v8 }
 0x296   :  { %5342 = vpow2.f32 %v3551_v36 }
 0x297   :  { %5344 = vpow2.f32 %v3552_v2 }
 0x298   :  { %5346 = vpow2.f32 %v3553_v49  ;;  %v7655_v49 = vld [vmem:[#allocation68_spill] sm:$0xff] }
 0x299   :  { %5348 = vtanh.f32 %v5269_v19  ;;  %v7651_v19 = vld [vmem:[#allocation64_spill] sm:$0xff] }
 0x2a0   :  { %v5343_v27 = vpop.eup %5342 }
 0x2a1   :  { %v5345_v20 = vpop.eup %5344  ;;  %v1129_v33 = vadd.f32 1.0, %v5343_v27 }
 0x2a2   :  { %v1135_v16 = vadd.f32 1.0, %v5345_v20  ;;  %v5347_v50 = vpop.eup %5346  ;;  %v7649_v20 = vld [vmem:[#allocation61_spill] sm:$0xff] }
 0x2a3   :  { %5350 = vrcp.f32 %v1129_v33  ;;  %v5349_v47 = vpop.eup %5348  ;;  %v1142_v36 = vadd.f32 1.0, %v5347_v50  ;;  %v7652_v33 = vld [vmem:[#allocation65_spill] sm:$0xff] }
 0x2a4   :  { %5352 = vrcp.f32 %v1135_v16  ;;  %v7650_v16 = vld [vmem:[#allocation63_spill] sm:$0xff]  ;;  %v7656_v50 = vld [vmem:[#allocation69_spill] sm:$0xff] }
 0x2a5   :  { %5354 = vrcp.f32 %v1142_v36  ;;  %v7659_v36 = vld [vmem:[#allocation72_spill] sm:$0xff] }
 0x2ad   :  { %v5351_v26 = vpop.eup %5350 }
 0x2ae   :  { %v5353_v25 = vpop.eup %5352  ;;  %v1146_v10 = vmul.f32 %v5351_v26, %v5349_v47  ;;  %v7653_v47 = vld [vmem:[#allocation66_spill] sm:$0xff] }
 0x2af   :  { %v1145_v2 = vmul.f32 %v5353_v25, %v6200_v41  ;;  %v5355_v39 = vpop.eup %5354  ;;  %v7654_v41 = vld [vmem:[#allocation67_spill] sm:$0xff]  ;;  %v7657_v26 = vld [vmem:[#allocation70_spill] sm:$0xff] }
 0x2b0   :  { %v7658_v25 = vld [vmem:[#allocation71_spill] sm:$0xff] }
 0x2b1   :  { %v6436_v9 = vadd.f32 %v1146_v10, %v1145_v2  ;;  %v618_v10 = vld [vmem:[#allocation9] sm:$0xf]  ;;  %v7660_v2 = vld [vmem:[#allocation73_spill] sm:$0xff] }
 0x2b3   :  { %7648 = vst [vmem:[#allocation119_spill] sm:$0xff] %v6436_v9  ;;  %5356 = vtanh.f32 %v6436_v9 }
 0x2bd   :  { %v5357_v27 = vpop.eup %5356 }
 0x2be   :  { %v6439_v8 = vmul.f32 %v5357_v27, %v5355_v39  ;;  %v7661_v39 = vld [vmem:[#allocation55_spill] sm:$0xff] }
 0x2bf   :  { %v7662_v27 = vsub.s32 0, %v7661_v39 }
 0x2c0   :  { %1240 = vmatmul.mubr.f32.vlgmr.msra.gmra.mrb[4].mxu0 %v6439_v8  ;;  %1311 = vmatmul.mubr.f32.vlgmr.msra.gmra.mrb[4].mxu1 %v6439_v8 }
 0x2c1   :  { %4004 = vmatpush1.bf16.msra.mxu0 %v6203_v34  ;;  %4068 = vmatpush1.bf16.msra.mxu1 %v7649_v20  ;;  %v7671_v20 = vld [vmem:[#allocation79_spill] sm:$0xff] }
 0x2c2   :  { %4006 = vmatprep.subr.bf16.mxu0 %v6209_v53  ;;  %4070 = vmatprep.subr.bf16.mxu1 %v7650_v16  ;;  %v7669_v16 = vld [vmem:[#allocation77_spill] sm:$0xff] }
 0x2c5   :  { %4008 = vmatpush1.bf16.msra.mxu0 %v7651_v19  ;;  %4072 = vmatpush1.bf16.msra.mxu1 %v7652_v33  ;;  %v6459_v33 = vrot.slane %v618_v10, %v7662_v27  ;;  %v7670_v27 = vld [vmem:[#allocation78_spill] sm:$0xff] }
 0x2c6   :  { %4010 = vmatprep.subr.bf16.mxu0 %v7653_v47  ;;  %4074 = vmatprep.subr.bf16.mxu1 %v7654_v41  ;;  %v7664_v47 = vld [vmem:[#allocation74_spill] sm:$0xff]  ;;  %v7665_v41 = vld [vmem:[#allocation75_spill] sm:$0xff] }
 0x2c7   :  { %7663 = vst [vmem:[#allocation55_spill] sm:$0xff] %v6459_v33 }
 0x2c9   :  { %4012 = vmatpush1.bf16.msra.mxu0 %v7655_v49  ;;  %4076 = vmatpush1.bf16.msra.mxu1 %v7656_v50  ;;  %v7666_v49 = vsub.s32 1, %v7661_v39 }
 0x2ca   :  { %4014 = vmatprep.subr.bf16.mxu0 %v7657_v26  ;;  %4078 = vmatprep.subr.bf16.mxu1 %v7658_v25  ;;  %v7668_v25 = vld [vmem:[#allocation76_spill] sm:$0xff] }
 0x2cb   :  { %v6465_v50 = vrot.slane %v618_v10, %v7666_v49  ;;  %v7672_v49 = vsub.s32 3, %v7661_v39 }
 0x2cd   :  { %4016 = vmatpush1.bf16.msra.mxu0 %v7659_v36  ;;  %4080 = vmatpush1.bf16.msra.mxu1 %v7660_v2  ;;  %7667 = vst [vmem:[#allocation120_spill] sm:$0xff] %v6465_v50  ;;  %v6475_v9 = vrot.slane %v618_v10, %v7672_v49  ;;  %v7682_v49 = vld [vmem:[#allocation86_spill] sm:$0xff] }
 0x2ce   :  { %4018 = vmatprep.subr.bf16.mxu0 %v7664_v47  ;;  %4082 = vmatprep.subr.bf16.mxu1 %v7665_v41 }
 0x2cf   :  { %7673 = vst [vmem:[#allocation121_spill] sm:$0xff] %v6475_v9 }
 0x2d1   :  { %v1050_v26 = vpop.f32.mrb[16].mxu0  ;;  %v1121_v19 = vpop.f32.mrb[18].mxu1  ;;  %4020 = vmatpush1.bf16.msra.mxu0 %v7668_v25  ;;  %4084 = vmatpush1.bf16.msra.mxu1 %v7669_v16  ;;  %v7675_v25 = vld [vmem:[#allocation81_spill] sm:$0xff] }
 0x2d2   :  { %v1051_v2 = vadd.f32 %v1050_v26, %v6459_v33  ;;  %v1052_v36 = vpop.f32.mrb[17].mxu0  ;;  %v1123_v53 = vpop.f32.mrb[19].mxu1  ;;  %4022 = vmatprep.subr.bf16.mxu0 %v7670_v27  ;;  %4086 = vmatprep.subr.bf16.mxu1 %v7671_v20  ;;  %v7676_v26 = vld [vmem:[#allocation82_spill] sm:$0xff]  ;;  %v7677_v33 = vld [vmem:[#allocation83_spill] sm:$0xff]  ;;  %v7678_v27 = vld [vmem:[#allocation84_spill] sm:$0xff] }
 0x2d3   :  { %v1053_v41 = vadd.f32 %v1052_v36, %v6465_v50  ;;  %v1124_v20 = vadd.f32 %v1123_v53, %v6475_v9  ;;  %v7679_v36 = vld [vmem:[#allocation85_spill] sm:$0xff]  ;;  %v7686_v53 = vld [vmem:[#allocation90_spill] sm:$0xff]  ;;  %v7687_v9 = vld [vmem:[#allocation91_spill] sm:$0xff] }
 0x2d4   :  { %v3554_v47 = vmul.f32 -1.442695, %v1051_v2 }
 0x2d5   :  { %v3555_v34 = vmul.f32 -1.442695, %v1053_v41  ;;  %4024 = vmatpush1.bf16.msra.mxu0 %v7674_v11  ;;  %4088 = vmatpush1.bf16.msra.mxu1 %v7675_v25  ;;  %v7680_v41 = vsub.s32 2, %v7661_v39  ;;  %v7683_v11 = vld [vmem:[#allocation87_spill] sm:$0xff]  ;;  %v7684_v25 = vld [vmem:[#allocation88_spill] sm:$0xff] }
 0x2d6   :  { %5358 = vpow2.f32 %v3554_v47  ;;  %4026 = vmatprep.subr.bf16.mxu0 %v7676_v26  ;;  %4090 = vmatprep.subr.bf16.mxu1 %v7677_v33  ;;  %v3556_v47 = vmul.f32 -1.442695, %v1124_v20  ;;  %v7685_v26 = vld [vmem:[#allocation89_spill] sm:$0xff] }
 0x2d7   :  { %5360 = vpow2.f32 %v3555_v34  ;;  %v6486_v2 = vrot.slane %v618_v10, %v7680_v41  ;;  %v7688_v10 = vld [vmem:[#allocation92_spill] sm:$0xff]  ;;  %v7689_v41 = vld [vmem:[#allocation93_spill] sm:$0xff] }
 0x2d8   :  { %5362 = vpow2.f32 %v3556_v47  ;;  %v7696_v47 = vld [vmem:[#allocation100_spill] sm:$0xff] }
 0x2d9   :  { %4028 = vmatpush1.bf16.msra.mxu0 %v7678_v27  ;;  %4092 = vmatpush1.bf16.msra.mxu1 %v7679_v36  ;;  %7681 = vst [vmem:[#allocation122_spill] sm:$0xff] %v6486_v2  ;;  %v1122_v34 = vadd.f32 %v1121_v19, %v6486_v2  ;;  %v7692_v19 = vld [vmem:[#allocation96_spill] sm:$0xff]  ;;  %v7693_v2 = vld [vmem:[#allocation97_spill] sm:$0xff] }
 0x2da   :  { %4030 = vmatprep.subr.bf16.mxu0 %v7682_v49  ;;  %4094 = vmatprep.subr.bf16.mxu1 %v7683_v11  ;;  %v7690_v11 = vld [vmem:[#allocation94_spill] sm:$0xff] }
 0x2db   :  { %5364 = vtanh.f32 %v1122_v34  ;;  %v7698_v34 = vld [vmem:[#allocation102_spill] sm:$0xff] }
 0x2dd   :  { %4032 = vmatpush1.bf16.msra.mxu0 %v7684_v25  ;;  %4096 = vmatpush1.bf16.msra.mxu1 %v7685_v26  ;;  %v7691_v25 = vld [vmem:[#allocation95_spill] sm:$0xff]  ;;  %v7704_v26 = vld [vmem:[#allocation108_spill] sm:$0xff] }
 0x2de   :  { %4034 = vmatprep.subr.bf16.mxu0 %v7686_v53  ;;  %4098 = vmatprep.subr.bf16.mxu1 %v7687_v9  ;;  %v7694_v9 = vld [vmem:[#allocation98_spill] sm:$0xff] }
 0x2e0   :  { %v5359_v36 = vpop.eup %5358 }
 0x2e1   :  { %v5361_v27 = vpop.eup %5360  ;;  %v1153_v39 = vadd.f32 1.0, %v5359_v36  ;;  %4036 = vmatpush1.bf16.msra.mxu0 %v7688_v10  ;;  %4100 = vmatpush1.bf16.msra.mxu1 %v7689_v41  ;;  %v7695_v36 = vld [vmem:[#allocation99_spill] sm:$0xff]  ;;  %v7697_v10 = vld [vmem:[#allocation101_spill] sm:$0xff]  ;;  %v7700_v41 = vld [vmem:[#allocation104_spill] sm:$0xff] }
 0x2e2   :  { %v1159_v20 = vadd.f32 1.0, %v5361_v27  ;;  %4038 = vmatprep.subr.bf16.mxu0 %v7690_v11  ;;  %4102 = vmatprep.subr.bf16.mxu1 %v7691_v25  ;;  %v7699_v27 = vld [vmem:[#allocation103_spill] sm:$0xff]  ;;  %v5363_v11 = vpop.eup %5362 }
 0x2e3   :  { %5366 = vrcp.f32 %v1153_v39  ;;  %v3547_v39 = vld [vmem:[#allocation14] ss:$0 sm:$0xff]  ;;  %v1166_v53 = vadd.f32 1.0, %v5363_v11 }
 0x2e4   :  { %5368 = vrcp.f32 %v1159_v20 }
 0x2e5   :  { %4040 = vmatpush1.bf16.msra.mxu0 %v7692_v19  ;;  %4104 = vmatpush1.bf16.msra.mxu1 %v7693_v2  ;;  %v5365_v25 = vpop.eup %5364  ;;  %v7701_v19 = vld [vmem:[#allocation105_spill] sm:$0xff]  ;;  %5370 = vrcp.f32 %v1166_v53  ;;  %v7709_v53 = vld [vmem:[#allocation52_spill] sm:$0xff] }
 0x2e6   :  { %4042 = vmatprep.subr.bf16.mxu0 %v7694_v9  ;;  %4106 = vmatprep.subr.bf16.mxu1 %v7695_v36  ;;  %v7702_v36 = vld [vmem:[#allocation106_spill] sm:$0xff] }
 0x2e9   :  { %4044 = vmatpush1.bf16.msra.mxu0 %v7696_v47  ;;  %4108 = vmatpush1.bf16.msra.mxu1 %v7697_v10  ;;  %v7703_v47 = vld [vmem:[#allocation107_spill] sm:$0xff] }
 0x2ea   :  { %4046 = vmatprep.subr.bf16.mxu0 %v7698_v34  ;;  %4110 = vmatprep.subr.bf16.mxu1 %v7699_v27  ;;  %v7705_v34 = vld [vmem:[#allocation109_spill] sm:$0xff] }
 0x2ed   :  { %v5367_v20 = vpop.eup %5366  ;;  %4048 = vmatpush1.bf16.msra.mxu0 %v7700_v41  ;;  %4112 = vmatpush1.bf16.msra.mxu1 %v7701_v19 }
 0x2ee   :  { %v5369_v2 = vpop.eup %5368  ;;  %v1170_v9 = vmul.f32 %v5367_v20, %v5365_v25  ;;  %4050 = vmatprep.subr.bf16.mxu0 %v7702_v36  ;;  %4114 = vmatprep.subr.bf16.mxu1 %v7703_v47 }
 0x2ef   :  { %v1169_v10 = vmul.f32 %v5369_v2, %v3547_v39  ;;  %v5371_v11 = vpop.eup %5370  ;;  %v7708_v2 = vld [vmem:[#allocation36_spill] sm:$0xff]  ;;  %v7711_v39 = vld [vmem:[#allocation54_spill] sm:$0xff] }
 0x2f1   :  { %4052 = vmatpush1.bf16.msra.mxu0 %v7704_v26  ;;  %4116 = vmatpush1.bf16.msra.mxu1 %v7705_v34  ;;  %v6513_v27 = vadd.f32 %v1170_v9, %v1169_v10  ;;  %v7710_v10 = vld [vmem:[#allocation53_spill] sm:$0xff] }
 0x2f2   :  { %4054 = vmatprep.subr.bf16.mxu0 %v6355_v56  ;;  %4118 = vmatprep.subr.bf16.mxu1 %v6357_v1 }
 0x2f3   :  { %5372 = vtanh.f32 %v6513_v27 }
 0x2f5   :  { %4056 = vmatpush1.bf16.msra.mxu0 %v6361_v57  ;;  %4120 = vmatpush1.bf16.msra.mxu1 %v6363_v58 }
 0x2f6   :  { %4058 = vmatprep.subr.bf16.mxu0 %v6367_v17  ;;  %4122 = vmatprep.subr.bf16.mxu1 %v6369_v24 }
 0x2f9   :  { %4060 = vmatpush1.bf16.msra.mxu0 %v6373_v35  ;;  %4124 = vmatpush1.bf16.msra.mxu1 %v6375_v29 }
 0x2fa   :  { %4062 = vmatprep.subr.bf16.mxu0 %v6379_v40  ;;  %4126 = vmatprep.subr.bf16.mxu1 %v6381_v43 }
 0x2fd   :  { %v5373_v9 = vpop.eup %5372  ;;  %4064 = vmatpush1.bf16.msra.mxu0 %v6385_v3  ;;  %4128 = vmatpush1.bf16.msra.mxu1 %v6387_v63 }
 0x2fe   :  { %v6528_v25 = vmul.f32 %v5373_v9, %v5371_v11  ;;  %4130 = vmatprep.subr.bf16.mxu0 %v5948_v15  ;;  %4162 = vmatprep.subr.bf16.mxu1 %v6067_v23  ;;  %v7712_v9 = vld [vmem:[#allocation56_spill] sm:$0xff] }
 0x300   :  { %7706 = vst [vmem:[#allocation106_spill] sm:$0xff] %v6528_v25  ;;  %1385 = vmatprep.mubr.f32.mxu0 %v6528_v25  ;;  %1456 = vmatprep.mubr.f32.mxu1 %v6528_v25 }
 0x301   :  { %1386 = vmatmul.mubr.f32.vlgmr.msra.gmra.mrb[18].mxu0 %v6439_v8  ;;  %1457 = vmatmul.mubr.f32.vlgmr.msra.gmra.mrb[20].mxu1 %v6439_v8  ;;  %v7707_v8 = vld [vmem:[#allocation51_spill] sm:$0xff] }
 0x302   :  { %4132 = vmatpush1.bf16.msra.mxu0 %v5955_v21  ;;  %4164 = vmatpush1.bf16.msra.mxu1 %v6082_v30 }
 0x303   :  { %4134 = vmatprep.subr.bf16.mxu0 %v5958_v22  ;;  %4166 = vmatprep.subr.bf16.mxu1 %v6085_v31 }
 0x304   :  { %1576 = vmatprep.mubr.f32.mxu0 %v7647_v0  ;;  %1647 = vmatprep.mubr.f32.mxu1 %v7647_v0 }
 0x306   :  { %4136 = vmatpush1.bf16.msra.mxu0 %v5969_v28  ;;  %4168 = vmatpush1.bf16.msra.mxu1 %v6094_v37 }
 0x307   :  { %4138 = vmatprep.subr.bf16.mxu0 %v5972_v32  ;;  %4170 = vmatprep.subr.bf16.mxu1 %v6098_v38 }
 0x30a   :  { %4140 = vmatpush1.bf16.msra.mxu0 %v5983_v42  ;;  %4172 = vmatpush1.bf16.msra.mxu1 %v6106_v44 }
 0x30b   :  { %4142 = vmatprep.subr.bf16.mxu0 %v5986_v46  ;;  %4174 = vmatprep.subr.bf16.mxu1 %v6109_v45 }
 0x30e   :  { %4144 = vmatpush1.bf16.msra.mxu0 %v5997_v54  ;;  %4176 = vmatpush1.bf16.msra.mxu1 %v6116_v51 }
 0x30f   :  { %4146 = vmatprep.subr.bf16.mxu0 %v6000_v55  ;;  %4178 = vmatprep.subr.bf16.mxu1 %v6119_v52 }
 0x312   :  { %4148 = vmatpush1.bf16.msra.mxu0 %v6012_v61  ;;  %4180 = vmatpush1.bf16.msra.mxu1 %v6125_v59 }
 0x313   :  { %4150 = vmatprep.subr.bf16.mxu0 %v6015_v62  ;;  %4182 = vmatprep.subr.bf16.mxu1 %v6128_v60 }
 0x316   :  { %4152 = vmatpush1.bf16.msra.mxu0 %v6031_v5  ;;  %4184 = vmatpush1.bf16.msra.mxu1 %v6131_v4 }
 0x317   :  { %4154 = vmatprep.subr.bf16.mxu0 %v6034_v6  ;;  %4186 = vmatprep.subr.bf16.mxu1 %v6134_v7 }
 0x31a   :  { %4156 = vmatpush1.bf16.msra.mxu0 %v6048_v12  ;;  %4188 = vmatpush1.bf16.msra.mxu1 %v6137_v14 }
 0x31b   :  { %4158 = vmatprep.subr.bf16.mxu0 %v6051_v13  ;;  %4190 = vmatprep.subr.bf16.mxu1 %v7707_v8 }
 0x31e   :  { %4160 = vmatpush1.bf16.msra.mxu0 %v7708_v2  ;;  %4192 = vmatpush1.bf16.msra.mxu1 %v7709_v53  ;;  %v7713_v53 = vld [vmem:[#allocation58_spill] sm:$0xff] }
 0x31f   :  { %4194 = vmatprep.subr.bf16.mxu0 %v7710_v10  ;;  %4258 = vmatprep.subr.bf16.mxu1 %v7711_v39 }
 0x393   :  { %v1241_v20 = vpop.f32.mrb[4].mxu0  ;;  %v1312_v11 = vpop.f32.mrb[4].mxu1 }
 0x394   :  { %v5255_v25 = vadd.f32 %v1241_v20, %v7712_v9  ;;  %v1243_v7 = vpop.f32.mrb[5].mxu0  ;;  %v1314_v12 = vpop.f32.mrb[5].mxu1  ;;  %v5271_v4 = vadd.f32 %v1312_v11, %v7713_v53  ;;  %v7720_v11 = vld [vmem:[#allocation65_spill] sm:$0xff] }
 0x395   :  { %v5256_v14 = vadd.f32 %v1243_v7, %v6184_v48  ;;  %v5272_v2 = vadd.f32 %v1314_v12, %v6196_v18 }
 0x396   :  { %v3557_v6 = vmul.f32 -1.442695, %v5255_v25 }
 0x397   :  { %v3558_v13 = vmul.f32 -1.442695, %v5256_v14  ;;  %v3559_v8 = vmul.f32 -1.442695, %v5272_v2 }
 0x398   :  { %5374 = vpow2.f32 %v3557_v6 }
 0x399   :  { %5376 = vpow2.f32 %v3558_v13  ;;  %v7714_v13 = vld [vmem:[#allocation119_spill] sm:$0xff] }
 0x39a   :  { %5378 = vpow2.f32 %v3559_v8 }
 0x39b   :  { %5380 = vtanh.f32 %v5271_v4  ;;  %v7717_v4 = vld [vmem:[#allocation62_spill] sm:$0xff] }
 0x3a2   :  { %v5375_v10 = vpop.eup %5374 }
 0x3a3   :  { %v5377_v5 = vpop.eup %5376  ;;  %v1466_v39 = vadd.f32 1.0, %v5375_v10 }
 0x3a4   :  { %v1472_v60 = vadd.f32 1.0, %v5377_v5  ;;  %v5379_v20 = vpop.eup %5378  ;;  %v7715_v5 = vld [vmem:[#allocation60_spill] sm:$0xff] }
 0x3a5   :  { %5382 = vrcp.f32 %v1466_v39  ;;  %v5381_v9 = vpop.eup %5380  ;;  %v1479_v6 = vadd.f32 1.0, %v5379_v20  ;;  %v7718_v39 = vld [vmem:[#allocation63_spill] sm:$0xff] }
 0x3a6   :  { %5384 = vrcp.f32 %v1472_v60  ;;  %v7716_v60 = vld [vmem:[#allocation61_spill] sm:$0xff]  ;;  %v7722_v20 = vld [vmem:[#allocation67_spill] sm:$0xff] }
 0x3a7   :  { %5386 = vrcp.f32 %v1479_v6  ;;  %v7726_v6 = vld [vmem:[#allocation71_spill] sm:$0xff] }
 0x3af   :  { %v5383_v7 = vpop.eup %5382 }
 0x3b0   :  { %v5385_v25 = vpop.eup %5384  ;;  %v1483_v14 = vmul.f32 %v5383_v7, %v5381_v9  ;;  %v7721_v9 = vld [vmem:[#allocation66_spill] sm:$0xff]  ;;  %v7723_v7 = vld [vmem:[#allocation68_spill] sm:$0xff] }
 0x3b1   :  { %v1482_v48 = vmul.f32 %v5385_v25, %v7714_v13  ;;  %v5387_v2 = vpop.eup %5386  ;;  %v7724_v25 = vld [vmem:[#allocation69_spill] sm:$0xff]  ;;  %v7727_v13 = vld [vmem:[#allocation72_spill] sm:$0xff] }
 0x3b3   :  { %v6575_v12 = vadd.f32 %v1483_v14, %v1482_v48  ;;  %v7719_v48 = vld [vmem:[#allocation64_spill] sm:$0xff]  ;;  %v7725_v14 = vld [vmem:[#allocation70_spill] sm:$0xff] }
 0x3b5   :  { %5388 = vtanh.f32 %v6575_v12 }
 0x3bf   :  { %v5389_v10 = vpop.eup %5388 }
 0x3c0   :  { %v6578_v8 = vmul.f32 %v5389_v10, %v5387_v2  ;;  %v7728_v2 = vld [vmem:[#allocation73_spill] sm:$0xff]  ;;  %v7729_v10 = vld [vmem:[#allocation74_spill] sm:$0xff] }
 0x3c2   :  { %1577 = vmatmul.mubr.f32.vlgmr.msra.gmra.mrb[6].mxu0 %v6578_v8  ;;  %1648 = vmatmul.mubr.f32.vlgmr.msra.gmra.mrb[6].mxu1 %v6578_v8 }
 0x3c3   :  { %4196 = vmatpush1.bf16.msra.mxu0 %v7715_v5  ;;  %4260 = vmatpush1.bf16.msra.mxu1 %v7716_v60  ;;  %v7737_v60 = vld [vmem:[#allocation82_spill] sm:$0xff] }
 0x3c4   :  { %4198 = vmatprep.subr.bf16.mxu0 %v7717_v4  ;;  %4262 = vmatprep.subr.bf16.mxu1 %v7718_v39 }
 0x3c7   :  { %4200 = vmatpush1.bf16.msra.mxu0 %v7719_v48  ;;  %4264 = vmatpush1.bf16.msra.mxu1 %v7720_v11  ;;  %v7730_v48 = vld [vmem:[#allocation75_spill] sm:$0xff]  ;;  %v7731_v11 = vld [vmem:[#allocation76_spill] sm:$0xff] }
 0x3c8   :  { %4202 = vmatprep.subr.bf16.mxu0 %v7721_v9  ;;  %4266 = vmatprep.subr.bf16.mxu1 %v7722_v20  ;;  %v7732_v9 = vld [vmem:[#allocation78_spill] sm:$0xff] }
 0x3cb   :  { %4204 = vmatpush1.bf16.msra.mxu0 %v7723_v7  ;;  %4268 = vmatpush1.bf16.msra.mxu1 %v7724_v25  ;;  %v7733_v25 = vld [vmem:[#allocation79_spill] sm:$0xff] }
 0x3cc   :  { %4206 = vmatprep.subr.bf16.mxu0 %v7725_v14  ;;  %4270 = vmatprep.subr.bf16.mxu1 %v7726_v6  ;;  %v7734_v14 = vld [vmem:[#allocation55_spill] sm:$0xff] }
 0x3cf   :  { %4208 = vmatpush1.bf16.msra.mxu0 %v7727_v13  ;;  %4272 = vmatpush1.bf16.msra.mxu1 %v7728_v2 }
 0x3d0   :  { %4210 = vmatprep.subr.bf16.mxu0 %v7729_v10  ;;  %4274 = vmatprep.subr.bf16.mxu1 %v7730_v48  ;;  %v7735_v10 = vld [vmem:[#allocation80_spill] sm:$0xff]  ;;  %v7736_v48 = vld [vmem:[#allocation81_spill] sm:$0xff] }
 0x3d3   :  { %4212 = vmatpush1.bf16.msra.mxu0 %v7731_v11  ;;  %4276 = vmatpush1.bf16.msra.mxu1 %v7669_v16 }
 0x3d4   :  { %v1387_v20 = vpop.f32.mrb[18].mxu0  ;;  %v1458_v7 = vpop.f32.mrb[20].mxu1  ;;  %4214 = vmatprep.subr.bf16.mxu0 %v7732_v9  ;;  %4278 = vmatprep.subr.bf16.mxu1 %v7733_v25  ;;  %v7738_v9 = vld [vmem:[#allocation84_spill] sm:$0xff]  ;;  %v7739_v25 = vld [vmem:[#allocation85_spill] sm:$0xff] }
 0x3d5   :  { %v1388_v6 = vadd.f32 %v1387_v20, %v7734_v14  ;;  %v1389_v39 = vpop.f32.mrb[19].mxu0  ;;  %v1460_v13 = vpop.f32.mrb[21].mxu1  ;;  %v7740_v20 = vld [vmem:[#allocation121_spill] sm:$0xff] }
 0x3d6   :  { %v1390_v2 = vadd.f32 %v1389_v39, %v6465_v50  ;;  %v1461_v14 = vadd.f32 %v1460_v13, %v7740_v20  ;;  %v7741_v39 = vld [vmem:[#allocation87_spill] sm:$0xff] }
 0x3d7   :  { %v3560_v4 = vmul.f32 -1.442695, %v1388_v6  ;;  %4216 = vmatpush1.bf16.msra.mxu0 %v7735_v10  ;;  %4280 = vmatpush1.bf16.msra.mxu1 %v7736_v48  ;;  %v7742_v6 = vld [vmem:[#allocation88_spill] sm:$0xff]  ;;  %v7743_v48 = vld [vmem:[#allocation89_spill] sm:$0xff] }
 0x3d8   :  { %v3561_v11 = vmul.f32 -1.442695, %v1390_v2  ;;  %4218 = vmatprep.subr.bf16.mxu0 %v7737_v60  ;;  %4282 = vmatprep.subr.bf16.mxu1 %v7677_v33  ;;  %v3562_v2 = vmul.f32 -1.442695, %v1461_v14  ;;  %v7744_v60 = vld [vmem:[#allocation90_spill] sm:$0xff]  ;;  %v7745_v33 = vld [vmem:[#allocation91_spill] sm:$0xff] }
 0x3d9   :  { %5390 = vpow2.f32 %v3560_v4  ;;  %v7746_v4 = vld [vmem:[#allocation122_spill] sm:$0xff]  ;;  %v7747_v10 = vld [vmem:[#allocation92_spill] sm:$0xff] }
 0x3da   :  { %5392 = vpow2.f32 %v3561_v11  ;;  %v1459_v11 = vadd.f32 %v1458_v7, %v7746_v4  ;;  %v7753_v7 = vld [vmem:[#allocation98_spill] sm:$0xff] }
 0x3db   :  { %4220 = vmatpush1.bf16.msra.mxu0 %v7738_v9  ;;  %4284 = vmatpush1.bf16.msra.mxu1 %v7739_v25  ;;  %v7748_v25 = vld [vmem:[#allocation93_spill] sm:$0xff]  ;;  %5394 = vpow2.f32 %v3562_v2  ;;  %v7757_v2 = vld [vmem:[#allocation102_spill] sm:$0xff] }
 0x3dc   :  { %4222 = vmatprep.subr.bf16.mxu0 %v7682_v49  ;;  %4286 = vmatprep.subr.bf16.mxu1 %v7741_v39  ;;  %v7749_v39 = vld [vmem:[#allocation94_spill] sm:$0xff]  ;;  %5396 = vtanh.f32 %v1459_v11 }
 0x3df   :  { %4224 = vmatpush1.bf16.msra.mxu0 %v7742_v6  ;;  %4288 = vmatpush1.bf16.msra.mxu1 %v7743_v48  ;;  %v7750_v6 = vld [vmem:[#allocation95_spill] sm:$0xff] }
 0x3e0   :  { %4226 = vmatprep.subr.bf16.mxu0 %v7744_v60  ;;  %4290 = vmatprep.subr.bf16.mxu1 %v7745_v33  ;;  %v7751_v60 = vld [vmem:[#allocation96_spill] sm:$0xff]  ;;  %v7752_v33 = vld [vmem:[#allocation97_spill] sm:$0xff] }
 0x3e3   :  { %v5391_v9 = vpop.eup %5390  ;;  %4228 = vmatpush1.bf16.msra.mxu0 %v7747_v10  ;;  %4292 = vmatpush1.bf16.msra.mxu1 %v7748_v25  ;;  %v7754_v10 = vld [vmem:[#allocation99_spill] sm:$0xff]  ;;  %v7755_v25 = vld [vmem:[#allocation100_spill] sm:$0xff] }
 0x3e4   :  { %v5393_v13 = vpop.eup %5392  ;;  %v1490_v20 = vadd.f32 1.0, %v5391_v9  ;;  %4230 = vmatprep.subr.bf16.mxu0 %v7749_v39  ;;  %4294 = vmatprep.subr.bf16.mxu1 %v7750_v6  ;;  %v7756_v9 = vld [vmem:[#allocation101_spill] sm:$0xff]  ;;  %v7758_v39 = vld [vmem:[#allocation103_spill] sm:$0xff] }
 0x3e5   :  { %v1496_v14 = vadd.f32 1.0, %v5393_v13  ;;  %v5395_v11 = vpop.eup %5394 }
 0x3e6   :  { %5398 = vrcp.f32 %v1490_v20  ;;  %v5397_v13 = vpop.eup %5396 }
 0x3e7   :  { %5400 = vrcp.f32 %v1496_v14  ;;  %4232 = vmatpush1.bf16.msra.mxu0 %v7751_v60  ;;  %4296 = vmatpush1.bf16.msra.mxu1 %v7752_v33 }
 0x3e8   :  { %4234 = vmatprep.subr.bf16.mxu0 %v7753_v7  ;;  %4298 = vmatprep.subr.bf16.mxu1 %v7754_v10 }
 0x3eb   :  { %4236 = vmatpush1.bf16.msra.mxu0 %v7755_v25  ;;  %4300 = vmatpush1.bf16.msra.mxu1 %v7756_v9  ;;  %v1503_v25 = vadd.f32 1.0, %v5395_v11  ;;  %v7762_v11 = vld [vmem:[#allocation48_spill] sm:$0xff] }
 0x3ec   :  { %4238 = vmatprep.subr.bf16.mxu0 %v7757_v2  ;;  %4302 = vmatprep.subr.bf16.mxu1 %v7758_v39 }
 0x3ed   :  { %5402 = vrcp.f32 %v1503_v25 }
 0x3ef   :  { %4240 = vmatpush1.bf16.msra.mxu0 %v7700_v41  ;;  %4304 = vmatpush1.bf16.msra.mxu1 %v7701_v19 }
 0x3f0   :  { %v5399_v20 = vpop.eup %5398  ;;  %4242 = vmatprep.subr.bf16.mxu0 %v7702_v36  ;;  %4306 = vmatprep.subr.bf16.mxu1 %v7703_v47 }
 0x3f1   :  { %v5401_v14 = vpop.eup %5400  ;;  %v1507_v10 = vmul.f32 %v5399_v20, %v5397_v13  ;;  %v7763_v13 = vld [vmem:[#allocation33_spill] sm:$0xff] }
 0x3f2   :  { %v1506_v9 = vmul.f32 %v5401_v14, %v6513_v27  ;;  %v7764_v20 = vld [vmem:[#allocation49_spill] sm:$0xff]  ;;  %v7765_v14 = vld [vmem:[#allocation34_spill] sm:$0xff] }
 0x3f3   :  { %4244 = vmatpush1.bf16.msra.mxu0 %v7704_v26  ;;  %4308 = vmatpush1.bf16.msra.mxu1 %v7705_v34 }
 0x3f4   :  { %4246 = vmatprep.subr.bf16.mxu0 %v6355_v56  ;;  %4310 = vmatprep.subr.bf16.mxu1 %v6357_v1  ;;  %v6639_v41 = vadd.f32 %v1507_v10, %v1506_v9  ;;  %v7761_v9 = vld [vmem:[#allocation32_spill] sm:$0xff] }
 0x3f6   :  { %5404 = vtanh.f32 %v6639_v41 }
 0x3f7   :  { %4248 = vmatpush1.bf16.msra.mxu0 %v6361_v57  ;;  %4312 = vmatpush1.bf16.msra.mxu1 %v6363_v58  ;;  %v5403_v27 = vpop.eup %5402 }
 0x3f8   :  { %4250 = vmatprep.subr.bf16.mxu0 %v6367_v17  ;;  %4314 = vmatprep.subr.bf16.mxu1 %v6369_v24 }
 0x3fb   :  { %4252 = vmatpush1.bf16.msra.mxu0 %v6373_v35  ;;  %4316 = vmatpush1.bf16.msra.mxu1 %v6375_v29 }
 0x3fc   :  { %4254 = vmatprep.subr.bf16.mxu0 %v6379_v40  ;;  %4318 = vmatprep.subr.bf16.mxu1 %v6381_v43 }
 0x3ff   :  { %4256 = vmatpush1.bf16.msra.mxu0 %v6385_v3  ;;  %4320 = vmatpush1.bf16.msra.mxu1 %v6387_v63 }
 0x400   :  { %v5405_v25 = vpop.eup %5404  ;;  %4322 = vmatprep.subr.bf16.mxu0 %v5948_v15  ;;  %4354 = vmatprep.subr.bf16.mxu1 %v6067_v23 }
 0x401   :  { %v6654_v10 = vmul.f32 %v5405_v25, %v5403_v27  ;;  %v7766_v27 = vld [vmem:[#allocation50_spill] sm:$0xff]  ;;  %v7767_v25 = vld [vmem:[#allocation35_spill] sm:$0xff] }
 0x403   :  { %7759 = vst [vmem:[#allocation108_spill] sm:$0xff] %v6654_v10  ;;  %1722 = vmatprep.mubr.f32.mxu0 %v6654_v10  ;;  %1793 = vmatprep.mubr.f32.mxu1 %v6654_v10  ;;  %v7768_v10 = vld [vmem:[#allocation51_spill] sm:$0xff] }
 0x404   :  { %1723 = vmatmul.mubr.f32.vlgmr.msra.gmra.mrb[20].mxu0 %v6578_v8  ;;  %1794 = vmatmul.mubr.f32.vlgmr.msra.gmra.mrb[22].mxu1 %v6578_v8  ;;  %v7760_v8 = vld [vmem:[#allocation47_spill] sm:$0xff] }
 0x405   :  { %4324 = vmatpush1.bf16.msra.mxu0 %v5955_v21  ;;  %4356 = vmatpush1.bf16.msra.mxu1 %v6082_v30 }
 0x406   :  { %4326 = vmatprep.subr.bf16.mxu0 %v5958_v22  ;;  %4358 = vmatprep.subr.bf16.mxu1 %v6085_v31 }
 0x407   :  { %1913 = vmatprep.mubr.f32.mxu0 %v7647_v0  ;;  %1984 = vmatprep.mubr.f32.mxu1 %v7647_v0 }
 0x409   :  { %4328 = vmatpush1.bf16.msra.mxu0 %v5969_v28  ;;  %4360 = vmatpush1.bf16.msra.mxu1 %v6094_v37 }
 0x40a   :  { %4330 = vmatprep.subr.bf16.mxu0 %v5972_v32  ;;  %4362 = vmatprep.subr.bf16.mxu1 %v6098_v38 }
 0x40d   :  { %4332 = vmatpush1.bf16.msra.mxu0 %v5983_v42  ;;  %4364 = vmatpush1.bf16.msra.mxu1 %v6106_v44 }
 0x40e   :  { %4334 = vmatprep.subr.bf16.mxu0 %v5986_v46  ;;  %4366 = vmatprep.subr.bf16.mxu1 %v6109_v45 }
 0x411   :  { %4336 = vmatpush1.bf16.msra.mxu0 %v5997_v54  ;;  %4368 = vmatpush1.bf16.msra.mxu1 %v6116_v51 }
 0x412   :  { %4338 = vmatprep.subr.bf16.mxu0 %v6000_v55  ;;  %4370 = vmatprep.subr.bf16.mxu1 %v6119_v52  ;;  %v7774_v55 = vld [vmem:[#allocation57_spill] sm:$0xff] }
 0x415   :  { %4340 = vmatpush1.bf16.msra.mxu0 %v6012_v61  ;;  %4372 = vmatpush1.bf16.msra.mxu1 %v6125_v59  ;;  %v7769_v59 = vld [vmem:[#allocation36_spill] sm:$0xff] }
 0x416   :  { %4342 = vmatprep.subr.bf16.mxu0 %v6015_v62  ;;  %4374 = vmatprep.subr.bf16.mxu1 %v7760_v8  ;;  %v7770_v62 = vld [vmem:[#allocation52_spill] sm:$0xff]  ;;  %v7771_v8 = vld [vmem:[#allocation53_spill] sm:$0xff] }
 0x417   :  { %v7773_v61 = vld [vmem:[#allocation56_spill] sm:$0xff] }
 0x419   :  { %4344 = vmatpush1.bf16.msra.mxu0 %v7761_v9  ;;  %4376 = vmatpush1.bf16.msra.mxu1 %v7762_v11  ;;  %v7772_v9 = vld [vmem:[#allocation54_spill] sm:$0xff] }
 0x41a   :  { %4346 = vmatprep.subr.bf16.mxu0 %v7763_v13  ;;  %4378 = vmatprep.subr.bf16.mxu1 %v7764_v20 }
 0x41d   :  { %4348 = vmatpush1.bf16.msra.mxu0 %v7765_v14  ;;  %4380 = vmatpush1.bf16.msra.mxu1 %v7766_v27 }
 0x41e   :  { %4350 = vmatprep.subr.bf16.mxu0 %v7767_v25  ;;  %4382 = vmatprep.subr.bf16.mxu1 %v7768_v10 }
 0x421   :  { %4352 = vmatpush1.bf16.msra.mxu0 %v7769_v59  ;;  %4384 = vmatpush1.bf16.msra.mxu1 %v7770_v62 }
 0x422   :  { %4386 = vmatprep.subr.bf16.mxu0 %v7771_v8  ;;  %4450 = vmatprep.subr.bf16.mxu1 %v7772_v9 }
 0x495   :  { %v1578_v11 = vpop.f32.mrb[6].mxu0  ;;  %v1649_v13 = vpop.f32.mrb[6].mxu1 }
 0x496   :  { %v5257_v20 = vadd.f32 %v1578_v11, %v7773_v61  ;;  %v1580_v52 = vpop.f32.mrb[7].mxu0  ;;  %v1651_v14 = vpop.f32.mrb[7].mxu1  ;;  %v5273_v62 = vadd.f32 %v1649_v13, %v7713_v53  ;;  %v7781_v13 = vld [vmem:[#allocation67_spill] sm:$0xff] }
 0x497   :  { %v5258_v27 = vadd.f32 %v1580_v52, %v7774_v55  ;;  %v5274_v59 = vadd.f32 %v1651_v14, %v6196_v18 }
 0x498   :  { %v3563_v51 = vmul.f32 -1.442695, %v5257_v20 }
 0x499   :  { %v3564_v25 = vmul.f32 -1.442695, %v5258_v27  ;;  %v3565_v10 = vmul.f32 -1.442695, %v5274_v59 }
 0x49a   :  { %5406 = vpow2.f32 %v3563_v51 }
 0x49b   :  { %5408 = vpow2.f32 %v3564_v25 }
 0x49c   :  { %5410 = vpow2.f32 %v3565_v10 }
 0x49d   :  { %5412 = vtanh.f32 %v5273_v62  ;;  %v7777_v62 = vld [vmem:[#allocation63_spill] sm:$0xff] }
 0x4a4   :  { %v5407_v8 = vpop.eup %5406 }
 0x4a5   :  { %v5409_v54 = vpop.eup %5408  ;;  %v1803_v9 = vadd.f32 1.0, %v5407_v8 }
 0x4a6   :  { %v1809_v45 = vadd.f32 1.0, %v5409_v54  ;;  %v5411_v11 = vpop.eup %5410  ;;  %v7775_v54 = vld [vmem:[#allocation61_spill] sm:$0xff] }
 0x4a7   :  { %5414 = vrcp.f32 %v1803_v9  ;;  %v5413_v61 = vpop.eup %5412  ;;  %v1816_v51 = vadd.f32 1.0, %v5411_v11  ;;  %v7780_v9 = vld [vmem:[#allocation66_spill] sm:$0xff]  ;;  %v7782_v11 = vld [vmem:[#allocation68_spill] sm:$0xff] }
 0x4a8   :  { %5416 = vrcp.f32 %v1809_v45  ;;  %v7778_v45 = vld [vmem:[#allocation64_spill] sm:$0xff] }
 0x4a9   :  { %5418 = vrcp.f32 %v1816_v51  ;;  %v7786_v51 = vld [vmem:[#allocation72_spill] sm:$0xff] }
 0x4b1   :  { %v5415_v52 = vpop.eup %5414 }
 0x4b2   :  { %v5417_v20 = vpop.eup %5416  ;;  %v1820_v27 = vmul.f32 %v5415_v52, %v5413_v61  ;;  %v7776_v61 = vld [vmem:[#allocation62_spill] sm:$0xff]  ;;  %v7783_v52 = vld [vmem:[#allocation69_spill] sm:$0xff] }
 0x4b3   :  { %v1819_v25 = vmul.f32 %v5417_v20, %v6575_v12  ;;  %v5419_v59 = vpop.eup %5418  ;;  %v7779_v12 = vld [vmem:[#allocation65_spill] sm:$0xff]  ;;  %v7784_v20 = vld [vmem:[#allocation70_spill] sm:$0xff] }
 0x4b5   :  { %v6699_v14 = vadd.f32 %v1820_v27, %v1819_v25  ;;  %v7785_v27 = vld [vmem:[#allocation71_spill] sm:$0xff]  ;;  %v7787_v25 = vld [vmem:[#allocation73_spill] sm:$0xff] }
 0x4b7   :  { %5420 = vtanh.f32 %v6699_v14 }
 0x4c1   :  { %v5421_v8 = vpop.eup %5420 }
 0x4c2   :  { %v6702_v10 = vmul.f32 %v5421_v8, %v5419_v59  ;;  %v7788_v59 = vld [vmem:[#allocation74_spill] sm:$0xff]  ;;  %v7789_v8 = vld [vmem:[#allocation75_spill] sm:$0xff] }
 0x4c4   :  { %1914 = vmatmul.mubr.f32.vlgmr.msra.gmra.mrb[8].mxu0 %v6702_v10  ;;  %1985 = vmatmul.mubr.f32.vlgmr.msra.gmra.mrb[8].mxu1 %v6702_v10 }
 0x4c5   :  { %4388 = vmatpush1.bf16.msra.mxu0 %v7715_v5  ;;  %4452 = vmatpush1.bf16.msra.mxu1 %v7775_v54 }
 0x4c6   :  { %4390 = vmatprep.subr.bf16.mxu0 %v7776_v61  ;;  %4454 = vmatprep.subr.bf16.mxu1 %v7777_v62  ;;  %v7794_v62 = vld [vmem:[#allocation80_spill] sm:$0xff]  ;;  %v7799_v61 = vld [vmem:[#allocation85_spill] sm:$0xff] }
 0x4c9   :  { %4392 = vmatpush1.bf16.msra.mxu0 %v7778_v45  ;;  %4456 = vmatpush1.bf16.msra.mxu1 %v7779_v12  ;;  %v7790_v12 = vld [vmem:[#allocation76_spill] sm:$0xff] }
 0x4ca   :  { %4394 = vmatprep.subr.bf16.mxu0 %v7780_v9  ;;  %4458 = vmatprep.subr.bf16.mxu1 %v7781_v13  ;;  %v7791_v13 = vld [vmem:[#allocation78_spill] sm:$0xff]  ;;  %v7793_v9 = vld [vmem:[#allocation55_spill] sm:$0xff] }
 0x4cd   :  { %4396 = vmatpush1.bf16.msra.mxu0 %v7782_v11  ;;  %4460 = vmatpush1.bf16.msra.mxu1 %v7783_v52  ;;  %v7792_v11 = vld [vmem:[#allocation79_spill] sm:$0xff] }
 0x4ce   :  { %4398 = vmatprep.subr.bf16.mxu0 %v7784_v20  ;;  %4462 = vmatprep.subr.bf16.mxu1 %v7785_v27 }
 0x4d1   :  { %4400 = vmatpush1.bf16.msra.mxu0 %v7786_v51  ;;  %4464 = vmatpush1.bf16.msra.mxu1 %v7787_v25 }
 0x4d2   :  { %4402 = vmatprep.subr.bf16.mxu0 %v7788_v59  ;;  %4466 = vmatprep.subr.bf16.mxu1 %v7789_v8  ;;  %v7795_v59 = vld [vmem:[#allocation81_spill] sm:$0xff] }
 0x4d5   :  { %4404 = vmatpush1.bf16.msra.mxu0 %v7790_v12  ;;  %4468 = vmatpush1.bf16.msra.mxu1 %v7669_v16  ;;  %v7796_v12 = vld [vmem:[#allocation82_spill] sm:$0xff]  ;;  %v7797_v16 = vld [vmem:[#allocation83_spill] sm:$0xff] }
 0x4d6   :  { %4406 = vmatprep.subr.bf16.mxu0 %v7791_v13  ;;  %4470 = vmatprep.subr.bf16.mxu1 %v7792_v11  ;;  %v7798_v11 = vld [vmem:[#allocation84_spill] sm:$0xff] }
 0x4d7   :  { %v1724_v52 = vpop.f32.mrb[20].mxu0  ;;  %v1795_v20 = vpop.f32.mrb[22].mxu1 }
 0x4d8   :  { %v1725_v27 = vadd.f32 %v1724_v52, %v7793_v9  ;;  %v1726_v45 = vpop.f32.mrb[21].mxu0  ;;  %v1797_v51 = vpop.f32.mrb[23].mxu1  ;;  %v7800_v52 = vld [vmem:[#allocation87_spill] sm:$0xff] }
 0x4d9   :  { %v1727_v25 = vadd.f32 %v1726_v45, %v6465_v50  ;;  %4408 = vmatpush1.bf16.msra.mxu0 %v7794_v62  ;;  %4472 = vmatpush1.bf16.msra.mxu1 %v7795_v59  ;;  %v7801_v45 = vld [vmem:[#allocation121_spill] sm:$0xff]  ;;  %v7802_v62 = vld [vmem:[#allocation88_spill] sm:$0xff] }
 0x4da   :  { %v3566_v8 = vmul.f32 -1.442695, %v1725_v27  ;;  %4410 = vmatprep.subr.bf16.mxu0 %v7796_v12  ;;  %4474 = vmatprep.subr.bf16.mxu1 %v7797_v16  ;;  %v1798_v50 = vadd.f32 %v1797_v51, %v7801_v45  ;;  %v7803_v27 = vld [vmem:[#allocation90_spill] sm:$0xff]  ;;  %v7804_v16 = vld [vmem:[#allocation91_spill] sm:$0xff] }
 0x4db   :  { %v3567_v13 = vmul.f32 -1.442695, %v1727_v25 }
 0x4dc   :  { %5422 = vpow2.f32 %v3566_v8  ;;  %v3568_v25 = vmul.f32 -1.442695, %v1798_v50  ;;  %v7805_v8 = vld [vmem:[#allocation92_spill] sm:$0xff]  ;;  %v7808_v50 = vld [vmem:[#allocation99_spill] sm:$0xff] }
 0x4dd   :  { %5424 = vpow2.f32 %v3567_v13  ;;  %4412 = vmatpush1.bf16.msra.mxu0 %v7798_v11  ;;  %4476 = vmatpush1.bf16.msra.mxu1 %v7799_v61  ;;  %v1796_v13 = vadd.f32 %v1795_v20, %v7746_v4  ;;  %v7806_v61 = vld [vmem:[#allocation93_spill] sm:$0xff]  ;;  %v7807_v11 = vld [vmem:[#allocation94_spill] sm:$0xff]  ;;  %v7809_v20 = vld [vmem:[#allocation100_spill] sm:$0xff] }
 0x4de   :  { %4414 = vmatprep.subr.bf16.mxu0 %v7682_v49  ;;  %4478 = vmatprep.subr.bf16.mxu1 %v7800_v52  ;;  %5426 = vpow2.f32 %v3568_v25  ;;  %v7811_v25 = vld [vmem:[#allocation104_spill] sm:$0xff] }
 0x4df   :  { %5428 = vtanh.f32 %v1796_v13 }
 0x4e1   :  { %4416 = vmatpush1.bf16.msra.mxu0 %v7802_v62  ;;  %4480 = vmatpush1.bf16.msra.mxu1 %v7743_v48 }
 0x4e2   :  { %4418 = vmatprep.subr.bf16.mxu0 %v7803_v27  ;;  %4482 = vmatprep.subr.bf16.mxu1 %v7804_v16 }
 0x4e5   :  { %4420 = vmatpush1.bf16.msra.mxu0 %v7805_v8  ;;  %4484 = vmatpush1.bf16.msra.mxu1 %v7806_v61 }
 0x4e6   :  { %v5423_v49 = vpop.eup %5422  ;;  %4422 = vmatprep.subr.bf16.mxu0 %v7807_v11  ;;  %4486 = vmatprep.subr.bf16.mxu1 %v7750_v6  ;;  %v7810_v11 = vld [vmem:[#allocation101_spill] sm:$0xff] }
 0x4e7   :  { %v5425_v51 = vpop.eup %5424  ;;  %v1827_v62 = vadd.f32 1.0, %v5423_v49 }
 0x4e8   :  { %v1833_v48 = vadd.f32 1.0, %v5425_v51  ;;  %v5427_v49 = vpop.eup %5426 }
 0x4e9   :  { %5430 = vrcp.f32 %v1827_v62  ;;  %4424 = vmatpush1.bf16.msra.mxu0 %v7751_v60  ;;  %4488 = vmatpush1.bf16.msra.mxu1 %v7752_v33  ;;  %v5429_v62 = vpop.eup %5428 }
 0x4ea   :  { %5432 = vrcp.f32 %v1833_v48  ;;  %4426 = vmatprep.subr.bf16.mxu0 %v7753_v7  ;;  %4490 = vmatprep.subr.bf16.mxu1 %v7808_v50 }
 0x4ed   :  { %4428 = vmatpush1.bf16.msra.mxu0 %v7809_v20  ;;  %4492 = vmatpush1.bf16.msra.mxu1 %v7810_v11  ;;  %v1840_v20 = vadd.f32 1.0, %v5427_v49  ;;  %v7814_v49 = vld [vmem:[#allocation28_spill] sm:$0xff] }
 0x4ee   :  { %4430 = vmatprep.subr.bf16.mxu0 %v7757_v2  ;;  %4494 = vmatprep.subr.bf16.mxu1 %v7758_v39 }
 0x4ef   :  { %5434 = vrcp.f32 %v1840_v20 }
 0x4f1   :  { %4432 = vmatpush1.bf16.msra.mxu0 %v7811_v25  ;;  %4496 = vmatpush1.bf16.msra.mxu1 %v7701_v19 }
 0x4f2   :  { %4434 = vmatprep.subr.bf16.mxu0 %v7702_v36  ;;  %4498 = vmatprep.subr.bf16.mxu1 %v7703_v47 }
 0x4f3   :  { %v5431_v48 = vpop.eup %5430 }
 0x4f4   :  { %v5433_v13 = vpop.eup %5432  ;;  %v1844_v51 = vmul.f32 %v5431_v48, %v5429_v62  ;;  %v7815_v62 = vld [vmem:[#allocation44_spill] sm:$0xff]  ;;  %v7816_v48 = vld [vmem:[#allocation29_spill] sm:$0xff] }
 0x4f5   :  { %v1843_v11 = vmul.f32 %v5433_v13, %v6639_v41  ;;  %4436 = vmatpush1.bf16.msra.mxu0 %v7704_v26  ;;  %4500 = vmatpush1.bf16.msra.mxu1 %v7705_v34  ;;  %v7817_v13 = vld [vmem:[#allocation45_spill] sm:$0xff] }
 0x4f6   :  { %4438 = vmatprep.subr.bf16.mxu0 %v6355_v56  ;;  %4502 = vmatprep.subr.bf16.mxu1 %v6357_v1 }
 0x4f7   :  { %v6763_v19 = vadd.f32 %v1844_v51, %v1843_v11  ;;  %v7818_v51 = vld [vmem:[#allocation30_spill] sm:$0xff] }
 0x4f9   :  { %4440 = vmatpush1.bf16.msra.mxu0 %v6361_v57  ;;  %4504 = vmatpush1.bf16.msra.mxu1 %v6363_v58  ;;  %5436 = vtanh.f32 %v6763_v19  ;;  %v5435_v41 = vpop.eup %5434 }
 0x4fa   :  { %4442 = vmatprep.subr.bf16.mxu0 %v6367_v17  ;;  %4506 = vmatprep.subr.bf16.mxu1 %v6369_v24 }
 0x4fd   :  { %4444 = vmatpush1.bf16.msra.mxu0 %v6373_v35  ;;  %4508 = vmatpush1.bf16.msra.mxu1 %v6375_v29 }
 0x4fe   :  { %4446 = vmatprep.subr.bf16.mxu0 %v6379_v40  ;;  %4510 = vmatprep.subr.bf16.mxu1 %v6381_v43 }
 0x501   :  { %4448 = vmatpush1.bf16.msra.mxu0 %v6385_v3  ;;  %4512 = vmatpush1.bf16.msra.mxu1 %v6387_v63 }
 0x502   :  { %4514 = vmatprep.subr.bf16.mxu0 %v5948_v15  ;;  %4546 = vmatprep.subr.bf16.mxu1 %v6067_v23 }
 0x503   :  { %v5437_v11 = vpop.eup %5436 }
 0x504   :  { %v6778_v20 = vmul.f32 %v5437_v11, %v5435_v41  ;;  %v7819_v41 = vld [vmem:[#allocation46_spill] sm:$0xff]  ;;  %v7820_v11 = vld [vmem:[#allocation31_spill] sm:$0xff] }
 0x506   :  { %7812 = vst [vmem:[#allocation109_spill] sm:$0xff] %v6778_v20  ;;  %2059 = vmatprep.mubr.f32.mxu0 %v6778_v20  ;;  %2130 = vmatprep.mubr.f32.mxu1 %v6778_v20  ;;  %v7821_v20 = vld [vmem:[#allocation47_spill] sm:$0xff] }
 0x507   :  { %2060 = vmatmul.mubr.f32.vlgmr.msra.gmra.mrb[22].mxu0 %v6702_v10  ;;  %2131 = vmatmul.mubr.f32.vlgmr.msra.gmra.mrb[24].mxu1 %v6702_v10  ;;  %v7813_v10 = vld [vmem:[#allocation43_spill] sm:$0xff] }
 0x508   :  { %4516 = vmatpush1.bf16.msra.mxu0 %v5955_v21  ;;  %4548 = vmatpush1.bf16.msra.mxu1 %v6082_v30 }
 0x509   :  { %4518 = vmatprep.subr.bf16.mxu0 %v5958_v22  ;;  %4550 = vmatprep.subr.bf16.mxu1 %v6085_v31 }
 0x50a   :  { %2250 = vmatprep.mubr.f32.mxu0 %v7647_v0  ;;  %2321 = vmatprep.mubr.f32.mxu1 %v7647_v0 }
 0x50c   :  { %4520 = vmatpush1.bf16.msra.mxu0 %v5969_v28  ;;  %4552 = vmatpush1.bf16.msra.mxu1 %v6094_v37 }
 0x50d   :  { %4522 = vmatprep.subr.bf16.mxu0 %v5972_v32  ;;  %4554 = vmatprep.subr.bf16.mxu1 %v6098_v38 }
 0x510   :  { %4524 = vmatpush1.bf16.msra.mxu0 %v5983_v42  ;;  %4556 = vmatpush1.bf16.msra.mxu1 %v6106_v44  ;;  %v7822_v44 = vld [vmem:[#allocation32_spill] sm:$0xff] }
 0x511   :  { %4526 = vmatprep.subr.bf16.mxu0 %v5986_v46  ;;  %4558 = vmatprep.subr.bf16.mxu1 %v7813_v10  ;;  %v7823_v46 = vld [vmem:[#allocation48_spill] sm:$0xff]  ;;  %v7824_v10 = vld [vmem:[#allocation33_spill] sm:$0xff] }
 0x512   :  { %v7834_v42 = vld [vmem:[#allocation56_spill] sm:$0xff] }
 0x514   :  { %4528 = vmatpush1.bf16.msra.mxu0 %v7814_v49  ;;  %4560 = vmatpush1.bf16.msra.mxu1 %v7815_v62  ;;  %v7825_v49 = vld [vmem:[#allocation49_spill] sm:$0xff]  ;;  %v7826_v62 = vld [vmem:[#allocation34_spill] sm:$0xff] }
 0x515   :  { %4530 = vmatprep.subr.bf16.mxu0 %v7816_v48  ;;  %4562 = vmatprep.subr.bf16.mxu1 %v7817_v13  ;;  %v7827_v48 = vld [vmem:[#allocation50_spill] sm:$0xff]  ;;  %v7828_v13 = vld [vmem:[#allocation35_spill] sm:$0xff] }
 0x518   :  { %4532 = vmatpush1.bf16.msra.mxu0 %v7818_v51  ;;  %4564 = vmatpush1.bf16.msra.mxu1 %v7819_v41  ;;  %v7829_v51 = vld [vmem:[#allocation51_spill] sm:$0xff]  ;;  %v7830_v41 = vld [vmem:[#allocation36_spill] sm:$0xff] }
 0x519   :  { %4534 = vmatprep.subr.bf16.mxu0 %v7820_v11  ;;  %4566 = vmatprep.subr.bf16.mxu1 %v7821_v20  ;;  %v7831_v11 = vld [vmem:[#allocation52_spill] sm:$0xff]  ;;  %v7832_v20 = vld [vmem:[#allocation53_spill] sm:$0xff] }
 0x51c   :  { %4536 = vmatpush1.bf16.msra.mxu0 %v7822_v44  ;;  %4568 = vmatpush1.bf16.msra.mxu1 %v7823_v46  ;;  %v7833_v44 = vld [vmem:[#allocation54_spill] sm:$0xff] }
 0x51d   :  { %4538 = vmatprep.subr.bf16.mxu0 %v7824_v10  ;;  %4570 = vmatprep.subr.bf16.mxu1 %v7825_v49 }
 0x520   :  { %4540 = vmatpush1.bf16.msra.mxu0 %v7826_v62  ;;  %4572 = vmatpush1.bf16.msra.mxu1 %v7827_v48 }
 0x521   :  { %4542 = vmatprep.subr.bf16.mxu0 %v7828_v13  ;;  %4574 = vmatprep.subr.bf16.mxu1 %v7829_v51 }
 0x524   :  { %4544 = vmatpush1.bf16.msra.mxu0 %v7830_v41  ;;  %4576 = vmatpush1.bf16.msra.mxu1 %v7831_v11 }
 0x525   :  { %4578 = vmatprep.subr.bf16.mxu0 %v7832_v20  ;;  %4642 = vmatprep.subr.bf16.mxu1 %v7833_v44 }
 0x597   :  { %v1915_v46 = vpop.f32.mrb[8].mxu0  ;;  %v1986_v10 = vpop.f32.mrb[8].mxu1 }
 0x598   :  { %v5259_v49 = vadd.f32 %v1915_v46, %v7834_v42  ;;  %v1917_v38 = vpop.f32.mrb[9].mxu0  ;;  %v1988_v62 = vpop.f32.mrb[9].mxu1  ;;  %v5275_v11 = vadd.f32 %v1986_v10, %v7713_v53 }
 0x599   :  { %v5260_v48 = vadd.f32 %v1917_v38, %v7774_v55  ;;  %v5276_v41 = vadd.f32 %v1988_v62, %v6196_v18 }
 0x59a   :  { %v3569_v32 = vmul.f32 -1.442695, %v5259_v49 }
 0x59b   :  { %v3570_v13 = vmul.f32 -1.442695, %v5260_v48  ;;  %v3571_v51 = vmul.f32 -1.442695, %v5276_v41  ;;  %v7840_v41 = vld [vmem:[#allocation67_spill] sm:$0xff] }
 0x59c   :  { %5438 = vpow2.f32 %v3569_v32 }
 0x59d   :  { %5440 = vpow2.f32 %v3570_v13 }
 0x59e   :  { %5442 = vpow2.f32 %v3571_v51 }
 0x59f   :  { %5444 = vtanh.f32 %v5275_v11  ;;  %v7841_v11 = vld [vmem:[#allocation68_spill] sm:$0xff] }
 0x5a6   :  { %v5439_v20 = vpop.eup %5438 }
 0x5a7   :  { %v5441_v37 = vpop.eup %5440  ;;  %v2140_v44 = vadd.f32 1.0, %v5439_v20 }
 0x5a8   :  { %v2146_v28 = vadd.f32 1.0, %v5441_v37  ;;  %v5443_v46 = vpop.eup %5442  ;;  %v7837_v37 = vld [vmem:[#allocation64_spill] sm:$0xff] }
 0x5a9   :  { %5446 = vrcp.f32 %v2140_v44  ;;  %v5445_v42 = vpop.eup %5444  ;;  %v2153_v32 = vadd.f32 1.0, %v5443_v46  ;;  %v7838_v44 = vld [vmem:[#allocation65_spill] sm:$0xff] }
 0x5aa   :  { %5448 = vrcp.f32 %v2146_v28  ;;  %v7835_v28 = vld [vmem:[#allocation62_spill] sm:$0xff]  ;;  %v7842_v46 = vld [vmem:[#allocation69_spill] sm:$0xff] }
 0x5ab   :  { %5450 = vrcp.f32 %v2153_v32  ;;  %v7846_v32 = vld [vmem:[#allocation73_spill] sm:$0xff] }
 0x5b3   :  { %v5447_v38 = vpop.eup %5446 }
 0x5b4   :  { %v5449_v49 = vpop.eup %5448  ;;  %v2157_v48 = vmul.f32 %v5447_v38, %v5445_v42  ;;  %v7836_v42 = vld [vmem:[#allocation63_spill] sm:$0xff]  ;;  %v7843_v38 = vld [vmem:[#allocation70_spill] sm:$0xff] }
 0x5b5   :  { %v2156_v13 = vmul.f32 %v5449_v49, %v6699_v14  ;;  %v5451_v10 = vpop.eup %5450  ;;  %v7839_v14 = vld [vmem:[#allocation66_spill] sm:$0xff]  ;;  %v7844_v49 = vld [vmem:[#allocation71_spill] sm:$0xff] }
 0x5b7   :  { %v6823_v62 = vadd.f32 %v2157_v48, %v2156_v13  ;;  %v7845_v48 = vld [vmem:[#allocation72_spill] sm:$0xff]  ;;  %v7847_v13 = vld [vmem:[#allocation74_spill] sm:$0xff] }
 0x5b9   :  { %5452 = vtanh.f32 %v6823_v62 }
 0x5c3   :  { %v5453_v20 = vpop.eup %5452 }
 0x5c4   :  { %v6826_v51 = vmul.f32 %v5453_v20, %v5451_v10  ;;  %v7848_v10 = vld [vmem:[#allocation75_spill] sm:$0xff]  ;;  %v7849_v20 = vld [vmem:[#allocation76_spill] sm:$0xff] }
 0x5c6   :  { %2251 = vmatmul.mubr.f32.vlgmr.msra.gmra.mrb[10].mxu0 %v6826_v51  ;;  %2322 = vmatmul.mubr.f32.vlgmr.msra.gmra.mrb[10].mxu1 %v6826_v51 }
 0x5c7   :  { %4580 = vmatpush1.bf16.msra.mxu0 %v7715_v5  ;;  %4644 = vmatpush1.bf16.msra.mxu1 %v7775_v54 }
 0x5c8   :  { %4582 = vmatprep.subr.bf16.mxu0 %v7835_v28  ;;  %4646 = vmatprep.subr.bf16.mxu1 %v7836_v42 }
 0x5cb   :  { %4584 = vmatpush1.bf16.msra.mxu0 %v7837_v37  ;;  %4648 = vmatpush1.bf16.msra.mxu1 %v7838_v44  ;;  %v7853_v37 = vld [vmem:[#allocation80_spill] sm:$0xff] }
 0x5cc   :  { %4586 = vmatprep.subr.bf16.mxu0 %v7839_v14  ;;  %4650 = vmatprep.subr.bf16.mxu1 %v7840_v41  ;;  %v7850_v14 = vld [vmem:[#allocation77_spill] sm:$0xff]  ;;  %v7851_v41 = vld [vmem:[#allocation78_spill] sm:$0xff] }
 0x5cf   :  { %4588 = vmatpush1.bf16.msra.mxu0 %v7841_v11  ;;  %4652 = vmatpush1.bf16.msra.mxu1 %v7842_v46  ;;  %v7852_v11 = vld [vmem:[#allocation79_spill] sm:$0xff] }
 0x5d0   :  { %4590 = vmatprep.subr.bf16.mxu0 %v7843_v38  ;;  %4654 = vmatprep.subr.bf16.mxu1 %v7844_v49 }
 0x5d3   :  { %4592 = vmatpush1.bf16.msra.mxu0 %v7845_v48  ;;  %4656 = vmatpush1.bf16.msra.mxu1 %v7846_v32  ;;  %v7857_v32 = vld [vmem:[#allocation85_spill] sm:$0xff] }
 0x5d4   :  { %4594 = vmatprep.subr.bf16.mxu0 %v7847_v13  ;;  %4658 = vmatprep.subr.bf16.mxu1 %v7848_v10  ;;  %v7854_v13 = vld [vmem:[#allocation120_spill] sm:$0xff] }
 0x5d7   :  { %4596 = vmatpush1.bf16.msra.mxu0 %v7849_v20  ;;  %4660 = vmatpush1.bf16.msra.mxu1 %v7850_v14  ;;  %v7855_v20 = vld [vmem:[#allocation83_spill] sm:$0xff] }
 0x5d8   :  { %4598 = vmatprep.subr.bf16.mxu0 %v7851_v41  ;;  %4662 = vmatprep.subr.bf16.mxu1 %v7852_v11  ;;  %v7856_v11 = vld [vmem:[#allocation84_spill] sm:$0xff] }
 0x5da   :  { %v2061_v46 = vpop.f32.mrb[22].mxu0  ;;  %v2132_v38 = vpop.f32.mrb[24].mxu1 }
 0x5db   :  { %v2062_v49 = vadd.f32 %v2061_v46, %v7793_v9  ;;  %v2063_v44 = vpop.f32.mrb[23].mxu0  ;;  %v2134_v48 = vpop.f32.mrb[25].mxu1  ;;  %4600 = vmatpush1.bf16.msra.mxu0 %v7853_v37  ;;  %4664 = vmatpush1.bf16.msra.mxu1 %v7795_v59  ;;  %v7858_v46 = vld [vmem:[#allocation86_spill] sm:$0xff]  ;;  %v7859_v59 = vld [vmem:[#allocation88_spill] sm:$0xff] }
 0x5dc   :  { %v2064_v10 = vadd.f32 %v2063_v44, %v7854_v13  ;;  %4602 = vmatprep.subr.bf16.mxu0 %v7796_v12  ;;  %4666 = vmatprep.subr.bf16.mxu1 %v7855_v20  ;;  %v2135_v9 = vadd.f32 %v2134_v48, %v7801_v45  ;;  %v7860_v44 = vld [vmem:[#allocation89_spill] sm:$0xff] }
 0x5dd   :  { %v3572_v14 = vmul.f32 -1.442695, %v2062_v49  ;;  %v2133_v49 = vadd.f32 %v2132_v38, %v7746_v4  ;;  %v7863_v38 = vld [vmem:[#allocation101_spill] sm:$0xff] }
 0x5de   :  { %v3573_v41 = vmul.f32 -1.442695, %v2064_v10 }
 0x5df   :  { %5454 = vpow2.f32 %v3572_v14  ;;  %4604 = vmatpush1.bf16.msra.mxu0 %v7856_v11  ;;  %4668 = vmatpush1.bf16.msra.mxu1 %v7857_v32  ;;  %v3574_v14 = vmul.f32 -1.442695, %v2135_v9  ;;  %v7862_v9 = vld [vmem:[#allocation100_spill] sm:$0xff] }
 0x5e0   :  { %5456 = vpow2.f32 %v3573_v41  ;;  %4606 = vmatprep.subr.bf16.mxu0 %v7858_v46  ;;  %4670 = vmatprep.subr.bf16.mxu1 %v7800_v52  ;;  %v7861_v41 = vld [vmem:[#allocation94_spill] sm:$0xff] }
 0x5e1   :  { %5458 = vpow2.f32 %v3574_v14  ;;  %v7864_v14 = vld [vmem:[#allocation105_spill] sm:$0xff] }
 0x5e2   :  { %5460 = vtanh.f32 %v2133_v49 }
 0x5e3   :  { %4608 = vmatpush1.bf16.msra.mxu0 %v7859_v59  ;;  %4672 = vmatpush1.bf16.msra.mxu1 %v7860_v44 }
 0x5e4   :  { %4610 = vmatprep.subr.bf16.mxu0 %v7803_v27  ;;  %4674 = vmatprep.subr.bf16.mxu1 %v7804_v16 }
 0x5e7   :  { %4612 = vmatpush1.bf16.msra.mxu0 %v7805_v8  ;;  %4676 = vmatpush1.bf16.msra.mxu1 %v7806_v61 }
 0x5e8   :  { %4614 = vmatprep.subr.bf16.mxu0 %v7861_v41  ;;  %4678 = vmatprep.subr.bf16.mxu1 %v7750_v6 }
 0x5e9   :  { %v5455_v48 = vpop.eup %5454 }
 0x5ea   :  { %v5457_v10 = vpop.eup %5456  ;;  %v2164_v59 = vadd.f32 1.0, %v5455_v48 }
 0x5eb   :  { %v2170_v44 = vadd.f32 1.0, %v5457_v10  ;;  %4616 = vmatpush1.bf16.msra.mxu0 %v7751_v60  ;;  %4680 = vmatpush1.bf16.msra.mxu1 %v7752_v33  ;;  %v5459_v49 = vpop.eup %5458 }
 0x5ec   :  { %5462 = vrcp.f32 %v2164_v59  ;;  %4618 = vmatprep.subr.bf16.mxu0 %v7753_v7  ;;  %4682 = vmatprep.subr.bf16.mxu1 %v7808_v50  ;;  %v5461_v59 = vpop.eup %5460 }
 0x5ed   :  { %5464 = vrcp.f32 %v2170_v44 }
 0x5ef   :  { %4620 = vmatpush1.bf16.msra.mxu0 %v7862_v9  ;;  %4684 = vmatpush1.bf16.msra.mxu1 %v7863_v38  ;;  %v2177_v9 = vadd.f32 1.0, %v5459_v49  ;;  %v7866_v49 = vld [vmem:[#allocation24_spill] sm:$0xff] }
 0x5f0   :  { %4622 = vmatprep.subr.bf16.mxu0 %v7757_v2  ;;  %4686 = vmatprep.subr.bf16.mxu1 %v7758_v39 }
 0x5f1   :  { %5466 = vrcp.f32 %v2177_v9 }
 0x5f3   :  { %4624 = vmatpush1.bf16.msra.mxu0 %v7811_v25  ;;  %4688 = vmatpush1.bf16.msra.mxu1 %v7864_v14 }
 0x5f4   :  { %4626 = vmatprep.subr.bf16.mxu0 %v7702_v36  ;;  %4690 = vmatprep.subr.bf16.mxu1 %v7703_v47 }
 0x5f6   :  { %v5463_v48 = vpop.eup %5462 }
 0x5f7   :  { %v5465_v44 = vpop.eup %5464  ;;  %v2181_v10 = vmul.f32 %v5463_v48, %v5461_v59  ;;  %4628 = vmatpush1.bf16.msra.mxu0 %v7704_v26  ;;  %4692 = vmatpush1.bf16.msra.mxu1 %v7705_v34  ;;  %v7867_v59 = vld [vmem:[#allocation40_spill] sm:$0xff]  ;;  %v7868_v48 = vld [vmem:[#allocation25_spill] sm:$0xff] }
 0x5f8   :  { %v2180_v39 = vmul.f32 %v5465_v44, %v6763_v19  ;;  %4630 = vmatprep.subr.bf16.mxu0 %v6355_v56  ;;  %4694 = vmatprep.subr.bf16.mxu1 %v6357_v1  ;;  %v7869_v44 = vld [vmem:[#allocation41_spill] sm:$0xff] }
 0x5fa   :  { %v6887_v14 = vadd.f32 %v2181_v10, %v2180_v39  ;;  %v7871_v10 = vld [vmem:[#allocation42_spill] sm:$0xff] }
 0x5fb   :  { %4632 = vmatpush1.bf16.msra.mxu0 %v6361_v57  ;;  %4696 = vmatpush1.bf16.msra.mxu1 %v6363_v58  ;;  %v5467_v19 = vpop.eup %5466 }
 0x5fc   :  { %4634 = vmatprep.subr.bf16.mxu0 %v6367_v17  ;;  %4698 = vmatprep.subr.bf16.mxu1 %v6369_v24  ;;  %5468 = vtanh.f32 %v6887_v14 }
 0x5ff   :  { %4636 = vmatpush1.bf16.msra.mxu0 %v6373_v35  ;;  %4700 = vmatpush1.bf16.msra.mxu1 %v6375_v29 }
 0x600   :  { %4638 = vmatprep.subr.bf16.mxu0 %v6379_v40  ;;  %4702 = vmatprep.subr.bf16.mxu1 %v6381_v43 }
 0x603   :  { %4640 = vmatpush1.bf16.msra.mxu0 %v6385_v3  ;;  %4704 = vmatpush1.bf16.msra.mxu1 %v6387_v63 }
 0x604   :  { %4706 = vmatprep.subr.bf16.mxu0 %v5948_v15  ;;  %4738 = vmatprep.subr.bf16.mxu1 %v6067_v23 }
 0x606   :  { %v5469_v39 = vpop.eup %5468 }
 0x607   :  { %v6902_v9 = vmul.f32 %v5469_v39, %v5467_v19  ;;  %v7872_v19 = vld [vmem:[#allocation27_spill] sm:$0xff] }
 0x608   :  { %v7873_v39 = vld [vmem:[#allocation43_spill] sm:$0xff] }
 0x609   :  { %7865 = vst [vmem:[#allocation119_spill] sm:$0xff] %v6902_v9  ;;  %2396 = vmatprep.mubr.f32.mxu0 %v6902_v9  ;;  %2467 = vmatprep.mubr.f32.mxu1 %v6902_v9  ;;  %v7874_v9 = vld [vmem:[#allocation28_spill] sm:$0xff] }
 0x60a   :  { %2397 = vmatmul.mubr.f32.vlgmr.msra.gmra.mrb[24].mxu0 %v6826_v51  ;;  %2468 = vmatmul.mubr.f32.vlgmr.msra.gmra.mrb[26].mxu1 %v6826_v51  ;;  %v7870_v51 = vld [vmem:[#allocation26_spill] sm:$0xff] }
 0x60b   :  { %4708 = vmatpush1.bf16.msra.mxu0 %v5955_v21  ;;  %4740 = vmatpush1.bf16.msra.mxu1 %v6082_v30 }
 0x60c   :  { %4710 = vmatprep.subr.bf16.mxu0 %v5958_v22  ;;  %4742 = vmatprep.subr.bf16.mxu1 %v6085_v31  ;;  %v7875_v31 = vld [vmem:[#allocation44_spill] sm:$0xff] }
 0x60d   :  { %2587 = vmatprep.mubr.f32.mxu0 %v7647_v0  ;;  %2658 = vmatprep.mubr.f32.mxu1 %v7647_v0  ;;  %v7876_v0 = vld [vmem:[#allocation29_spill] sm:$0xff]  ;;  %v7894_v22 = vld [vmem:[#allocation56_spill] sm:$0xff] }
 0x60f   :  { %4712 = vmatpush1.bf16.msra.mxu0 %v7866_v49  ;;  %4744 = vmatpush1.bf16.msra.mxu1 %v7867_v59  ;;  %v7877_v49 = vld [vmem:[#allocation45_spill] sm:$0xff]  ;;  %v7878_v59 = vld [vmem:[#allocation30_spill] sm:$0xff] }
 0x610   :  { %4714 = vmatprep.subr.bf16.mxu0 %v7868_v48  ;;  %4746 = vmatprep.subr.bf16.mxu1 %v7869_v44  ;;  %v7879_v48 = vld [vmem:[#allocation46_spill] sm:$0xff]  ;;  %v7880_v44 = vld [vmem:[#allocation31_spill] sm:$0xff] }
 0x613   :  { %4716 = vmatpush1.bf16.msra.mxu0 %v7870_v51  ;;  %4748 = vmatpush1.bf16.msra.mxu1 %v7871_v10  ;;  %v7881_v51 = vld [vmem:[#allocation47_spill] sm:$0xff]  ;;  %v7882_v10 = vld [vmem:[#allocation32_spill] sm:$0xff] }
 0x614   :  { %4718 = vmatprep.subr.bf16.mxu0 %v7872_v19  ;;  %4750 = vmatprep.subr.bf16.mxu1 %v7873_v39  ;;  %v7883_v19 = vld [vmem:[#allocation48_spill] sm:$0xff]  ;;  %v7884_v39 = vld [vmem:[#allocation33_spill] sm:$0xff] }
 0x617   :  { %4720 = vmatpush1.bf16.msra.mxu0 %v7874_v9  ;;  %4752 = vmatpush1.bf16.msra.mxu1 %v7875_v31  ;;  %v7885_v9 = vld [vmem:[#allocation49_spill] sm:$0xff]  ;;  %v7886_v31 = vld [vmem:[#allocation34_spill] sm:$0xff] }
 0x618   :  { %4722 = vmatprep.subr.bf16.mxu0 %v7876_v0  ;;  %4754 = vmatprep.subr.bf16.mxu1 %v7877_v49  ;;  %v7887_v0 = vld [vmem:[#allocation50_spill] sm:$0xff]  ;;  %v7888_v49 = vld [vmem:[#allocation35_spill] sm:$0xff] }
 0x61b   :  { %4724 = vmatpush1.bf16.msra.mxu0 %v7878_v59  ;;  %4756 = vmatpush1.bf16.msra.mxu1 %v7879_v48  ;;  %v7889_v59 = vld [vmem:[#allocation51_spill] sm:$0xff]  ;;  %v7890_v48 = vld [vmem:[#allocation36_spill] sm:$0xff] }
 0x61c   :  { %4726 = vmatprep.subr.bf16.mxu0 %v7880_v44  ;;  %4758 = vmatprep.subr.bf16.mxu1 %v7881_v51  ;;  %v7891_v44 = vld [vmem:[#allocation52_spill] sm:$0xff]  ;;  %v7892_v51 = vld [vmem:[#allocation53_spill] sm:$0xff] }
 0x61f   :  { %4728 = vmatpush1.bf16.msra.mxu0 %v7882_v10  ;;  %4760 = vmatpush1.bf16.msra.mxu1 %v7883_v19  ;;  %v7893_v10 = vld [vmem:[#allocation54_spill] sm:$0xff] }
 0x620   :  { %4730 = vmatprep.subr.bf16.mxu0 %v7884_v39  ;;  %4762 = vmatprep.subr.bf16.mxu1 %v7885_v9 }
 0x623   :  { %4732 = vmatpush1.bf16.msra.mxu0 %v7886_v31  ;;  %4764 = vmatpush1.bf16.msra.mxu1 %v7887_v0 }
 0x624   :  { %4734 = vmatprep.subr.bf16.mxu0 %v7888_v49  ;;  %4766 = vmatprep.subr.bf16.mxu1 %v7889_v59 }
 0x627   :  { %4736 = vmatpush1.bf16.msra.mxu0 %v7890_v48  ;;  %4768 = vmatpush1.bf16.msra.mxu1 %v7891_v44 }
 0x628   :  { %4770 = vmatprep.subr.bf16.mxu0 %v7892_v51  ;;  %4834 = vmatprep.subr.bf16.mxu1 %v7893_v10 }
 0x699   :  { %v2252_v19 = vpop.f32.mrb[10].mxu0  ;;  %v2323_v39 = vpop.f32.mrb[10].mxu1 }
 0x69a   :  { %v5261_v9 = vadd.f32 %v2252_v19, %v7894_v22  ;;  %v2254_v30 = vpop.f32.mrb[11].mxu0  ;;  %v2325_v31 = vpop.f32.mrb[11].mxu1  ;;  %v5277_v44 = vadd.f32 %v2323_v39, %v7713_v53  ;;  %v7901_v39 = vld [vmem:[#allocation70_spill] sm:$0xff] }
 0x69b   :  { %v5262_v0 = vadd.f32 %v2254_v30, %v7774_v55  ;;  %v5278_v48 = vadd.f32 %v2325_v31, %v6196_v18 }
 0x69c   :  { %v3575_v21 = vmul.f32 -1.442695, %v5261_v9 }
 0x69d   :  { %v3576_v49 = vmul.f32 -1.442695, %v5262_v0  ;;  %v3577_v59 = vmul.f32 -1.442695, %v5278_v48 }
 0x69e   :  { %5470 = vpow2.f32 %v3575_v21 }
 0x69f   :  { %5472 = vpow2.f32 %v3576_v49 }
 0x6a0   :  { %5474 = vpow2.f32 %v3577_v59 }
 0x6a1   :  { %5476 = vtanh.f32 %v5277_v44  ;;  %v7899_v44 = vld [vmem:[#allocation68_spill] sm:$0xff] }
 0x6a8   :  { %v5471_v51 = vpop.eup %5470 }
 0x6a9   :  { %v5473_v23 = vpop.eup %5472  ;;  %v2477_v10 = vadd.f32 1.0, %v5471_v51 }
 0x6aa   :  { %v2483_v15 = vadd.f32 1.0, %v5473_v23  ;;  %v5475_v19 = vpop.eup %5474  ;;  %v7897_v23 = vld [vmem:[#allocation66_spill] sm:$0xff] }
 0x6ab   :  { %5478 = vrcp.f32 %v2477_v10  ;;  %v5477_v22 = vpop.eup %5476  ;;  %v2490_v21 = vadd.f32 1.0, %v5475_v19  ;;  %v7900_v10 = vld [vmem:[#allocation69_spill] sm:$0xff]  ;;  %v7902_v19 = vld [vmem:[#allocation71_spill] sm:$0xff] }
 0x6ac   :  { %5480 = vrcp.f32 %v2483_v15  ;;  %v7895_v15 = vld [vmem:[#allocation64_spill] sm:$0xff] }
 0x6ad   :  { %5482 = vrcp.f32 %v2490_v21  ;;  %v7906_v21 = vld [vmem:[#allocation75_spill] sm:$0xff] }
 0x6b5   :  { %v5479_v30 = vpop.eup %5478 }
 0x6b6   :  { %v5481_v9 = vpop.eup %5480  ;;  %v2494_v0 = vmul.f32 %v5479_v30, %v5477_v22  ;;  %v7896_v22 = vld [vmem:[#allocation65_spill] sm:$0xff]  ;;  %v7903_v30 = vld [vmem:[#allocation72_spill] sm:$0xff] }
 0x6b7   :  { %v2493_v49 = vmul.f32 %v5481_v9, %v6823_v62  ;;  %v5483_v48 = vpop.eup %5482  ;;  %v7898_v62 = vld [vmem:[#allocation67_spill] sm:$0xff]  ;;  %v7904_v9 = vld [vmem:[#allocation73_spill] sm:$0xff] }
 0x6b9   :  { %v6947_v31 = vadd.f32 %v2494_v0, %v2493_v49  ;;  %v7905_v0 = vld [vmem:[#allocation74_spill] sm:$0xff]  ;;  %v7907_v49 = vld [vmem:[#allocation76_spill] sm:$0xff] }
 0x6bb   :  { %5484 = vtanh.f32 %v6947_v31 }
 0x6c5   :  { %v5485_v51 = vpop.eup %5484 }
 0x6c6   :  { %v6950_v59 = vmul.f32 %v5485_v51, %v5483_v48  ;;  %v7908_v48 = vld [vmem:[#allocation77_spill] sm:$0xff]  ;;  %v7909_v51 = vld [vmem:[#allocation78_spill] sm:$0xff] }
 0x6c8   :  { %2588 = vmatmul.mubr.f32.vlgmr.msra.gmra.mrb[12].mxu0 %v6950_v59  ;;  %2659 = vmatmul.mubr.f32.vlgmr.msra.gmra.mrb[12].mxu1 %v6950_v59 }
 0x6c9   :  { %4772 = vmatpush1.bf16.msra.mxu0 %v7715_v5  ;;  %4836 = vmatpush1.bf16.msra.mxu1 %v7775_v54 }
 0x6ca   :  { %4774 = vmatprep.subr.bf16.mxu0 %v7835_v28  ;;  %4838 = vmatprep.subr.bf16.mxu1 %v7836_v42 }
 0x6cd   :  { %4776 = vmatpush1.bf16.msra.mxu0 %v7895_v15  ;;  %4840 = vmatpush1.bf16.msra.mxu1 %v7896_v22 }
 0x6ce   :  { %4778 = vmatprep.subr.bf16.mxu0 %v7897_v23  ;;  %4842 = vmatprep.subr.bf16.mxu1 %v7898_v62 }
 0x6d1   :  { %4780 = vmatpush1.bf16.msra.mxu0 %v7899_v44  ;;  %4844 = vmatpush1.bf16.msra.mxu1 %v7900_v10  ;;  %v7910_v44 = vld [vmem:[#allocation79_spill] sm:$0xff] }
 0x6d2   :  { %4782 = vmatprep.subr.bf16.mxu0 %v7901_v39  ;;  %4846 = vmatprep.subr.bf16.mxu1 %v7902_v19  ;;  %v7911_v19 = vld [vmem:[#allocation81_spill] sm:$0xff] }
 0x6d5   :  { %4784 = vmatpush1.bf16.msra.mxu0 %v7903_v30  ;;  %4848 = vmatpush1.bf16.msra.mxu1 %v7904_v9  ;;  %v7912_v30 = vld [vmem:[#allocation55_spill] sm:$0xff] }
 0x6d6   :  { %4786 = vmatprep.subr.bf16.mxu0 %v7905_v0  ;;  %4850 = vmatprep.subr.bf16.mxu1 %v7906_v21 }
 0x6d9   :  { %4788 = vmatpush1.bf16.msra.mxu0 %v7907_v49  ;;  %4852 = vmatpush1.bf16.msra.mxu1 %v7908_v48 }
 0x6da   :  { %4790 = vmatprep.subr.bf16.mxu0 %v7909_v51  ;;  %4854 = vmatprep.subr.bf16.mxu1 %v7910_v44 }
 0x6dd   :  { %v2398_v10 = vpop.f32.mrb[24].mxu0  ;;  %v2469_v39 = vpop.f32.mrb[26].mxu1  ;;  %4792 = vmatpush1.bf16.msra.mxu0 %v7853_v37  ;;  %4856 = vmatpush1.bf16.msra.mxu1 %v7911_v19 }
 0x6de   :  { %v2399_v9 = vadd.f32 %v2398_v10, %v7912_v30  ;;  %v2400_v62 = vpop.f32.mrb[25].mxu0  ;;  %v2471_v0 = vpop.f32.mrb[27].mxu1  ;;  %4794 = vmatprep.subr.bf16.mxu0 %v7796_v12  ;;  %4858 = vmatprep.subr.bf16.mxu1 %v7855_v20  ;;  %v7913_v30 = vld [vmem:[#allocation88_spill] sm:$0xff]  ;;  %v7914_v12 = vld [vmem:[#allocation89_spill] sm:$0xff] }
 0x6df   :  { %v2401_v48 = vadd.f32 %v2400_v62, %v7854_v13  ;;  %v2472_v10 = vadd.f32 %v2471_v0, %v7801_v45 }
 0x6e0   :  { %v3578_v49 = vmul.f32 -1.442695, %v2399_v9  ;;  %v2470_v9 = vadd.f32 %v2469_v39, %v7746_v4  ;;  %v7915_v39 = vld [vmem:[#allocation100_spill] sm:$0xff] }
 0x6e1   :  { %v3579_v51 = vmul.f32 -1.442695, %v2401_v48  ;;  %4796 = vmatpush1.bf16.msra.mxu0 %v7856_v11  ;;  %4860 = vmatpush1.bf16.msra.mxu1 %v7857_v32  ;;  %v3580_v62 = vmul.f32 -1.442695, %v2472_v10  ;;  %v7916_v10 = vld [vmem:[#allocation103_spill] sm:$0xff] }
 0x6e2   :  { %5486 = vpow2.f32 %v3578_v49  ;;  %4798 = vmatprep.subr.bf16.mxu0 %v7858_v46  ;;  %4862 = vmatprep.subr.bf16.mxu1 %v7800_v52 }
 0x6e3   :  { %5488 = vpow2.f32 %v3579_v51 }
 0x6e4   :  { %5490 = vpow2.f32 %v3580_v62  ;;  %v7917_v62 = vld [vmem:[#allocation105_spill] sm:$0xff] }
 0x6e5   :  { %4800 = vmatpush1.bf16.msra.mxu0 %v7913_v30  ;;  %4864 = vmatpush1.bf16.msra.mxu1 %v7914_v12  ;;  %5492 = vtanh.f32 %v2470_v9 }
 0x6e6   :  { %4802 = vmatprep.subr.bf16.mxu0 %v7803_v27  ;;  %4866 = vmatprep.subr.bf16.mxu1 %v7804_v16 }
 0x6e9   :  { %4804 = vmatpush1.bf16.msra.mxu0 %v7805_v8  ;;  %4868 = vmatpush1.bf16.msra.mxu1 %v7806_v61 }
 0x6ea   :  { %4806 = vmatprep.subr.bf16.mxu0 %v7861_v41  ;;  %4870 = vmatprep.subr.bf16.mxu1 %v7750_v6 }
 0x6ec   :  { %v5487_v0 = vpop.eup %5486 }
 0x6ed   :  { %v5489_v49 = vpop.eup %5488  ;;  %v2501_v48 = vadd.f32 1.0, %v5487_v0  ;;  %4808 = vmatpush1.bf16.msra.mxu0 %v7751_v60  ;;  %4872 = vmatpush1.bf16.msra.mxu1 %v7752_v33 }
 0x6ee   :  { %v2507_v51 = vadd.f32 1.0, %v5489_v49  ;;  %4810 = vmatprep.subr.bf16.mxu0 %v7753_v7  ;;  %4874 = vmatprep.subr.bf16.mxu1 %v7808_v50  ;;  %v5491_v9 = vpop.eup %5490 }
 0x6ef   :  { %5494 = vrcp.f32 %v2501_v48  ;;  %v5493_v0 = vpop.eup %5492 }
 0x6f0   :  { %5496 = vrcp.f32 %v2507_v51 }
 0x6f1   :  { %4812 = vmatpush1.bf16.msra.mxu0 %v7915_v39  ;;  %4876 = vmatpush1.bf16.msra.mxu1 %v7863_v38 }
 0x6f2   :  { %4814 = vmatprep.subr.bf16.mxu0 %v7757_v2  ;;  %4878 = vmatprep.subr.bf16.mxu1 %v7916_v10  ;;  %v2514_v2 = vadd.f32 1.0, %v5491_v9 }
 0x6f4   :  { %5498 = vrcp.f32 %v2514_v2  ;;  %v7919_v2 = vld [vmem:[#allocation37_spill] sm:$0xff] }
 0x6f5   :  { %4816 = vmatpush1.bf16.msra.mxu0 %v7811_v25  ;;  %4880 = vmatpush1.bf16.msra.mxu1 %v7917_v62 }
 0x6f6   :  { %4818 = vmatprep.subr.bf16.mxu0 %v7702_v36  ;;  %4882 = vmatprep.subr.bf16.mxu1 %v7703_v47 }
 0x6f9   :  { %v5495_v49 = vpop.eup %5494  ;;  %4820 = vmatpush1.bf16.msra.mxu0 %v7704_v26  ;;  %4884 = vmatpush1.bf16.msra.mxu1 %v7705_v34 }
 0x6fa   :  { %v5497_v48 = vpop.eup %5496  ;;  %v2518_v51 = vmul.f32 %v5495_v49, %v5493_v0  ;;  %4822 = vmatprep.subr.bf16.mxu0 %v6355_v56  ;;  %4886 = vmatprep.subr.bf16.mxu1 %v6357_v1  ;;  %v7921_v49 = vld [vmem:[#allocation22_spill] sm:$0xff] }
 0x6fb   :  { %v2517_v62 = vmul.f32 %v5497_v48, %v6887_v14  ;;  %v7918_v14 = vld [vmem:[#allocation21_spill] sm:$0xff]  ;;  %v7922_v48 = vld [vmem:[#allocation38_spill] sm:$0xff] }
 0x6fd   :  { %4824 = vmatpush1.bf16.msra.mxu0 %v6361_v57  ;;  %4888 = vmatpush1.bf16.msra.mxu1 %v6363_v58  ;;  %v7013_v47 = vadd.f32 %v2518_v51, %v2517_v62  ;;  %v7923_v51 = vld [vmem:[#allocation23_spill] sm:$0xff] }
 0x6fe   :  { %4826 = vmatprep.subr.bf16.mxu0 %v6367_v17  ;;  %4890 = vmatprep.subr.bf16.mxu1 %v6369_v24  ;;  %v5499_v62 = vpop.eup %5498 }
 0x6ff   :  { %5500 = vtanh.f32 %v7013_v47 }
 0x701   :  { %4828 = vmatpush1.bf16.msra.mxu0 %v6373_v35  ;;  %4892 = vmatpush1.bf16.msra.mxu1 %v6375_v29 }
 0x702   :  { %4830 = vmatprep.subr.bf16.mxu0 %v6379_v40  ;;  %4894 = vmatprep.subr.bf16.mxu1 %v6381_v43  ;;  %v7954_v43 = vld [vmem:[#allocation56_spill] sm:$0xff] }
 0x705   :  { %4832 = vmatpush1.bf16.msra.mxu0 %v6385_v3  ;;  %4896 = vmatpush1.bf16.msra.mxu1 %v6387_v63  ;;  %v7929_v63 = vld [vmem:[#allocation41_spill] sm:$0xff]  ;;  %v7935_v3 = vld [vmem:[#allocation44_spill] sm:$0xff] }
 0x706   :  { %4898 = vmatprep.subr.bf16.mxu0 %v7918_v14  ;;  %4930 = vmatprep.subr.bf16.mxu1 %v7919_v2  ;;  %v7924_v14 = vld [vmem:[#allocation39_spill] sm:$0xff]  ;;  %v7925_v2 = vmov 0.0  }
 0x709   :  { %v5501_v9 = vpop.eup %5500 }
 0x70a   :  { %v7026_v0 = vmul.f32 %v5501_v9, %v5499_v62  ;;  %v7926_v62 = vld [vmem:[#allocation24_spill] sm:$0xff] }
 0x70b   :  { %v7927_v9 = vld [vmem:[#allocation40_spill] sm:$0xff] }
 0x70c   :  { %7920 = vst [vmem:[#allocation60_spill] sm:$0xff] %v7026_v0  ;;  %2733 = vmatprep.mubr.f32.mxu0 %v7026_v0  ;;  %2804 = vmatprep.mubr.f32.mxu1 %v7026_v0  ;;  %v7928_v0 = vld [vmem:[#allocation25_spill] sm:$0xff] }
 0x70d   :  { %2734 = vmatmul.mubr.f32.vlgmr.msra.gmra.mrb[26].mxu0 %v6950_v59  ;;  %2805 = vmatmul.mubr.f32.vlgmr.msra.gmra.mrb[28].mxu1 %v6950_v59  ;;  %v7930_v59 = vld [vmem:[#allocation26_spill] sm:$0xff] }
 0x70e   :  { %4900 = vmatpush1.bf16.msra.mxu0 %v7921_v49  ;;  %4932 = vmatpush1.bf16.msra.mxu1 %v7922_v48  ;;  %v7931_v49 = vld [vmem:[#allocation42_spill] sm:$0xff]  ;;  %v7932_v48 = vld [vmem:[#allocation27_spill] sm:$0xff] }
 0x70f   :  { %4902 = vmatprep.subr.bf16.mxu0 %v7923_v51  ;;  %4934 = vmatprep.subr.bf16.mxu1 %v7924_v14  ;;  %v7933_v51 = vld [vmem:[#allocation43_spill] sm:$0xff]  ;;  %v7934_v14 = vld [vmem:[#allocation28_spill] sm:$0xff] }
 0x710   :  { %2924 = vmatprep.mubr.f32.mxu0 %v7925_v2  ;;  %2995 = vmatprep.mubr.f32.mxu1 %v7925_v2  ;;  %v7936_v2 = vld [vmem:[#allocation29_spill] sm:$0xff] }
 0x712   :  { %4904 = vmatpush1.bf16.msra.mxu0 %v7926_v62  ;;  %4936 = vmatpush1.bf16.msra.mxu1 %v7927_v9  ;;  %v7937_v62 = vld [vmem:[#allocation45_spill] sm:$0xff]  ;;  %v7938_v9 = vld [vmem:[#allocation30_spill] sm:$0xff] }
 0x713   :  { %4906 = vmatprep.subr.bf16.mxu0 %v7928_v0  ;;  %4938 = vmatprep.subr.bf16.mxu1 %v7929_v63  ;;  %v7939_v0 = vld [vmem:[#allocation46_spill] sm:$0xff]  ;;  %v7940_v63 = vld [vmem:[#allocation31_spill] sm:$0xff] }
 0x716   :  { %4908 = vmatpush1.bf16.msra.mxu0 %v7930_v59  ;;  %4940 = vmatpush1.bf16.msra.mxu1 %v7931_v49  ;;  %v7941_v59 = vld [vmem:[#allocation47_spill] sm:$0xff]  ;;  %v7942_v49 = vld [vmem:[#allocation32_spill] sm:$0xff] }
 0x717   :  { %4910 = vmatprep.subr.bf16.mxu0 %v7932_v48  ;;  %4942 = vmatprep.subr.bf16.mxu1 %v7933_v51  ;;  %v7943_v48 = vld [vmem:[#allocation48_spill] sm:$0xff]  ;;  %v7944_v51 = vld [vmem:[#allocation33_spill] sm:$0xff] }
 0x71a   :  { %4912 = vmatpush1.bf16.msra.mxu0 %v7934_v14  ;;  %4944 = vmatpush1.bf16.msra.mxu1 %v7935_v3  ;;  %v7945_v14 = vld [vmem:[#allocation49_spill] sm:$0xff]  ;;  %v7946_v3 = vld [vmem:[#allocation34_spill] sm:$0xff] }
 0x71b   :  { %4914 = vmatprep.subr.bf16.mxu0 %v7936_v2  ;;  %4946 = vmatprep.subr.bf16.mxu1 %v7937_v62  ;;  %v7947_v2 = vld [vmem:[#allocation50_spill] sm:$0xff]  ;;  %v7948_v62 = vld [vmem:[#allocation35_spill] sm:$0xff] }
 0x71e   :  { %4916 = vmatpush1.bf16.msra.mxu0 %v7938_v9  ;;  %4948 = vmatpush1.bf16.msra.mxu1 %v7939_v0  ;;  %v7949_v9 = vld [vmem:[#allocation51_spill] sm:$0xff]  ;;  %v7950_v0 = vld [vmem:[#allocation36_spill] sm:$0xff] }
 0x71f   :  { %4918 = vmatprep.subr.bf16.mxu0 %v7940_v63  ;;  %4950 = vmatprep.subr.bf16.mxu1 %v7941_v59  ;;  %v7951_v63 = vld [vmem:[#allocation52_spill] sm:$0xff]  ;;  %v7952_v59 = vld [vmem:[#allocation53_spill] sm:$0xff] }
 0x722   :  { %4920 = vmatpush1.bf16.msra.mxu0 %v7942_v49  ;;  %4952 = vmatpush1.bf16.msra.mxu1 %v7943_v48  ;;  %v7953_v49 = vld [vmem:[#allocation54_spill] sm:$0xff] }
 0x723   :  { %4922 = vmatprep.subr.bf16.mxu0 %v7944_v51  ;;  %4954 = vmatprep.subr.bf16.mxu1 %v7945_v14 }
 0x726   :  { %4924 = vmatpush1.bf16.msra.mxu0 %v7946_v3  ;;  %4956 = vmatpush1.bf16.msra.mxu1 %v7947_v2 }
 0x727   :  { %4926 = vmatprep.subr.bf16.mxu0 %v7948_v62  ;;  %4958 = vmatprep.subr.bf16.mxu1 %v7949_v9 }
 0x72a   :  { %4928 = vmatpush1.bf16.msra.mxu0 %v7950_v0  ;;  %4960 = vmatpush1.bf16.msra.mxu1 %v7951_v63 }
 0x72b   :  { %4962 = vmatprep.subr.bf16.mxu0 %v7952_v59  ;;  %5026 = vmatprep.subr.bf16.mxu1 %v7953_v49 }
 0x79b   :  { %v2589_v48 = vpop.f32.mrb[12].mxu0  ;;  %v2660_v51 = vpop.f32.mrb[12].mxu1 }
 0x79c   :  { %v5263_v14 = vadd.f32 %v2589_v48, %v7954_v43  ;;  %v2591_v40 = vpop.f32.mrb[13].mxu0  ;;  %v2662_v3 = vpop.f32.mrb[13].mxu1  ;;  %v5279_v63 = vadd.f32 %v2660_v51, %v7713_v53 }
 0x79d   :  { %v5264_v2 = vadd.f32 %v2591_v40, %v7774_v55  ;;  %v5280_v9 = vadd.f32 %v2662_v3, %v6196_v18 }
 0x79e   :  { %v3581_v29 = vmul.f32 -1.442695, %v5263_v14 }
 0x79f   :  { %v3582_v62 = vmul.f32 -1.442695, %v5264_v2  ;;  %v3583_v0 = vmul.f32 -1.442695, %v5280_v9 }
 0x7a0   :  { %5502 = vpow2.f32 %v3581_v29 }
 0x7a1   :  { %5504 = vpow2.f32 %v3582_v62 }
 0x7a2   :  { %5506 = vpow2.f32 %v3583_v0  ;;  %v7961_v0 = vld [vmem:[#allocation72_spill] sm:$0xff] }
 0x7a3   :  { %5508 = vtanh.f32 %v5279_v63  ;;  %v7962_v63 = vld [vmem:[#allocation73_spill] sm:$0xff] }
 0x7aa   :  { %v5503_v59 = vpop.eup %5502 }
 0x7ab   :  { %v5505_v35 = vpop.eup %5504  ;;  %v2814_v49 = vadd.f32 1.0, %v5503_v59 }
 0x7ac   :  { %v2820_v24 = vadd.f32 1.0, %v5505_v35  ;;  %v5507_v48 = vpop.eup %5506  ;;  %v7957_v35 = vld [vmem:[#allocation68_spill] sm:$0xff] }
 0x7ad   :  { %5510 = vrcp.f32 %v2814_v49  ;;  %v5509_v43 = vpop.eup %5508  ;;  %v2827_v29 = vadd.f32 1.0, %v5507_v48  ;;  %v7960_v49 = vld [vmem:[#allocation71_spill] sm:$0xff]  ;;  %v7963_v48 = vld [vmem:[#allocation74_spill] sm:$0xff] }
 0x7ae   :  { %5512 = vrcp.f32 %v2820_v24  ;;  %v7956_v24 = vld [vmem:[#allocation67_spill] sm:$0xff] }
 0x7af   :  { %5514 = vrcp.f32 %v2827_v29 }
 0x7b7   :  { %v5511_v40 = vpop.eup %5510 }
 0x7b8   :  { %v5513_v14 = vpop.eup %5512  ;;  %v2831_v2 = vmul.f32 %v5511_v40, %v5509_v43  ;;  %v7958_v43 = vld [vmem:[#allocation69_spill] sm:$0xff]  ;;  %v7964_v40 = vld [vmem:[#allocation76_spill] sm:$0xff] }
 0x7b9   :  { %v2830_v62 = vmul.f32 %v5513_v14, %v6947_v31  ;;  %v5515_v51 = vpop.eup %5514  ;;  %v7959_v31 = vld [vmem:[#allocation70_spill] sm:$0xff]  ;;  %v7965_v14 = vld [vmem:[#allocation77_spill] sm:$0xff] }
 0x7bb   :  { %v7071_v3 = vadd.f32 %v2831_v2, %v2830_v62  ;;  %v7966_v2 = vld [vmem:[#allocation78_spill] sm:$0xff] }
 0x7bd   :  { %7955 = vst [vmem:[#allocation95_spill] sm:$0xff] %v7071_v3  ;;  %5516 = vtanh.f32 %v7071_v3 }
 0x7c7   :  { %v5517_v59 = vpop.eup %5516 }
 0x7c8   :  { %v7074_v9 = vmul.f32 %v5517_v59, %v5515_v51  ;;  %v7967_v51 = vld [vmem:[#allocation82_spill] sm:$0xff]  ;;  %v7968_v59 = vld [vmem:[#allocation55_spill] sm:$0xff] }
 0x7ca   :  { %2925 = vmatmul.mubr.f32.vlgmr.msra.gmra.mrb[14].mxu0 %v7074_v9  ;;  %2996 = vmatmul.mubr.f32.vlgmr.msra.gmra.mrb[14].mxu1 %v7074_v9 }
 0x7cb   :  { %4964 = vmatpush1.bf16.msra.mxu0 %v7715_v5  ;;  %5028 = vmatpush1.bf16.msra.mxu1 %v7775_v54 }
 0x7cc   :  { %4966 = vmatprep.subr.bf16.mxu0 %v7835_v28  ;;  %5030 = vmatprep.subr.bf16.mxu1 %v7836_v42 }
 0x7cf   :  { %4968 = vmatpush1.bf16.msra.mxu0 %v7895_v15  ;;  %5032 = vmatpush1.bf16.msra.mxu1 %v7896_v22 }
 0x7d0   :  { %4970 = vmatprep.subr.bf16.mxu0 %v7897_v23  ;;  %5034 = vmatprep.subr.bf16.mxu1 %v7956_v24 }
 0x7d3   :  { %4972 = vmatpush1.bf16.msra.mxu0 %v7957_v35  ;;  %5036 = vmatpush1.bf16.msra.mxu1 %v7958_v43 }
 0x7d4   :  { %4974 = vmatprep.subr.bf16.mxu0 %v7959_v31  ;;  %5038 = vmatprep.subr.bf16.mxu1 %v7960_v49 }
 0x7d7   :  { %4976 = vmatpush1.bf16.msra.mxu0 %v7961_v0  ;;  %5040 = vmatpush1.bf16.msra.mxu1 %v7962_v63 }
 0x7d8   :  { %4978 = vmatprep.subr.bf16.mxu0 %v7963_v48  ;;  %5042 = vmatprep.subr.bf16.mxu1 %v7906_v21 }
 0x7db   :  { %4980 = vmatpush1.bf16.msra.mxu0 %v7964_v40  ;;  %5044 = vmatpush1.bf16.msra.mxu1 %v7965_v14 }
 0x7dc   :  { %4982 = vmatprep.subr.bf16.mxu0 %v7966_v2  ;;  %5046 = vmatprep.subr.bf16.mxu1 %v7910_v44 }
 0x7df   :  { %4984 = vmatpush1.bf16.msra.mxu0 %v7853_v37  ;;  %5048 = vmatpush1.bf16.msra.mxu1 %v7911_v19 }
 0x7e0   :  { %v2735_v29 = vpop.f32.mrb[26].mxu0  ;;  %v2806_v62 = vpop.f32.mrb[28].mxu1  ;;  %4986 = vmatprep.subr.bf16.mxu0 %v7967_v51  ;;  %5050 = vmatprep.subr.bf16.mxu1 %v7855_v20 }
 0x7e1   :  { %v2736_v3 = vadd.f32 %v2735_v29, %v7968_v59  ;;  %v2737_v53 = vpop.f32.mrb[27].mxu0  ;;  %v2808_v18 = vpop.f32.mrb[29].mxu1 }
 0x7e2   :  { %v2738_v55 = vadd.f32 %v2737_v53, %v7854_v13  ;;  %v2809_v29 = vadd.f32 %v2808_v18, %v7801_v45  ;;  %v2807_v53 = vadd.f32 %v2806_v62, %v7746_v4  ;;  %v7969_v62 = vld [vmem:[#allocation102_spill] sm:$0xff]  ;;  %v7972_v13 = vld [vmem:[#allocation112_spill] sm:$0xff] }
 0x7e3   :  { %v3584_v14 = vmul.f32 -1.442695, %v2736_v3  ;;  %4988 = vmatpush1.bf16.msra.mxu0 %v7856_v11  ;;  %5052 = vmatpush1.bf16.msra.mxu1 %v7857_v32 }
 0x7e4   :  { %v3585_v37 = vmul.f32 -1.442695, %v2738_v55  ;;  %4990 = vmatprep.subr.bf16.mxu0 %v7858_v46  ;;  %5054 = vmatprep.subr.bf16.mxu1 %v7800_v52  ;;  %v3586_v55 = vmul.f32 -1.442695, %v2809_v29  ;;  %v7970_v29 = vld [vmem:[#allocation105_spill] sm:$0xff] }
 0x7e5   :  { %5518 = vpow2.f32 %v3584_v14 }
 0x7e6   :  { %5520 = vpow2.f32 %v3585_v37 }
 0x7e7   :  { %4992 = vmatpush1.bf16.msra.mxu0 %v7913_v30  ;;  %5056 = vmatpush1.bf16.msra.mxu1 %v7914_v12  ;;  %5522 = vpow2.f32 %v3586_v55  ;;  %v7971_v55 = vld [vmem:[#allocation107_spill] sm:$0xff] }
 0x7e8   :  { %4994 = vmatprep.subr.bf16.mxu0 %v7803_v27  ;;  %5058 = vmatprep.subr.bf16.mxu1 %v7804_v16  ;;  %5524 = vtanh.f32 %v2807_v53 }
 0x7eb   :  { %4996 = vmatpush1.bf16.msra.mxu0 %v7805_v8  ;;  %5060 = vmatpush1.bf16.msra.mxu1 %v7806_v61 }
 0x7ec   :  { %4998 = vmatprep.subr.bf16.mxu0 %v7861_v41  ;;  %5062 = vmatprep.subr.bf16.mxu1 %v7750_v6 }
 0x7ef   :  { %v5519_v37 = vpop.eup %5518  ;;  %5000 = vmatpush1.bf16.msra.mxu0 %v7751_v60  ;;  %5064 = vmatpush1.bf16.msra.mxu1 %v7752_v33 }
 0x7f0   :  { %v5521_v18 = vpop.eup %5520  ;;  %v2838_v3 = vadd.f32 1.0, %v5519_v37  ;;  %5002 = vmatprep.subr.bf16.mxu0 %v7753_v7  ;;  %5066 = vmatprep.subr.bf16.mxu1 %v7808_v50 }
 0x7f1   :  { %v2844_v14 = vadd.f32 1.0, %v5521_v18  ;;  %v5523_v53 = vpop.eup %5522 }
 0x7f2   :  { %5526 = vrcp.f32 %v2838_v3  ;;  %v5525_v37 = vpop.eup %5524  ;;  %v2851_v4 = vadd.f32 1.0, %v5523_v53  ;;  %v7975_v53 = vld [vmem:[#allocation115_spill] sm:$0xff] }
 0x7f3   :  { %5528 = vrcp.f32 %v2844_v14  ;;  %5004 = vmatpush1.bf16.msra.mxu0 %v7915_v39  ;;  %5068 = vmatpush1.bf16.msra.mxu1 %v7863_v38 }
 0x7f4   :  { %5006 = vmatprep.subr.bf16.mxu0 %v7969_v62  ;;  %5070 = vmatprep.subr.bf16.mxu1 %v7916_v10  ;;  %5530 = vrcp.f32 %v2851_v4 }
 0x7f7   :  { %5008 = vmatpush1.bf16.msra.mxu0 %v7811_v25  ;;  %5072 = vmatpush1.bf16.msra.mxu1 %v7970_v29 }
 0x7f8   :  { %5010 = vmatprep.subr.bf16.mxu0 %v7702_v36  ;;  %5074 = vmatprep.subr.bf16.mxu1 %v7971_v55 }
 0x7fb   :  { %5012 = vmatpush1.bf16.msra.mxu0 %v7704_v26  ;;  %5076 = vmatpush1.bf16.msra.mxu1 %v7705_v34 }
 0x7fc   :  { %v5527_v18 = vpop.eup %5526  ;;  %5014 = vmatprep.subr.bf16.mxu0 %v6355_v56  ;;  %5078 = vmatprep.subr.bf16.mxu1 %v6357_v1  ;;  %v7973_v56 = vld [vmem:[#allocation113_spill] sm:$0xff]  ;;  %v7974_v1 = vld [vmem:[#allocation114_spill] sm:$0xff] }
 0x7fd   :  { %v5529_v3 = vpop.eup %5528  ;;  %v2855_v14 = vmul.f32 %v5527_v18, %v5525_v37  ;;  %v7977_v37 = vld [vmem:[#allocation117_spill] sm:$0xff]  ;;  %v7978_v18 = vld [vmem:[#allocation118_spill] sm:$0xff] }
 0x7fe   :  { %v2854_v45 = vmul.f32 %v5529_v3, %v7013_v47  ;;  %v7976_v47 = vld [vmem:[#allocation116_spill] sm:$0xff]  ;;  %v7979_v3 = vld [vmem:[#allocation53_spill] sm:$0xff] }
 0x7ff   :  { %5016 = vmatpush1.bf16.msra.mxu0 %v6361_v57  ;;  %5080 = vmatpush1.bf16.msra.mxu1 %v6363_v58 }
 0x800   :  { %5018 = vmatprep.subr.bf16.mxu0 %v6367_v17  ;;  %5082 = vmatprep.subr.bf16.mxu1 %v7972_v13  ;;  %v7139_v59 = vadd.f32 %v2855_v14, %v2854_v45  ;;  %v7980_v13 = vld [vmem:[#allocation54_spill] sm:$0xff]  ;;  %v5531_v45 = vpop.eup %5530 }
 0x802   :  { %5532 = vtanh.f32 %v7139_v59 }
 0x803   :  { %5020 = vmatpush1.bf16.msra.mxu0 %v7973_v56  ;;  %5084 = vmatpush1.bf16.msra.mxu1 %v7974_v1 }
 0x804   :  { %5022 = vmatprep.subr.bf16.mxu0 %v7975_v53  ;;  %5086 = vmatprep.subr.bf16.mxu1 %v7976_v47 }
 0x807   :  { %5024 = vmatpush1.bf16.msra.mxu0 %v7977_v37  ;;  %5088 = vmatpush1.bf16.msra.mxu1 %v7978_v18 }
 0x808   :  { %5090 = vmatprep.subr.bf16.mxu0 %v7979_v3  ;;  %5154 = vmatprep.subr.bf16.mxu1 %v7980_v13 }
 0x80c   :  { %v5533_v4 = vpop.eup %5532 }
 0x80d   :  { %v7150_v14 = vmul.f32 %v5533_v4, %v5531_v45 }
 0x80f   :  { %3070 = vmatprep.mubr.f32.mxu0 %v7150_v14  ;;  %3141 = vmatprep.mubr.f32.mxu1 %v7150_v14 }
 0x810   :  { %3071 = vmatmul.mubr.f32.vlgmr.msra.gmra.mrb[28].mxu0 %v7074_v9  ;;  %3142 = vmatmul.mubr.f32.vlgmr.msra.gmra.mrb[30].mxu1 %v7074_v9 }
 0x811   :  { %5092 = vmatpush1.bf16.msra.mxu0 %v7715_v5  ;;  %5156 = vmatpush1.bf16.msra.mxu1 %v7775_v54  ;;  %v7981_v5 = vld [vmem:[#allocation77_spill] sm:$0xff]  ;;  %v7982_v54 = vld [vmem:[#allocation80_spill] sm:$0xff] }
 0x812   :  { %5094 = vmatprep.subr.bf16.mxu0 %v7835_v28  ;;  %5158 = vmatprep.subr.bf16.mxu1 %v7836_v42 }
 0x815   :  { %5096 = vmatpush1.bf16.msra.mxu0 %v7895_v15  ;;  %5160 = vmatpush1.bf16.msra.mxu1 %v7896_v22 }
 0x816   :  { %5098 = vmatprep.subr.bf16.mxu0 %v7897_v23  ;;  %5162 = vmatprep.subr.bf16.mxu1 %v7956_v24  ;;  %v7990_v23 = vld [vmem:[#allocation95_spill] sm:$0xff] }
 0x817   :  { %v7991_v24 = vld [vmem:[#allocation55_spill] sm:$0xff] }
 0x819   :  { %5100 = vmatpush1.bf16.msra.mxu0 %v7957_v35  ;;  %5164 = vmatpush1.bf16.msra.mxu1 %v7958_v43 }
 0x81a   :  { %5102 = vmatprep.subr.bf16.mxu0 %v7959_v31  ;;  %5166 = vmatprep.subr.bf16.mxu1 %v7960_v49  ;;  %v7992_v49 = vld [vmem:[#allocation120_spill] sm:$0xff] }
 0x81d   :  { %5104 = vmatpush1.bf16.msra.mxu0 %v7961_v0  ;;  %5168 = vmatpush1.bf16.msra.mxu1 %v7962_v63 }
 0x81e   :  { %5106 = vmatprep.subr.bf16.mxu0 %v7963_v48  ;;  %5170 = vmatprep.subr.bf16.mxu1 %v7906_v21 }
 0x821   :  { %5108 = vmatpush1.bf16.msra.mxu0 %v7964_v40  ;;  %5172 = vmatpush1.bf16.msra.mxu1 %v7981_v5  ;;  %v7993_v40 = vld [vmem:[#allocation121_spill] sm:$0xff] }
 0x822   :  { %5110 = vmatprep.subr.bf16.mxu0 %v7966_v2  ;;  %5174 = vmatprep.subr.bf16.mxu1 %v7910_v44 }
 0x825   :  { %5112 = vmatpush1.bf16.msra.mxu0 %v7982_v54  ;;  %5176 = vmatpush1.bf16.msra.mxu1 %v7911_v19 }
 0x826   :  { %5114 = vmatprep.subr.bf16.mxu0 %v7967_v51  ;;  %5178 = vmatprep.subr.bf16.mxu1 %v7855_v20 }
 0x829   :  { %5116 = vmatpush1.bf16.msra.mxu0 %v7856_v11  ;;  %5180 = vmatpush1.bf16.msra.mxu1 %v7857_v32 }
 0x82a   :  { %5118 = vmatprep.subr.bf16.mxu0 %v7858_v46  ;;  %5182 = vmatprep.subr.bf16.mxu1 %v7800_v52 }
 0x82d   :  { %5120 = vmatpush1.bf16.msra.mxu0 %v7913_v30  ;;  %5184 = vmatpush1.bf16.msra.mxu1 %v7914_v12 }
 0x82e   :  { %5122 = vmatprep.subr.bf16.mxu0 %v7803_v27  ;;  %5186 = vmatprep.subr.bf16.mxu1 %v7804_v16  ;;  %v7983_v16 = vld [vmem:[#allocation110_spill] sm:$0xff]  ;;  %v7988_v27 = vld [vmem:[#allocation59_spill] sm:$0xff] }
 0x831   :  { %5124 = vmatpush1.bf16.msra.mxu0 %v7805_v8  ;;  %5188 = vmatpush1.bf16.msra.mxu1 %v7806_v61 }
 0x832   :  { %5126 = vmatprep.subr.bf16.mxu0 %v7861_v41  ;;  %5190 = vmatprep.subr.bf16.mxu1 %v7750_v6 }
 0x835   :  { %5128 = vmatpush1.bf16.msra.mxu0 %v7751_v60  ;;  %5192 = vmatpush1.bf16.msra.mxu1 %v7752_v33  ;;  %v7984_v33 = vld [vmem:[#allocation111_spill] sm:$0xff]  ;;  %v7985_v60 = vld [vmem:[#allocation112_spill] sm:$0xff] }
 0x836   :  { %5130 = vmatprep.subr.bf16.mxu0 %v7753_v7  ;;  %5194 = vmatprep.subr.bf16.mxu1 %v7808_v50  ;;  %v7987_v7 = vld [vmem:[#allocation57_spill] sm:$0xff] }
 0x839   :  { %5132 = vmatpush1.bf16.msra.mxu0 %v7915_v39  ;;  %5196 = vmatpush1.bf16.msra.mxu1 %v7863_v38 }
 0x83a   :  { %5134 = vmatprep.subr.bf16.mxu0 %v7969_v62  ;;  %5198 = vmatprep.subr.bf16.mxu1 %v7916_v10  ;;  %v7994_v62 = vld [vmem:[#allocation122_spill] sm:$0xff] }
 0x83d   :  { %5136 = vmatpush1.bf16.msra.mxu0 %v7811_v25  ;;  %5200 = vmatpush1.bf16.msra.mxu1 %v7970_v29  ;;  %v7989_v25 = vld [vmem:[#allocation58_spill] sm:$0xff] }
 0x83e   :  { %5138 = vmatprep.subr.bf16.mxu0 %v7702_v36  ;;  %5202 = vmatprep.subr.bf16.mxu1 %v7971_v55 }
 0x841   :  { %5140 = vmatpush1.bf16.msra.mxu0 %v7704_v26  ;;  %5204 = vmatpush1.bf16.msra.mxu1 %v7705_v34  ;;  %v7986_v26 = vld [vmem:[#allocation56_spill] sm:$0xff] }
 0x842   :  { %5142 = vmatprep.subr.bf16.mxu0 %v7983_v16  ;;  %5206 = vmatprep.subr.bf16.mxu1 %v7984_v33 }
 0x845   :  { %5144 = vmatpush1.bf16.msra.mxu0 %v6361_v57  ;;  %5208 = vmatpush1.bf16.msra.mxu1 %v6363_v58  ;;  %v3372_v57 = vld [vmem:[%s7319_s10] sm:$0xff]  ;;  %v3373_v58 = vld [vmem:[%s7319_s10 + $0x8] sm:$0xff] }
 0x846   :  { %5146 = vmatprep.subr.bf16.mxu0 %v6367_v17  ;;  %5210 = vmatprep.subr.bf16.mxu1 %v7985_v60  ;;  %v7224_v17 = vpack.c.bf16 %v3373_v58, %v3372_v57  ;;  %v3374_v57 = vld [vmem:[%s7319_s10 + $0x10] sm:$0xff]  ;;  %v3375_v58 = vld [vmem:[%s7319_s10 + $0x18] sm:$0xff] }
 0x849   :  { %5148 = vmatpush1.bf16.msra.mxu0 %v7973_v56  ;;  %5212 = vmatpush1.bf16.msra.mxu1 %v7974_v1 }
 0x84a   :  { %5150 = vmatprep.subr.bf16.mxu0 %v7975_v53  ;;  %5214 = vmatprep.subr.bf16.mxu1 %v7976_v47 }
 0x84d   :  { %5152 = vmatpush1.bf16.msra.mxu0 %v7977_v37  ;;  %5216 = vmatpush1.bf16.msra.mxu1 %v7978_v18 }
 0x84e   :  { %5218 = vmatprep.subr.bf16.mxu0 %v7224_v17 }
 0x89d   :  { %v2926_v56 = vpop.f32.mrb[14].mxu0  ;;  %v2997_v1 = vpop.f32.mrb[14].mxu1 }
 0x89e   :  { %v5265_v36 = vadd.f32 %v2926_v56, %v7986_v26  ;;  %v2928_v34 = vpop.f32.mrb[15].mxu0  ;;  %v2999_v6 = vpop.f32.mrb[15].mxu1  ;;  %v5281_v28 = vadd.f32 %v2997_v1, %v7989_v25  ;;  %v5221_v26 = vpack.c.bf16 %v3375_v58, %v3374_v57 }
 0x89f   :  { %v5266_v61 = vadd.f32 %v2928_v34, %v7987_v7  ;;  %v5282_v8 = vadd.f32 %v2999_v6, %v7988_v27  ;;  %v7995_v34 = vld [vmem:[#allocation106_spill] sm:$0xff] }
 0x8a0   :  { %v3587_v12 = vmul.f32 -1.442695, %v5265_v36  ;;  %v3377_v36 = vld [vmem:[%s7319_s10 + $0x28] sm:$0xff]  ;;  %v3378_v7 = vld [vmem:[%s7319_s10 + $0x30] sm:$0xff] }
 0x8a1   :  { %v3588_v52 = vmul.f32 -1.442695, %v5266_v61  ;;  %v3589_v50 = vmul.f32 -1.442695, %v5282_v8  ;;  %v3379_v61 = vld [vmem:[%s7319_s10 + $0x38] sm:$0xff]  ;;  %v3382_v8 = vld [vmem:[%s7319_s10 + $0x50] sm:$0xff] }
 0x8a2   :  { %5534 = vpow2.f32 %v3587_v12  ;;  %v5229_v12 = vpack.c.bf16 %v3379_v61, %v3378_v7 }
 0x8a3   :  { %5536 = vpow2.f32 %v3588_v52  ;;  %v3380_v52 = vld [vmem:[%s7319_s10 + $0x40] sm:$0xff] }
 0x8a4   :  { %5538 = vpow2.f32 %v3589_v50  ;;  %v3383_v50 = vld [vmem:[%s7319_s10 + $0x58] sm:$0xff] }
 0x8a5   :  { %5540 = vtanh.f32 %v5281_v28  ;;  %v5237_v25 = vpack.c.bf16 %v3383_v50, %v3382_v8  ;;  %v3384_v28 = vld [vmem:[%s7319_s10 + $0x60] sm:$0xff] }
 0x8ac   :  { %v5535_v42 = vpop.eup %5534 }
 0x8ad   :  { %v5537_v11 = vpop.eup %5536  ;;  %v3151_v32 = vadd.f32 1.0, %v5535_v42  ;;  %v3385_v42 = vld [vmem:[%s7319_s10 + $0x68] sm:$0xff] }
 0x8ae   :  { %v3157_v13 = vadd.f32 1.0, %v5537_v11  ;;  %v5539_v20 = vpop.eup %5538  ;;  %v5241_v11 = vpack.c.bf16 %v3385_v42, %v3384_v28 }
 0x8af   :  { %5542 = vrcp.f32 %v3151_v32  ;;  %v5541_v46 = vpop.eup %5540  ;;  %v3164_v22 = vadd.f32 1.0, %v5539_v20  ;;  %v3386_v32 = vld [vmem:[%s7319_s10 + $0x70] sm:$0xff] }
 0x8b0   :  { %5544 = vrcp.f32 %v3157_v13  ;;  %v3387_v13 = vld [vmem:[%s7319_s10 + $0x78] sm:$0xff] }
 0x8b1   :  { %5546 = vrcp.f32 %v3164_v22  ;;  %v5245_v20 = vpack.c.bf16 %v3387_v13, %v3386_v32 }
 0x8b9   :  { %v5543_v41 = vpop.eup %5542 }
 0x8ba   :  { %v5545_v38 = vpop.eup %5544  ;;  %v3168_v15 = vmul.f32 %v5543_v41, %v5541_v46  ;;  %v7996_v46 = vld [vmem:[#allocation108_spill] sm:$0xff]  ;;  %v7997_v41 = vld [vmem:[#allocation109_spill] sm:$0xff] }
 0x8bb   :  { %v3167_v44 = vmul.f32 %v5545_v38, %v7990_v23  ;;  %v5547_v30 = vpop.eup %5546  ;;  %v7998_v38 = vld [vmem:[#allocation119_spill] sm:$0xff] }
 0x8bd   :  { %v3169_v19 = vadd.f32 %v3168_v15, %v3167_v44  ;;  %v7999_v15 = vld [vmem:[#allocation60_spill] sm:$0xff] }
 0x8bf   :  { %5548 = vtanh.f32 %v3169_v19 }
 0x8c9   :  { %v5549_v21 = vpop.eup %5548 }
 0x8ca   :  { %v3171_v39 = vmul.f32 %v5549_v21, %v5547_v30 }
 0x8e3   :  { %v3072_v10 = vpop.f32.mrb[28].mxu0  ;;  %v3143_v9 = vpop.f32.mrb[30].mxu1 }
 0x8e4   :  { %v3073_v35 = vadd.f32 %v3072_v10, %v7991_v24  ;;  %v3074_v43 = vpop.f32.mrb[29].mxu0  ;;  %v3145_v31 = vpop.f32.mrb[31].mxu1  ;;  %v3144_v29 = vadd.f32 %v3143_v9, %v7994_v62 }
 0x8e5   :  { %v3075_v0 = vadd.f32 %v3074_v43, %v7992_v49  ;;  %v3146_v2 = vadd.f32 %v3145_v31, %v7993_v40 }
 0x8e6   :  { %v3590_v63 = vmul.f32 -1.442695, %v3073_v35 }
 0x8e7   :  { %v3591_v48 = vmul.f32 -1.442695, %v3075_v0  ;;  %v3592_v51 = vmul.f32 -1.442695, %v3146_v2 }
 0x8e8   :  { %5550 = vpow2.f32 %v3590_v63 }
 0x8e9   :  { %5552 = vpow2.f32 %v3591_v48 }
 0x8ea   :  { %5554 = vpow2.f32 %v3592_v51 }
 0x8eb   :  { %5556 = vtanh.f32 %v3144_v29 }
 0x8f2   :  { %v5551_v55 = vpop.eup %5550 }
 0x8f3   :  { %v5553_v53 = vpop.eup %5552  ;;  %v3175_v47 = vadd.f32 1.0, %v5551_v55 }
 0x8f4   :  { %v3181_v37 = vadd.f32 1.0, %v5553_v53  ;;  %v5555_v18 = vpop.eup %5554 }
 0x8f5   :  { %5558 = vrcp.f32 %v3175_v47  ;;  %v5557_v3 = vpop.eup %5556  ;;  %v3188_v54 = vadd.f32 1.0, %v5555_v18 }
 0x8f6   :  { %5560 = vrcp.f32 %v3181_v37 }
 0x8f7   :  { %5562 = vrcp.f32 %v3188_v54 }
 0x8ff   :  { %v5559_v45 = vpop.eup %5558 }
 0x900   :  { %v5561_v4 = vpop.eup %5560  ;;  %v3192_v5 = vmul.f32 %v5559_v45, %v5557_v3 }
 0x901   :  { %v3191_v16 = vmul.f32 %v5561_v4, %v7139_v59  ;;  %v5563_v60 = vpop.eup %5562  ;;  %v3376_v59 = vld [vmem:[%s7319_s10 + $0x20] sm:$0xff] }
 0x902   :  { %v5225_v6 = vpack.c.bf16 %v3377_v36, %v3376_v59 }
 0x903   :  { %v7237_v33 = vadd.f32 %v3192_v5, %v3191_v16 }
 0x905   :  { %5564 = vtanh.f32 %v7237_v33 }
 0x90f   :  { %v5565_v56 = vpop.eup %5564 }
 0x910   :  { %v3195_v1 = vmul.f32 %v5565_v56, %v5563_v60 }
 0x912   :  { %3261 = vmatprep.mubr.f32.mxu0 %v3195_v1  ;;  %3332 = vmatprep.mubr.f32.mxu1 %v3195_v1 }
 0x913   :  { %3262 = vmatmul.mubr.f32.vlgmr.msra.gmra.mrb[30].mxu0 %v3171_v39  ;;  %3333 = vmatmul.mubr.f32.vlgmr.msra.gmra.mrb[32].mxu1 %v3171_v39 }
 0x914   :  { %5220 = vmatpush3.bf16.msra.mxu0 %v7224_v17  ;;  %3653 = vmatprep.mubr.f32.mxu0 %v7995_v34  ;;  %v3381_v17 = vld [vmem:[%s7319_s10 + $0x48] sm:$0xff] }
 0x915   :  { %5222 = vmatprep.subr.bf16.mxu0 %v5221_v26  ;;  %v5233_v27 = vpack.c.bf16 %v3381_v17, %v3380_v52 }
 0x918   :  { %5224 = vmatpush3.bf16.msra.mxu0 %v5221_v26 }
 0x919   :  { %5226 = vmatprep.subr.bf16.mxu0 %v5225_v6 }
 0x91c   :  { %5228 = vmatpush3.bf16.msra.mxu0 %v5225_v6 }
 0x91d   :  { %5230 = vmatprep.subr.bf16.mxu0 %v5229_v12 }
 0x920   :  { %5232 = vmatpush3.bf16.msra.mxu0 %v5229_v12 }
 0x921   :  { %5234 = vmatprep.subr.bf16.mxu0 %v5233_v27 }
 0x924   :  { %5236 = vmatpush3.bf16.msra.mxu0 %v5233_v27 }
 0x925   :  { %5238 = vmatprep.subr.bf16.mxu0 %v5237_v25 }
 0x928   :  { %5240 = vmatpush3.bf16.msra.mxu0 %v5237_v25 }
 0x929   :  { %5242 = vmatprep.subr.bf16.mxu0 %v5241_v11 }
 0x92c   :  { %5244 = vmatpush3.bf16.msra.mxu0 %v5241_v11 }
 0x92d   :  { %5246 = vmatprep.subr.bf16.mxu0 %v5245_v20 }
 0x930   :  { %5248 = vmatpush3.bf16.msra.mxu0 %v5245_v20 }
 0x933   :  { %3654 = vmatmul.mubr.f32.vlgmr.msra.gmra.mrb[32].mxu0 %v7996_v46 }
 0x934   :  { %3656 = vmatprep.mubr.f32.mxu0 %v7997_v41 }
 0x937   :  { %3657 = vmatmul.mubr.f32.gmra.mrb[34].mxu0 %v7998_v38 }
 0x938   :  { %3659 = vmatprep.mubr.f32.mxu0 %v7999_v15 }
 0x93b   :  { %3660 = vmatmul.mubr.f32.gmra.mrb[36].mxu0 %v7150_v14 }
 0x93c   :  { %3662 = vmatprep.mubr.f32.mxu0 %v3195_v1 }
 0x9e6   :  { %v3263_v22 = vpop.f32.mrb[30].mxu0  ;;  %v3334_v23 = vpop.f32.mrb[32].mxu1 }
 0x9e7   :  { %v3264_v44 = vadd.f32 %v3263_v22, %v7991_v24  ;;  %v3265_v19 = vpop.f32.mrb[31].mxu0  ;;  %v3336_v30 = vpop.f32.mrb[33].mxu1  ;;  %v3335_v43 = vadd.f32 %v3334_v23, %v7994_v62 }
 0x9e8   :  { %v3266_v21 = vadd.f32 %v3265_v19, %v7992_v49  ;;  %v3337_v9 = vadd.f32 %v3336_v30, %v7993_v40  ;;  %v3596_v40 = vld [vmem:[%s7320_s11] ss:$0 sm:$0xff]  ;;  %s5778_s11 = smov [#allocation15]  }
 0x9e9   :  { %v3593_v39 = vmul.f32 -1.442695, %v3264_v44  ;;  %s3513_s7 = sshll.u32 %s5778_s11, 4  ;;  %s3514_s7 = int_to_ptr.vmem [resolvable:$true] %s3513_s7 }
 0x9ea   :  { %v3594_v10 = vmul.f32 -1.442695, %v3266_v21  ;;  %v3595_v35 = vmul.f32 -1.442695, %v3337_v9  ;;  %s5736_s25 = scalar_lea.vmem %s3514_s7, 1024  ;;  %p5741_p1 = scmp.lt.s32.totalorder %s3514_s7, %s3514_s7 }
 0x9eb   :  { %5566 = vpow2.f32 %v3593_v39  ;;  %p5737_p0 = scmp.ne.s32.totalorder %s3514_s7, %s5736_s25  ;;  %p5742_p2 = scmp.lt.s32.totalorder %s5736_s25, %s5736_s25 }
 0x9ec   :  { %5568 = vpow2.f32 %v3594_v10 }
 0x9ed   :  { %5570 = vpow2.f32 %v3595_v35  ;;  %p5743_p3 = por %p5742_p2, %p5741_p1 }
 0x9ee   :  { %5572 = vtanh.f32 %v3335_v43 }
 0x9ef   :  { %p5744_p4 = pnand %p5743_p3, %p5737_p0 }
 0x9f5   :  { %v5567_v31 = vpop.eup %5566 }
 0x9f6   :  { %v5569_v14 = vpop.eup %5568  ;;  %v3342_v0 = vadd.f32 1.0, %v5567_v31 }
 0x9f7   :  { %v3348_v63 = vadd.f32 1.0, %v5569_v14  ;;  %v5571_v24 = vpop.eup %5570 }
 0x9f8   :  { %5574 = vrcp.f32 %v3342_v0  ;;  %v5573_v48 = vpop.eup %5572  ;;  %v3355_v29 = vadd.f32 1.0, %v5571_v24 }
 0x9f9   :  { %5576 = vrcp.f32 %v3348_v63 }
 0x9fa   :  { %5578 = vrcp.f32 %v3355_v29 }
 0xa02   :  { %v5575_v49 = vpop.eup %5574 }
 0xa03   :  { %v5577_v2 = vpop.eup %5576  ;;  %v3359_v51 = vmul.f32 %v5575_v49, %v5573_v48 }
 0xa04   :  { %v3358_v55 = vmul.f32 %v5577_v2, %v7237_v33  ;;  %v5579_v57 = vpop.eup %5578 }
 0xa06   :  { %v3655_v62 = vpop.f32.mrb[32].mxu0  ;;  %v3360_v53 = vadd.f32 %v3359_v51, %v3358_v55 }
 0xa07   :  { %v3467_v47 = vadd.f32 %v3655_v62, %v3596_v40  ;;  %v3461_v37 = vpop.f32.mrb[33].mxu0 }
 0xa08   :  { %v3462_v18 = vadd.f32 %v3596_v40, %v3461_v37  ;;  %5580 = vtanh.f32 %v3360_v53 }
 0xa09   :  { %3501 = vst [vmem:[#allocation15 + $0x8] sm:$0xff] %v3467_v47 }
 0xa0a   :  { %3500 = vst [vmem:[#allocation15] sm:$0xff] %v3462_v18  ;;  %v3658_v3 = vpop.f32.mrb[34].mxu0 }
 0xa0b   :  { %v3477_v45 = vadd.f32 %v3658_v3, %v3596_v40  ;;  %v3471_v4 = vpop.f32.mrb[35].mxu0 }
 0xa0c   :  { %v3472_v5 = vadd.f32 %v3596_v40, %v3471_v4 }
 0xa0d   :  { %3503 = vst [vmem:[#allocation15 + $0x18] sm:$0xff] %v3477_v45 }
 0xa0e   :  { %3502 = vst [vmem:[#allocation15 + $0x10] sm:$0xff] %v3472_v5  ;;  %v3661_v54 = vpop.f32.mrb[36].mxu0 }
 0xa0f   :  { %v3487_v16 = vadd.f32 %v3661_v54, %v3596_v40  ;;  %v3481_v33 = vpop.f32.mrb[37].mxu0 }
 0xa10   :  { %v3482_v60 = vadd.f32 %v3596_v40, %v3481_v33 }
 0xa11   :  { %3505 = vst [vmem:[#allocation15 + $0x28] sm:$0xff] %v3487_v16 }
 0xa12   :  { %v5581_v58 = vpop.eup %5580  ;;  %3504 = vst [vmem:[#allocation15 + $0x20] sm:$0xff] %v3482_v60 }
 0xa13   :  { %v3362_v56 = vmul.f32 %v5581_v58, %v5579_v57 }
 0xa15   :  { %3663 = vmatmul.mubr.f32.gmra.mrb[38].mxu0 %v3362_v56 }
 0xae8   :  { %v3664_v1 = vpop.f32.mrb[38].mxu0 }
 0xae9   :  { %v3497_v26 = vadd.f32 %v3664_v1, %v3596_v40  ;;  %v3491_v59 = vpop.f32.mrb[39].mxu0 }
 0xaea   :  { %v3492_v36 = vadd.f32 %v3596_v40, %v3491_v59 }
 0xaeb   :  { %3507 = vst [vmem:[#allocation15 + $0x38] sm:$0xff] %v3497_v26 }
 0xaec   :  { %3506 = vst [vmem:[#allocation15 + $0x30] sm:$0xff] %v3492_v36 }
 0xaed   :  { %5747 = shalt.err (!%p5744_p4)
}
 0xaee   :  { %s5748_s13 = scalar_lea.hbm %s7321_s12, 1024 }
 0xaef   :  { %p5749_p5 = scmp.ne.s32.totalorder %s7321_s12, %s5748_s13  ;;  %p5752_p6 = scmp.lt.u32.totalorder %s5748_s13, %s7321_s12 }
 0xaf1   :  { %p5754_p7 = pnand %p5752_p6, %p5749_p5 }
 0xaf3   :  { %5757 = shalt.err (!%p5754_p7)
}
 0xaf4   :  { %s5779_s30 = smov 128   ;;  %s5780_s20 = smov 8  }
 0xaf5   :  { %3519 = dma.vmem_to_hbm [thread:$0]  %s3514_s7, 1024, %s7321_s12, [#allocation5], %s5779_s30, %s5779_s30, %s5780_s20  }
 0xaf6   :  { %5766 = dma.done.wait [#allocation5], 1024  }
 0xaf7   :  { %5767 = vsyncadd [#allocation5], 4294966272 }
 0xaf8   :  { %3523 = vsyncpa [#allocation4], 1 }
 0xaf9   :  { %3524 = vsyncpa [#allocation7], 1 }
 0xafa   :  { %3525 = vsyncpa [#allocation10], 1 }
 0xafb   :  { %3526 = vsyncpa [#allocation13], 1 }
 0xafc   :  { %3527 = vsyncpa [#allocation5], 1 }

</bundles_post_ra>
